<compile_context>
chip_gen: v5e
topology: v5e:2x2
jax: 0.10.0
libtpu: 0.0.40
codegen_flags: <defaults>
</compile_context>

<pallas_src>
import jax
import jax.numpy as jnp
from jax import lax
from jax.experimental import pallas as pl
from jax.experimental.pallas import tpu as pltpu

NUM_CLASSES = 10      # DeepMEDA default num_classes
CLS_PAD = 128         # classifier width padded to one full lane register
FEAT_DIM = 2048       # ResNet50 feature width
BOTTLE_DIM = 256      # bottle_neck=True -> Linear(2048, 256)
KERNEL_MUL = 2.0      # MMD_loss defaults
KERNEL_NUM = 5

_VMEM = pl.BlockSpec(memory_space=pltpu.MemorySpace.VMEM)


def _recip(x):
    """EUP approx reciprocal + one Newton step (near-exact, keeps VALU clear)."""
    r = pl.reciprocal(x, approx=True)
    return r * (2.0 - x * r)


def _sq_row(z):
    """Row vector [1, N] of squared L2 norms of z's rows, without a transpose:
    ones(1,D) @ (z*z) contracted over D (tiny MXU pass)."""
    zz = z * z
    ones = jnp.ones((1, z.shape[1]), jnp.float32)
    return lax.dot_general(ones, zz, (((1,), (1,)), ((), ())),
                           preferred_element_type=jnp.float32)


# ----------------------------------------------------------------------------
# Fused kernel: head (bottle + cls_fc) -> softmax -> cal_weight -> MMD losses.
# ----------------------------------------------------------------------------
def _deep_meda_kernel(xs_ref, xt_ref, wb_ref, bb_ref, wc_ref, bc_ref, slab_ref,
                      spred_ref, losses_ref):
    b = xs_ref.shape[0]          # per-domain batch
    cp = wc_ref.shape[1]         # padded class width (128)
    n2 = 2 * b                   # total samples (source || target)

    # ---------------- head: bottleneck + classifier (bf16 MXU, f32 acc) -----
    xs = xs_ref[...].astype(jnp.bfloat16)                           # [B, 2048]
    xt = xt_ref[...].astype(jnp.bfloat16)
    zs = jnp.dot(xs, wb_ref[...],
                 preferred_element_type=jnp.float32) + bb_ref[...]  # f32 [B, 256]
    zt = jnp.dot(xt, wb_ref[...],
                 preferred_element_type=jnp.float32) + bb_ref[...]
    logits_s = jnp.dot(zs.astype(jnp.bfloat16), wc_ref[...],
                       preferred_element_type=jnp.float32) + bc_ref[...]  # [B, CP]
    logits_t = jnp.dot(zt.astype(jnp.bfloat16), wc_ref[...],
                       preferred_element_type=jnp.float32) + bc_ref[...]

    # lane-dense s_pred store (real classes live in columns [0, NUM_CLASSES))
    spred_ref[...] = logits_s

    # ---------------- target softmax over the real class columns ------------
    col1 = lax.broadcasted_iota(jnp.int32, (1, cp), 1)
    valid = col1 < NUM_CLASSES                                      # [1, CP]
    t_max = jnp.max(jnp.where(valid, logits_t, jnp.float32(-3.0e38)),
                    axis=1, keepdims=True)
    t_exp = jnp.where(valid, jnp.exp(logits_t - t_max), 0.0)
    t_probs = t_exp * _recip(jnp.sum(t_exp, axis=1, keepdims=True))  # [B, CP]

    # ---------------- class-conditional weights (MMD_loss.cal_weight) -------
    colb = lax.broadcasted_iota(jnp.int32, (b, cp), 1)
    s_onehot = (slab_ref[...] == colb).astype(jnp.float32)          # [B, CP]

    s_sum = jnp.sum(s_onehot, axis=0, keepdims=True)
    s_vec = s_onehot * _recip(jnp.where(s_sum == 0.0, 100.0, s_sum))

    t_sum = jnp.sum(t_probs, axis=0, keepdims=True)
    t_vec = t_probs * _recip(jnp.where(t_sum == 0.0, 100.0, t_sum))

    # target pseudo-labels: first argmax column (padded cols are never max)
    row_max = jnp.max(t_probs, axis=1, keepdims=True)
    t_sca = jnp.min(jnp.where(t_probs == row_max, colb, cp),
                    axis=1, keepdims=True)                          # [B, 1]
    t_onehot = (t_sca == colb).astype(jnp.float32)

    common = jnp.logical_and(jnp.max(s_onehot, axis=0, keepdims=True) > 0.0,
                             jnp.max(t_onehot, axis=0, keepdims=True) > 0.0)
    mask = common.astype(jnp.float32)                               # [1, CP]
    s_vec = s_vec * mask
    t_vec = t_vec * mask

    dn = (((1,), (1,)), ((), ()))     # contract dim 1 of both (no transpose)
    w_ss = lax.dot_general(s_vec, s_vec, dn, preferred_element_type=jnp.float32)
    w_tt = lax.dot_general(t_vec, t_vec, dn, preferred_element_type=jnp.float32)
    w_st = lax.dot_general(s_vec, t_vec, dn, preferred_element_type=jnp.float32)

    length = jnp.sum(mask)
    w_scale = jnp.where(length > 0.0, 1.0 / jnp.maximum(length, 1.0), 0.0)

    # ---------------- multi-bandwidth Gaussian kernel, block-wise -----------
    # Gram blocks (f32 for fidelity at small batch; bf16 Gram is a large-batch
    # v5e optimization) and L2 distances from row norms (no eye masking).
    g_ss = lax.dot_general(zs, zs, dn, preferred_element_type=jnp.float32)  # [B,B]
    g_tt = lax.dot_general(zt, zt, dn, preferred_element_type=jnp.float32)
    g_st = lax.dot_general(zs, zt, dn, preferred_element_type=jnp.float32)

    sn_s_col = jnp.sum(zs * zs, axis=1, keepdims=True)              # [B, 1]
    sn_t_col = jnp.sum(zt * zt, axis=1, keepdims=True)
    sn_s_row = _sq_row(zs)                                          # [1, B]
    sn_t_row = _sq_row(zt)

    l2_ss = jnp.maximum(sn_s_col + sn_s_row - 2.0 * g_ss, 0.0)
    l2_tt = jnp.maximum(sn_t_col + sn_t_row - 2.0 * g_tt, 0.0)
    l2_st = jnp.maximum(sn_s_col + sn_t_row - 2.0 * g_st, 0.0)

    # bandwidth = sum(L2_full)/(n^2-n)/mul^(num//2); L2_full sum = SS+TT+2*ST.
    denom = float(n2 * n2 - n2) * (KERNEL_MUL ** (KERNEL_NUM // 2))
    bw_sum = jnp.sum(l2_ss) + jnp.sum(l2_tt) + 2.0 * jnp.sum(l2_st)
    bandwidth = (bw_sum * (1.0 / denom)).reshape(1, 1)
    inv_bw = _recip(bandwidth)                                      # (1, 1)

    k_ss = jnp.zeros_like(l2_ss)
    k_tt = jnp.zeros_like(l2_tt)
    k_st = jnp.zeros_like(l2_st)
    for i in range(KERNEL_NUM):
        scale = inv_bw * (KERNEL_MUL ** (-i))
        k_ss = k_ss + jnp.exp(-l2_ss * scale)
        k_tt = k_tt + jnp.exp(-l2_tt * scale)
        k_st = k_st + jnp.exp(-l2_st * scale)

    # marginal MMD: mean(XX + YY - XY - YX); YX = ST^T so mean(YX)=mean(ST)
    loss_m = jnp.mean(k_ss + k_tt - 2.0 * k_st)

    # conditional MMD: sum(w_ss*SS + w_tt*TT - 2*w_st*ST), zero if kernel NaN
    loss_c = w_scale * jnp.sum(w_ss * k_ss + w_tt * k_tt - 2.0 * w_st * k_st)
    has_nan = jnp.isnan(jnp.sum(k_ss) + jnp.sum(k_tt) + jnp.sum(k_st))
    loss_c = jnp.where(has_nan, jnp.float32(0.0), loss_c)

    # single lane-dense loss slab: lane 0 = loss_c, lane 1 = loss_m
    lane = lax.broadcasted_iota(jnp.int32, (1, cp), 1)
    losses_ref[...] = jnp.where(lane == 0, loss_c.reshape(1, 1),
                                jnp.where(lane == 1, loss_m.reshape(1, 1), 0.0))


# ----------------------------------------------------------------------------
# One-time weight preprocessing (hoisted out of the per-step forward).
# ----------------------------------------------------------------------------
def prepare_params(wb, bb, wc, bc):
    wb_bf = wb.astype(jnp.bfloat16)                                  # MXU lhs dtype
    wc_p = jnp.pad(wc, ((0, 0), (0, CLS_PAD - NUM_CLASSES))).astype(jnp.bfloat16)
    bc_p = jnp.pad(bc, ((0, 0), (0, CLS_PAD - NUM_CLASSES)))
    return wb_bf, bb, wc_p, bc_p


# ----------------------------------------------------------------------------
# Full DeepMEDA.forward equivalent (given backbone-pooled features).
# ----------------------------------------------------------------------------
def deep_meda_forward(source_feat, target_feat, s_label, prepared_params):
    wb_bf, bb, wc_p, bc_p = prepared_params
    b = source_feat.shape[0]
    slab = s_label.astype(jnp.int32).reshape(b, 1)

    spred_pad, losses = pl.pallas_call(
        _deep_meda_kernel,
        in_specs=[_VMEM] * 7,
        out_specs=(_VMEM, _VMEM),
        out_shape=(
            jax.ShapeDtypeStruct((b, CLS_PAD), jnp.float32),
            jax.ShapeDtypeStruct((1, CLS_PAD), jnp.float32),
        ),
        compiler_params=pltpu.CompilerParams(vmem_limit_bytes=32 * 1024 * 1024),
    )(source_feat, target_feat, wb_bf, bb, wc_p, bc_p, slab)

    s_pred = spred_pad[:, :NUM_CLASSES]
    mu = jnp.float32(0.5)   # TODO(synk): estimate_mu (SVM A-distance) not ported
    return s_pred, losses[0, 0], losses[0, 1], mu


def _linear_init(key, in_f, out_f):
    kw, kb = jax.random.split(key)
    bound = 1.0 / (in_f ** 0.5)
    w = jax.random.uniform(kw, (in_f, out_f), jnp.float32, -bound, bound)
    b = jax.random.uniform(kb, (1, out_f), jnp.float32, -bound, bound)
    return w, b


if __name__ == "__main__":
    key = jax.random.PRNGKey(0)
    k_src, k_tgt, k_lab, k_bottle, k_cls = jax.random.split(key, 5)

    B = 8
    source_feat = jax.random.normal(k_src, (B, FEAT_DIM), jnp.float32)
    target_feat = jax.random.normal(k_tgt, (B, FEAT_DIM), jnp.float32)
    s_label = jax.random.randint(k_lab, (B,), 0, NUM_CLASSES)

    wb, bb = _linear_init(k_bottle, FEAT_DIM, BOTTLE_DIM)   # bottle: 2048 -> 256
    wc, bc = _linear_init(k_cls, BOTTLE_DIM, NUM_CLASSES)   # cls_fc: 256 -> 10

    # Weights cast/padded ONCE, outside the per-step forward.
    params = jax.block_until_ready(prepare_params(wb, bb, wc, bc))

    fwd = jax.jit(deep_meda_forward)
    s_pred, loss_c, loss_m, mu = fwd(source_feat, target_feat, s_label, params)
    jax.block_until_ready((s_pred, loss_c, loss_m, mu))
    print("KERNEL_OK")
</pallas_src>

<mosaic_0001>
module attributes {stable_mosaic.version = 11 : i64} {
  func.func @_deep_meda_kernel(%arg0: memref<8x2048xf32, #tpu.memory_space<vmem>>, %arg1: memref<8x2048xf32, #tpu.memory_space<vmem>>, %arg2: memref<2048x256xbf16, #tpu.memory_space<vmem>>, %arg3: memref<1x256xf32, #tpu.memory_space<vmem>>, %arg4: memref<256x128xbf16, #tpu.memory_space<vmem>>, %arg5: memref<1x128xf32, #tpu.memory_space<vmem>>, %arg6: memref<8x1xi32, #tpu.memory_space<vmem>>, %arg7: memref<8x128xf32, #tpu.memory_space<vmem>>, %arg8: memref<1x128xf32, #tpu.memory_space<vmem>>) attributes {dimension_semantics = [], scalar_prefetch = 0 : i64, scratch_operands = 0 : i64, tpu.core_type = #tpu.core_type<tc>} {
    %c0 = arith.constant 0 : index
    %c0_0 = arith.constant 0 : index
    %0 = vector.load %arg0[%c0, %c0_0] : memref<8x2048xf32, #tpu.memory_space<vmem>>, vector<8x2048xf32>
    %1 = arith.truncf %0 : vector<8x2048xf32> to vector<8x2048xbf16>
    %c0_1 = arith.constant 0 : index
    %c0_2 = arith.constant 0 : index
    %2 = vector.load %arg1[%c0_1, %c0_2] : memref<8x2048xf32, #tpu.memory_space<vmem>>, vector<8x2048xf32>
    %3 = arith.truncf %2 : vector<8x2048xf32> to vector<8x2048xbf16>
    %c0_3 = arith.constant 0 : index
    %c0_4 = arith.constant 0 : index
    %4 = vector.load %arg2[%c0_3, %c0_4] : memref<2048x256xbf16, #tpu.memory_space<vmem>>, vector<2048x256xbf16>
    %cst = arith.constant dense<0.000000e+00> : vector<8x256xf32>
    %5 = tpu.matmul %1, %4, %cst {dimension_numbers = #tpu.dot_dimension_numbers<[1], [0], [0], [1], [0, 0, 1, 1], [], []>} : vector<8x2048xbf16>, vector<2048x256xbf16>, vector<8x256xf32> -> vector<8x256xf32>
    %c0_5 = arith.constant 0 : index
    %c0_6 = arith.constant 0 : index
    %6 = vector.load %arg3[%c0_5, %c0_6] : memref<1x256xf32, #tpu.memory_space<vmem>>, vector<1x256xf32>
    %7 = vector.broadcast %6 : vector<1x256xf32> to vector<8x256xf32>
    %8 = arith.addf %5, %7 : vector<8x256xf32>
    %c0_7 = arith.constant 0 : index
    %c0_8 = arith.constant 0 : index
    %9 = vector.load %arg2[%c0_7, %c0_8] : memref<2048x256xbf16, #tpu.memory_space<vmem>>, vector<2048x256xbf16>
    %cst_9 = arith.constant dense<0.000000e+00> : vector<8x256xf32>
    %10 = tpu.matmul %3, %9, %cst_9 {dimension_numbers = #tpu.dot_dimension_numbers<[1], [0], [0], [1], [0, 0, 1, 1], [], []>} : vector<8x2048xbf16>, vector<2048x256xbf16>, vector<8x256xf32> -> vector<8x256xf32>
    %c0_10 = arith.constant 0 : index
    %c0_11 = arith.constant 0 : index
    %11 = vector.load %arg3[%c0_10, %c0_11] : memref<1x256xf32, #tpu.memory_space<vmem>>, vector<1x256xf32>
    %12 = vector.broadcast %11 : vector<1x256xf32> to vector<8x256xf32>
    %13 = arith.addf %10, %12 : vector<8x256xf32>
    %14 = arith.truncf %8 : vector<8x256xf32> to vector<8x256xbf16>
    %c0_12 = arith.constant 0 : index
    %c0_13 = arith.constant 0 : index
    %15 = vector.load %arg4[%c0_12, %c0_13] : memref<256x128xbf16, #tpu.memory_space<vmem>>, vector<256x128xbf16>
    %cst_14 = arith.constant dense<0.000000e+00> : vector<8x128xf32>
    %16 = tpu.matmul %14, %15, %cst_14 {dimension_numbers = #tpu.dot_dimension_numbers<[1], [0], [0], [1], [0, 0, 1, 1], [], []>} : vector<8x256xbf16>, vector<256x128xbf16>, vector<8x128xf32> -> vector<8x128xf32>
    %c0_15 = arith.constant 0 : index
    %c0_16 = arith.constant 0 : index
    %17 = vector.load %arg5[%c0_15, %c0_16] : memref<1x128xf32, #tpu.memory_space<vmem>>, vector<1x128xf32>
    %18 = vector.broadcast %17 : vector<1x128xf32> to vector<8x128xf32>
    %19 = arith.addf %16, %18 : vector<8x128xf32>
    %20 = arith.truncf %13 : vector<8x256xf32> to vector<8x256xbf16>
    %c0_17 = arith.constant 0 : index
    %c0_18 = arith.constant 0 : index
    %21 = vector.load %arg4[%c0_17, %c0_18] : memref<256x128xbf16, #tpu.memory_space<vmem>>, vector<256x128xbf16>
    %cst_19 = arith.constant dense<0.000000e+00> : vector<8x128xf32>
    %22 = tpu.matmul %20, %21, %cst_19 {dimension_numbers = #tpu.dot_dimension_numbers<[1], [0], [0], [1], [0, 0, 1, 1], [], []>} : vector<8x256xbf16>, vector<256x128xbf16>, vector<8x128xf32> -> vector<8x128xf32>
    %c0_20 = arith.constant 0 : index
    %c0_21 = arith.constant 0 : index
    %23 = vector.load %arg5[%c0_20, %c0_21] : memref<1x128xf32, #tpu.memory_space<vmem>>, vector<1x128xf32>
    %24 = vector.broadcast %23 : vector<1x128xf32> to vector<8x128xf32>
    %25 = arith.addf %22, %24 : vector<8x128xf32>
    %c0_22 = arith.constant 0 : index
    %c0_23 = arith.constant 0 : index
    %26 = vector.load %arg7[%c0_22, %c0_23] : memref<8x128xf32, #tpu.memory_space<vmem>>, vector<8x128xf32>
    tpu.vector_store %arg7[%c0_22, %c0_23], %19 {strides = array<i32>} : memref<8x128xf32, #tpu.memory_space<vmem>>, vector<8x128xf32>,
    %27 = tpu.iota {dimensions = array<i32: 1>} : vector<1x128xi32>
    %c10_i32 = arith.constant 10 : i32
    %28 = vector.broadcast %c10_i32 : i32 to vector<1x128xi32>
    %29 = arith.cmpi slt, %27, %28 : vector<1x128xi32>
    %cst_24 = arith.constant -3.000000e+38 : f32
    %30 = vector.shape_cast %29 : vector<1x128xi1> to vector<1x128xi1>
    %31 = vector.broadcast %30 : vector<1x128xi1> to vector<8x128xi1>
    %32 = vector.broadcast %cst_24 : f32 to vector<8x128xf32>
    %33 = arith.select %31, %25, %32 : vector<8x128xi1>, vector<8x128xf32>
    %cst_25 = arith.constant dense<0xFF800000> : vector<8xf32>
    %34 = vector.multi_reduction <maximumf>, %33, %cst_25 [1] : vector<8x128xf32> to vector<8xf32>
    %35 = vector.shape_cast %34 : vector<8xf32> to vector<8x1xf32>
    %36 = vector.broadcast %35 : vector<8x1xf32> to vector<8x128xf32>
    %37 = arith.subf %25, %36 : vector<8x128xf32>
    %38 = math.exp %37 : vector<8x128xf32>
    %cst_26 = arith.constant 0.000000e+00 : f32
    %39 = vector.shape_cast %29 : vector<1x128xi1> to vector<1x128xi1>
    %40 = vector.broadcast %39 : vector<1x128xi1> to vector<8x128xi1>
    %41 = vector.broadcast %cst_26 : f32 to vector<8x128xf32>
    %42 = arith.select %40, %38, %41 : vector<8x128xi1>, vector<8x128xf32>
    %cst_27 = arith.constant dense<0.000000e+00> : vector<8xf32>
    %43 = vector.multi_reduction <add>, %42, %cst_27 [1] : vector<8x128xf32> to vector<8xf32>
    %44 = vector.shape_cast %43 : vector<8xf32> to vector<8x1xf32>
    %45 = tpu.reciprocal %44 {approx = true} : vector<8x1xf32> -> vector<8x1xf32>
    %46 = arith.mulf %44, %45 : vector<8x1xf32>
    %cst_28 = arith.constant 2.000000e+00 : f32
    %47 = vector.broadcast %cst_28 : f32 to vector<8x1xf32>
    %48 = arith.subf %47, %46 : vector<8x1xf32>
    %49 = arith.mulf %45, %48 : vector<8x1xf32>
    %50 = vector.broadcast %49 : vector<8x1xf32> to vector<8x128xf32>
    %51 = arith.mulf %42, %50 : vector<8x128xf32>
    %52 = tpu.iota {dimensions = array<i32: 1>} : vector<8x128xi32>
    %c0_29 = arith.constant 0 : index
    %c0_30 = arith.constant 0 : index
    %53 = vector.load %arg6[%c0_29, %c0_30] : memref<8x1xi32, #tpu.memory_space<vmem>>, vector<8x1xi32>
    %54 = vector.broadcast %53 : vector<8x1xi32> to vector<8x128xi32>
    %55 = arith.cmpi eq, %54, %52 : vector<8x128xi32>
    %56 = arith.extui %55 : vector<8x128xi1> to vector<8x128xi32>
    %57 = arith.sitofp %56 : vector<8x128xi32> to vector<8x128xf32>
    %cst_31 = arith.constant dense<0.000000e+00> : vector<128xf32>
    %58 = vector.multi_reduction <add>, %57, %cst_31 [0] : vector<8x128xf32> to vector<128xf32>
    %59 = vector.shape_cast %58 : vector<128xf32> to vector<1x128xf32>
    %cst_32 = arith.constant 0.000000e+00 : f32
    %60 = vector.broadcast %cst_32 : f32 to vector<1x128xf32>
    %61 = arith.cmpf oeq, %59, %60 : vector<1x128xf32>
    %cst_33 = arith.constant 1.000000e+02 : f32
    %62 = vector.broadcast %cst_33 : f32 to vector<1x128xf32>
    %63 = arith.select %61, %62, %59 : vector<1x128xi1>, vector<1x128xf32>
    %64 = tpu.reciprocal %63 {approx = true} : vector<1x128xf32> -> vector<1x128xf32>
    %65 = arith.mulf %63, %64 : vector<1x128xf32>
    %cst_34 = arith.constant 2.000000e+00 : f32
    %66 = vector.broadcast %cst_34 : f32 to vector<1x128xf32>
    %67 = arith.subf %66, %65 : vector<1x128xf32>
    %68 = arith.mulf %64, %67 : vector<1x128xf32>
    %69 = vector.broadcast %68 : vector<1x128xf32> to vector<8x128xf32>
    %70 = arith.mulf %57, %69 : vector<8x128xf32>
    %cst_35 = arith.constant dense<0.000000e+00> : vector<128xf32>
    %71 = vector.multi_reduction <add>, %51, %cst_35 [0] : vector<8x128xf32> to vector<128xf32>
    %72 = vector.shape_cast %71 : vector<128xf32> to vector<1x128xf32>
    %cst_36 = arith.constant 0.000000e+00 : f32
    %73 = vector.broadcast %cst_36 : f32 to vector<1x128xf32>
    %74 = arith.cmpf oeq, %72, %73 : vector<1x128xf32>
    %cst_37 = arith.constant 1.000000e+02 : f32
    %75 = vector.broadcast %cst_37 : f32 to vector<1x128xf32>
    %76 = arith.select %74, %75, %72 : vector<1x128xi1>, vector<1x128xf32>
    %77 = tpu.reciprocal %76 {approx = true} : vector<1x128xf32> -> vector<1x128xf32>
    %78 = arith.mulf %76, %77 : vector<1x128xf32>
    %cst_38 = arith.constant 2.000000e+00 : f32
    %79 = vector.broadcast %cst_38 : f32 to vector<1x128xf32>
    %80 = arith.subf %79, %78 : vector<1x128xf32>
    %81 = arith.mulf %77, %80 : vector<1x128xf32>
    %82 = vector.broadcast %81 : vector<1x128xf32> to vector<8x128xf32>
    %83 = arith.mulf %51, %82 : vector<8x128xf32>
    %cst_39 = arith.constant dense<0xFF800000> : vector<8xf32>
    %84 = vector.multi_reduction <maximumf>, %51, %cst_39 [1] : vector<8x128xf32> to vector<8xf32>
    %85 = vector.shape_cast %84 : vector<8xf32> to vector<8x1xf32>
    %86 = vector.broadcast %85 : vector<8x1xf32> to vector<8x128xf32>
    %87 = arith.cmpf oeq, %51, %86 : vector<8x128xf32>
    %c128_i32 = arith.constant 128 : i32
    %88 = vector.broadcast %c128_i32 : i32 to vector<8x128xi32>
    %89 = arith.select %87, %52, %88 : vector<8x128xi1>, vector<8x128xi32>
    %cst_40 = arith.constant dense<2147483647> : vector<8xi32>
    %90 = vector.multi_reduction <minsi>, %89, %cst_40 [1] : vector<8x128xi32> to vector<8xi32>
    %91 = vector.shape_cast %90 : vector<8xi32> to vector<8x1xi32>
    %92 = vector.broadcast %91 : vector<8x1xi32> to vector<8x128xi32>
    %93 = arith.cmpi eq, %92, %52 : vector<8x128xi32>
    %94 = arith.extui %93 : vector<8x128xi1> to vector<8x128xi32>
    %95 = arith.sitofp %94 : vector<8x128xi32> to vector<8x128xf32>
    %cst_41 = arith.constant dense<0xFF800000> : vector<128xf32>
    %96 = vector.multi_reduction <maximumf>, %57, %cst_41 [0] : vector<8x128xf32> to vector<128xf32>
    %97 = vector.shape_cast %96 : vector<128xf32> to vector<1x128xf32>
    %cst_42 = arith.constant 0.000000e+00 : f32
    %98 = vector.broadcast %cst_42 : f32 to vector<1x128xf32>
    %99 = arith.cmpf ogt, %97, %98 : vector<1x128xf32>
    %cst_43 = arith.constant dense<0xFF800000> : vector<128xf32>
    %100 = vector.multi_reduction <maximumf>, %95, %cst_43 [0] : vector<8x128xf32> to vector<128xf32>
    %101 = vector.shape_cast %100 : vector<128xf32> to vector<1x128xf32>
    %cst_44 = arith.constant 0.000000e+00 : f32
    %102 = vector.broadcast %cst_44 : f32 to vector<1x128xf32>
    %103 = arith.cmpf ogt, %101, %102 : vector<1x128xf32>
    %104 = arith.andi %99, %103 : vector<1x128xi1>
    %105 = arith.extui %104 : vector<1x128xi1> to vector<1x128xi32>
    %106 = arith.sitofp %105 : vector<1x128xi32> to vector<1x128xf32>
    %107 = vector.broadcast %106 : vector<1x128xf32> to vector<8x128xf32>
    %108 = arith.mulf %70, %107 : vector<8x128xf32>
    %109 = vector.broadcast %106 : vector<1x128xf32> to vector<8x128xf32>
    %110 = arith.mulf %83, %109 : vector<8x128xf32>
    %cst_45 = arith.constant dense<0.000000e+00> : vector<8x8xf32>
    %111 = tpu.matmul %108, %108, %cst_45 {dimension_numbers = #tpu.dot_dimension_numbers<[1], [1], [0], [0], [0, 0, 1, 0], [], []>} : vector<8x128xf32>, vector<8x128xf32>, vector<8x8xf32> -> vector<8x8xf32>
    %cst_46 = arith.constant dense<0.000000e+00> : vector<8x8xf32>
    %112 = tpu.matmul %110, %110, %cst_46 {dimension_numbers = #tpu.dot_dimension_numbers<[1], [1], [0], [0], [0, 0, 1, 0], [], []>} : vector<8x128xf32>, vector<8x128xf32>, vector<8x8xf32> -> vector<8x8xf32>
    %cst_47 = arith.constant dense<0.000000e+00> : vector<8x8xf32>
    %113 = tpu.matmul %108, %110, %cst_47 {dimension_numbers = #tpu.dot_dimension_numbers<[1], [1], [0], [0], [0, 0, 1, 0], [], []>} : vector<8x128xf32>, vector<8x128xf32>, vector<8x8xf32> -> vector<8x8xf32>
    %114 = vector.shape_cast %106 : vector<1x128xf32> to vector<1x1x128xf32>
    %cst_48 = arith.constant dense<0.000000e+00> : vector<1xf32>
    %115 = vector.multi_reduction <add>, %114, %cst_48 [1, 2] : vector<1x1x128xf32> to vector<1xf32>
    %116 = vector.shape_cast %115 : vector<1xf32> to vector<1x1x1xf32>
    %117 = vector.extract %116[0, 0, 0] : f32 from vector<1x1x1xf32>
    %cst_49 = arith.constant 0.000000e+00 : f32
    %118 = arith.cmpf ogt, %117, %cst_49 : f32
    %cst_50 = arith.constant 1.000000e+00 : f32
    %119 = arith.maximumf %117, %cst_50 : f32
    %cst_51 = arith.constant 1.000000e+00 : f32
    %120 = arith.divf %cst_51, %119 : f32
    %cst_52 = arith.constant 0.000000e+00 : f32
    %121 = arith.select %118, %120, %cst_52 : f32
    %cst_53 = arith.constant dense<0.000000e+00> : vector<8x8xf32>
    %122 = tpu.matmul %8, %8, %cst_53 {dimension_numbers = #tpu.dot_dimension_numbers<[1], [1], [0], [0], [0, 0, 1, 0], [], []>} : vector<8x256xf32>, vector<8x256xf32>, vector<8x8xf32> -> vector<8x8xf32>
    %cst_54 = arith.constant dense<0.000000e+00> : vector<8x8xf32>
    %123 = tpu.matmul %13, %13, %cst_54 {dimension_numbers = #tpu.dot_dimension_numbers<[1], [1], [0], [0], [0, 0, 1, 0], [], []>} : vector<8x256xf32>, vector<8x256xf32>, vector<8x8xf32> -> vector<8x8xf32>
    %cst_55 = arith.constant dense<0.000000e+00> : vector<8x8xf32>
    %124 = tpu.matmul %8, %13, %cst_55 {dimension_numbers = #tpu.dot_dimension_numbers<[1], [1], [0], [0], [0, 0, 1, 0], [], []>} : vector<8x256xf32>, vector<8x256xf32>, vector<8x8xf32> -> vector<8x8xf32>
    %125 = arith.mulf %8, %8 : vector<8x256xf32>
    %cst_56 = arith.constant dense<0.000000e+00> : vector<8xf32>
    %126 = vector.multi_reduction <add>, %125, %cst_56 [1] : vector<8x256xf32> to vector<8xf32>
    %127 = vector.shape_cast %126 : vector<8xf32> to vector<8x1xf32>
    %128 = arith.mulf %13, %13 : vector<8x256xf32>
    %cst_57 = arith.constant dense<0.000000e+00> : vector<8xf32>
    %129 = vector.multi_reduction <add>, %128, %cst_57 [1] : vector<8x256xf32> to vector<8xf32>
    %130 = vector.shape_cast %129 : vector<8xf32> to vector<8x1xf32>
    %131 = arith.mulf %8, %8 : vector<8x256xf32>
    %cst_58 = arith.constant 1.000000e+00 : f32
    %132 = vector.broadcast %cst_58 : f32 to vector<1x256xf32>
    %cst_59 = arith.constant dense<0.000000e+00> : vector<1x8xf32>
    %133 = tpu.matmul %132, %131, %cst_59 {dimension_numbers = #tpu.dot_dimension_numbers<[1], [1], [0], [0], [0, 0, 1, 0], [], []>} : vector<1x256xf32>, vector<8x256xf32>, vector<1x8xf32> -> vector<1x8xf32>
    %134 = arith.mulf %13, %13 : vector<8x256xf32>
    %cst_60 = arith.constant 1.000000e+00 : f32
    %135 = vector.broadcast %cst_60 : f32 to vector<1x256xf32>
    %cst_61 = arith.constant dense<0.000000e+00> : vector<1x8xf32>
    %136 = tpu.matmul %135, %134, %cst_61 {dimension_numbers = #tpu.dot_dimension_numbers<[1], [1], [0], [0], [0, 0, 1, 0], [], []>} : vector<1x256xf32>, vector<8x256xf32>, vector<1x8xf32> -> vector<1x8xf32>
    %137 = vector.broadcast %127 : vector<8x1xf32> to vector<8x8xf32>
    %138 = vector.broadcast %133 : vector<1x8xf32> to vector<8x8xf32>
    %139 = arith.addf %137, %138 : vector<8x8xf32>
    %cst_62 = arith.constant 2.000000e+00 : f32
    %140 = vector.broadcast %cst_62 : f32 to vector<8x8xf32>
    %141 = arith.mulf %140, %122 : vector<8x8xf32>
    %142 = arith.subf %139, %141 : vector<8x8xf32>
    %cst_63 = arith.constant 0.000000e+00 : f32
    %143 = vector.broadcast %cst_63 : f32 to vector<8x8xf32>
    %144 = arith.maximumf %142, %143 : vector<8x8xf32>
    %145 = vector.broadcast %130 : vector<8x1xf32> to vector<8x8xf32>
    %146 = vector.broadcast %136 : vector<1x8xf32> to vector<8x8xf32>
    %147 = arith.addf %145, %146 : vector<8x8xf32>
    %cst_64 = arith.constant 2.000000e+00 : f32
    %148 = vector.broadcast %cst_64 : f32 to vector<8x8xf32>
    %149 = arith.mulf %148, %123 : vector<8x8xf32>
    %150 = arith.subf %147, %149 : vector<8x8xf32>
    %cst_65 = arith.constant 0.000000e+00 : f32
    %151 = vector.broadcast %cst_65 : f32 to vector<8x8xf32>
    %152 = arith.maximumf %150, %151 : vector<8x8xf32>
    %153 = vector.broadcast %127 : vector<8x1xf32> to vector<8x8xf32>
    %154 = vector.broadcast %136 : vector<1x8xf32> to vector<8x8xf32>
    %155 = arith.addf %153, %154 : vector<8x8xf32>
    %cst_66 = arith.constant 2.000000e+00 : f32
    %156 = vector.broadcast %cst_66 : f32 to vector<8x8xf32>
    %157 = arith.mulf %156, %124 : vector<8x8xf32>
    %158 = arith.subf %155, %157 : vector<8x8xf32>
    %cst_67 = arith.constant 0.000000e+00 : f32
    %159 = vector.broadcast %cst_67 : f32 to vector<8x8xf32>
    %160 = arith.maximumf %158, %159 : vector<8x8xf32>
    %161 = vector.shape_cast %144 : vector<8x8xf32> to vector<1x8x8xf32>
    %cst_68 = arith.constant dense<0.000000e+00> : vector<1xf32>
    %162 = vector.multi_reduction <add>, %161, %cst_68 [1, 2] : vector<1x8x8xf32> to vector<1xf32>
    %163 = vector.shape_cast %162 : vector<1xf32> to vector<1x1x1xf32>
    %164 = vector.extract %163[0, 0, 0] : f32 from vector<1x1x1xf32>
    %165 = vector.shape_cast %152 : vector<8x8xf32> to vector<1x8x8xf32>
    %cst_69 = arith.constant dense<0.000000e+00> : vector<1xf32>
    %166 = vector.multi_reduction <add>, %165, %cst_69 [1, 2] : vector<1x8x8xf32> to vector<1xf32>
    %167 = vector.shape_cast %166 : vector<1xf32> to vector<1x1x1xf32>
    %168 = vector.extract %167[0, 0, 0] : f32 from vector<1x1x1xf32>
    %169 = arith.addf %164, %168 : f32
    %170 = vector.shape_cast %160 : vector<8x8xf32> to vector<1x8x8xf32>
    %cst_70 = arith.constant dense<0.000000e+00> : vector<1xf32>
    %171 = vector.multi_reduction <add>, %170, %cst_70 [1, 2] : vector<1x8x8xf32> to vector<1xf32>
    %172 = vector.shape_cast %171 : vector<1xf32> to vector<1x1x1xf32>
    %173 = vector.extract %172[0, 0, 0] : f32 from vector<1x1x1xf32>
    %cst_71 = arith.constant 2.000000e+00 : f32
    %174 = arith.mulf %cst_71, %173 : f32
    %175 = arith.addf %169, %174 : f32
    %cst_72 = arith.constant 0.00104166672 : f32
    %176 = arith.mulf %175, %cst_72 : f32
    %177 = vector.broadcast %176 : f32 to vector<1x1xf32>
    %178 = tpu.reciprocal %177 {approx = true} : vector<1x1xf32> -> vector<1x1xf32>
    %179 = arith.mulf %177, %178 : vector<1x1xf32>
    %cst_73 = arith.constant 2.000000e+00 : f32
    %180 = vector.broadcast %cst_73 : f32 to vector<1x1xf32>
    %181 = arith.subf %180, %179 : vector<1x1xf32>
    %182 = arith.mulf %178, %181 : vector<1x1xf32>
    %cst_74 = arith.constant 0.000000e+00 : f32
    %183 = vector.broadcast %cst_74 : f32 to vector<8x8xf32>
    %cst_75 = arith.constant 0.000000e+00 : f32
    %184 = vector.broadcast %cst_75 : f32 to vector<8x8xf32>
    %cst_76 = arith.constant 0.000000e+00 : f32
    %185 = vector.broadcast %cst_76 : f32 to vector<8x8xf32>
    %cst_77 = arith.constant 1.000000e+00 : f32
    %186 = vector.broadcast %cst_77 : f32 to vector<1x1xf32>
    %187 = arith.mulf %182, %186 : vector<1x1xf32>
    %cst_78 = arith.constant 0.000000e+00 : f32
    %188 = vector.broadcast %cst_78 : f32 to vector<8x8xf32>
    %189 = arith.subf %188, %144 : vector<8x8xf32>
    %190 = vector.broadcast %187 : vector<1x1xf32> to vector<8x8xf32>
    %191 = arith.mulf %189, %190 : vector<8x8xf32>
    %192 = math.exp %191 : vector<8x8xf32>
    %193 = arith.addf %183, %192 : vector<8x8xf32>
    %cst_79 = arith.constant 0.000000e+00 : f32
    %194 = vector.broadcast %cst_79 : f32 to vector<8x8xf32>
    %195 = arith.subf %194, %152 : vector<8x8xf32>
    %196 = vector.broadcast %187 : vector<1x1xf32> to vector<8x8xf32>
    %197 = arith.mulf %195, %196 : vector<8x8xf32>
    %198 = math.exp %197 : vector<8x8xf32>
    %199 = arith.addf %184, %198 : vector<8x8xf32>
    %cst_80 = arith.constant 0.000000e+00 : f32
    %200 = vector.broadcast %cst_80 : f32 to vector<8x8xf32>
    %201 = arith.subf %200, %160 : vector<8x8xf32>
    %202 = vector.broadcast %187 : vector<1x1xf32> to vector<8x8xf32>
    %203 = arith.mulf %201, %202 : vector<8x8xf32>
    %204 = math.exp %203 : vector<8x8xf32>
    %205 = arith.addf %185, %204 : vector<8x8xf32>
    %cst_81 = arith.constant 5.000000e-01 : f32
    %206 = vector.broadcast %cst_81 : f32 to vector<1x1xf32>
    %207 = arith.mulf %182, %206 : vector<1x1xf32>
    %cst_82 = arith.constant 0.000000e+00 : f32
    %208 = vector.broadcast %cst_82 : f32 to vector<8x8xf32>
    %209 = arith.subf %208, %144 : vector<8x8xf32>
    %210 = vector.broadcast %207 : vector<1x1xf32> to vector<8x8xf32>
    %211 = arith.mulf %209, %210 : vector<8x8xf32>
    %212 = math.exp %211 : vector<8x8xf32>
    %213 = arith.addf %193, %212 : vector<8x8xf32>
    %cst_83 = arith.constant 0.000000e+00 : f32
    %214 = vector.broadcast %cst_83 : f32 to vector<8x8xf32>
    %215 = arith.subf %214, %152 : vector<8x8xf32>
    %216 = vector.broadcast %207 : vector<1x1xf32> to vector<8x8xf32>
    %217 = arith.mulf %215, %216 : vector<8x8xf32>
    %218 = math.exp %217 : vector<8x8xf32>
    %219 = arith.addf %199, %218 : vector<8x8xf32>
    %cst_84 = arith.constant 0.000000e+00 : f32
    %220 = vector.broadcast %cst_84 : f32 to vector<8x8xf32>
    %221 = arith.subf %220, %160 : vector<8x8xf32>
    %222 = vector.broadcast %207 : vector<1x1xf32> to vector<8x8xf32>
    %223 = arith.mulf %221, %222 : vector<8x8xf32>
    %224 = math.exp %223 : vector<8x8xf32>
    %225 = arith.addf %205, %224 : vector<8x8xf32>
    %cst_85 = arith.constant 2.500000e-01 : f32
    %226 = vector.broadcast %cst_85 : f32 to vector<1x1xf32>
    %227 = arith.mulf %182, %226 : vector<1x1xf32>
    %cst_86 = arith.constant 0.000000e+00 : f32
    %228 = vector.broadcast %cst_86 : f32 to vector<8x8xf32>
    %229 = arith.subf %228, %144 : vector<8x8xf32>
    %230 = vector.broadcast %227 : vector<1x1xf32> to vector<8x8xf32>
    %231 = arith.mulf %229, %230 : vector<8x8xf32>
    %232 = math.exp %231 : vector<8x8xf32>
    %233 = arith.addf %213, %232 : vector<8x8xf32>
    %cst_87 = arith.constant 0.000000e+00 : f32
    %234 = vector.broadcast %cst_87 : f32 to vector<8x8xf32>
    %235 = arith.subf %234, %152 : vector<8x8xf32>
    %236 = vector.broadcast %227 : vector<1x1xf32> to vector<8x8xf32>
    %237 = arith.mulf %235, %236 : vector<8x8xf32>
    %238 = math.exp %237 : vector<8x8xf32>
    %239 = arith.addf %219, %238 : vector<8x8xf32>
    %cst_88 = arith.constant 0.000000e+00 : f32
    %240 = vector.broadcast %cst_88 : f32 to vector<8x8xf32>
    %241 = arith.subf %240, %160 : vector<8x8xf32>
    %242 = vector.broadcast %227 : vector<1x1xf32> to vector<8x8xf32>
    %243 = arith.mulf %241, %242 : vector<8x8xf32>
    %244 = math.exp %243 : vector<8x8xf32>
    %245 = arith.addf %225, %244 : vector<8x8xf32>
    %cst_89 = arith.constant 1.250000e-01 : f32
    %246 = vector.broadcast %cst_89 : f32 to vector<1x1xf32>
    %247 = arith.mulf %182, %246 : vector<1x1xf32>
    %cst_90 = arith.constant 0.000000e+00 : f32
    %248 = vector.broadcast %cst_90 : f32 to vector<8x8xf32>
    %249 = arith.subf %248, %144 : vector<8x8xf32>
    %250 = vector.broadcast %247 : vector<1x1xf32> to vector<8x8xf32>
    %251 = arith.mulf %249, %250 : vector<8x8xf32>
    %252 = math.exp %251 : vector<8x8xf32>
    %253 = arith.addf %233, %252 : vector<8x8xf32>
    %cst_91 = arith.constant 0.000000e+00 : f32
    %254 = vector.broadcast %cst_91 : f32 to vector<8x8xf32>
    %255 = arith.subf %254, %152 : vector<8x8xf32>
    %256 = vector.broadcast %247 : vector<1x1xf32> to vector<8x8xf32>
    %257 = arith.mulf %255, %256 : vector<8x8xf32>
    %258 = math.exp %257 : vector<8x8xf32>
    %259 = arith.addf %239, %258 : vector<8x8xf32>
    %cst_92 = arith.constant 0.000000e+00 : f32
    %260 = vector.broadcast %cst_92 : f32 to vector<8x8xf32>
    %261 = arith.subf %260, %160 : vector<8x8xf32>
    %262 = vector.broadcast %247 : vector<1x1xf32> to vector<8x8xf32>
    %263 = arith.mulf %261, %262 : vector<8x8xf32>
    %264 = math.exp %263 : vector<8x8xf32>
    %265 = arith.addf %245, %264 : vector<8x8xf32>
    %cst_93 = arith.constant 6.250000e-02 : f32
    %266 = vector.broadcast %cst_93 : f32 to vector<1x1xf32>
    %267 = arith.mulf %182, %266 : vector<1x1xf32>
    %cst_94 = arith.constant 0.000000e+00 : f32
    %268 = vector.broadcast %cst_94 : f32 to vector<8x8xf32>
    %269 = arith.subf %268, %144 : vector<8x8xf32>
    %270 = vector.broadcast %267 : vector<1x1xf32> to vector<8x8xf32>
    %271 = arith.mulf %269, %270 : vector<8x8xf32>
    %272 = math.exp %271 : vector<8x8xf32>
    %273 = arith.addf %253, %272 : vector<8x8xf32>
    %cst_95 = arith.constant 0.000000e+00 : f32
    %274 = vector.broadcast %cst_95 : f32 to vector<8x8xf32>
    %275 = arith.subf %274, %152 : vector<8x8xf32>
    %276 = vector.broadcast %267 : vector<1x1xf32> to vector<8x8xf32>
    %277 = arith.mulf %275, %276 : vector<8x8xf32>
    %278 = math.exp %277 : vector<8x8xf32>
    %279 = arith.addf %259, %278 : vector<8x8xf32>
    %cst_96 = arith.constant 0.000000e+00 : f32
    %280 = vector.broadcast %cst_96 : f32 to vector<8x8xf32>
    %281 = arith.subf %280, %160 : vector<8x8xf32>
    %282 = vector.broadcast %267 : vector<1x1xf32> to vector<8x8xf32>
    %283 = arith.mulf %281, %282 : vector<8x8xf32>
    %284 = math.exp %283 : vector<8x8xf32>
    %285 = arith.addf %265, %284 : vector<8x8xf32>
    %286 = arith.addf %273, %279 : vector<8x8xf32>
    %cst_97 = arith.constant 2.000000e+00 : f32
    %287 = vector.broadcast %cst_97 : f32 to vector<8x8xf32>
    %288 = arith.mulf %287, %285 : vector<8x8xf32>
    %289 = arith.subf %286, %288 : vector<8x8xf32>
    %290 = vector.shape_cast %289 : vector<8x8xf32> to vector<1x8x8xf32>
    %cst_98 = arith.constant dense<0.000000e+00> : vector<1xf32>
    %291 = vector.multi_reduction <add>, %290, %cst_98 [1, 2] : vector<1x8x8xf32> to vector<1xf32>
    %292 = vector.shape_cast %291 : vector<1xf32> to vector<1x1x1xf32>
    %293 = vector.extract %292[0, 0, 0] : f32 from vector<1x1x1xf32>
    %cst_99 = arith.constant 6.400000e+01 : f32
    %294 = arith.divf %293, %cst_99 : f32
    %295 = arith.mulf %111, %273 : vector<8x8xf32>
    %296 = arith.mulf %112, %279 : vector<8x8xf32>
    %297 = arith.addf %295, %296 : vector<8x8xf32>
    %cst_100 = arith.constant 2.000000e+00 : f32
    %298 = vector.broadcast %cst_100 : f32 to vector<8x8xf32>
    %299 = arith.mulf %298, %113 : vector<8x8xf32>
    %300 = arith.mulf %299, %285 : vector<8x8xf32>
    %301 = arith.subf %297, %300 : vector<8x8xf32>
    %302 = vector.shape_cast %301 : vector<8x8xf32> to vector<1x8x8xf32>
    %cst_101 = arith.constant dense<0.000000e+00> : vector<1xf32>
    %303 = vector.multi_reduction <add>, %302, %cst_101 [1, 2] : vector<1x8x8xf32> to vector<1xf32>
    %304 = vector.shape_cast %303 : vector<1xf32> to vector<1x1x1xf32>
    %305 = vector.extract %304[0, 0, 0] : f32 from vector<1x1x1xf32>
    %306 = arith.mulf %121, %305 : f32
    %307 = vector.shape_cast %273 : vector<8x8xf32> to vector<1x8x8xf32>
    %cst_102 = arith.constant dense<0.000000e+00> : vector<1xf32>
    %308 = vector.multi_reduction <add>, %307, %cst_102 [1, 2] : vector<1x8x8xf32> to vector<1xf32>
    %309 = vector.shape_cast %308 : vector<1xf32> to vector<1x1x1xf32>
    %310 = vector.extract %309[0, 0, 0] : f32 from vector<1x1x1xf32>
    %311 = vector.shape_cast %279 : vector<8x8xf32> to vector<1x8x8xf32>
    %cst_103 = arith.constant dense<0.000000e+00> : vector<1xf32>
    %312 = vector.multi_reduction <add>, %311, %cst_103 [1, 2] : vector<1x8x8xf32> to vector<1xf32>
    %313 = vector.shape_cast %312 : vector<1xf32> to vector<1x1x1xf32>
    %314 = vector.extract %313[0, 0, 0] : f32 from vector<1x1x1xf32>
    %315 = arith.addf %310, %314 : f32
    %316 = vector.shape_cast %285 : vector<8x8xf32> to vector<1x8x8xf32>
    %cst_104 = arith.constant dense<0.000000e+00> : vector<1xf32>
    %317 = vector.multi_reduction <add>, %316, %cst_104 [1, 2] : vector<1x8x8xf32> to vector<1xf32>
    %318 = vector.shape_cast %317 : vector<1xf32> to vector<1x1x1xf32>
    %319 = vector.extract %318[0, 0, 0] : f32 from vector<1x1x1xf32>
    %320 = arith.addf %315, %319 : f32
    %321 = arith.cmpf one, %320, %320 : f32
    %cst_105 = arith.constant 0.000000e+00 : f32
    %322 = arith.select %321, %cst_105, %306 : f32
    %323 = tpu.iota {dimensions = array<i32: 1>} : vector<1x128xi32>
    %c0_i32 = arith.constant 0 : i32
    %324 = vector.broadcast %c0_i32 : i32 to vector<1x128xi32>
    %325 = arith.cmpi eq, %323, %324 : vector<1x128xi32>
    %326 = vector.broadcast %322 : f32 to vector<1x1xf32>
    %c1_i32 = arith.constant 1 : i32
    %327 = vector.broadcast %c1_i32 : i32 to vector<1x128xi32>
    %328 = arith.cmpi eq, %323, %327 : vector<1x128xi32>
    %329 = vector.broadcast %294 : f32 to vector<1x1xf32>
    %cst_106 = arith.constant 0.000000e+00 : f32
    %330 = vector.shape_cast %329 : vector<1x1xf32> to vector<1x1xf32>
    %331 = vector.broadcast %330 : vector<1x1xf32> to vector<1x128xf32>
    %332 = vector.broadcast %cst_106 : f32 to vector<1x128xf32>
    %333 = arith.select %328, %331, %332 : vector<1x128xi1>, vector<1x128xf32>
    %334 = vector.shape_cast %326 : vector<1x1xf32> to vector<1x1xf32>
    %335 = vector.broadcast %334 : vector<1x1xf32> to vector<1x128xf32>
    %336 = arith.select %325, %335, %333 : vector<1x128xi1>, vector<1x128xf32>
    %c0_107 = arith.constant 0 : index
    %c0_108 = arith.constant 0 : index
    %337 = vector.load %arg8[%c0_107, %c0_108] : memref<1x128xf32, #tpu.memory_space<vmem>>, vector<1x128xf32>
    tpu.vector_store %arg8[%c0_107, %c0_108], %336 {strides = array<i32>} : memref<1x128xf32, #tpu.memory_space<vmem>>, vector<1x128xf32>,
    return
  }
}

</mosaic_0001>

<bundles_post_ra>
// kernel: deep_meda_forward.1
= control target key start
LH: loop header
LB: loop body
LE: loop exit
PB: predicated region body
PF: predicated region fallthrough
CT: control target
= control target key end

     0   :  { %14 = vsyncpa [#allocation3], 0  ;;  %s6277_s0 = inlined_call_operand.hbm [shape: f32[8,2048], index: 0, kind: input, shape index: {}]   ;;  %s6278_s1 = inlined_call_operand.hbm [shape: f32[8,2048], index: 1, kind: input, shape index: {}]   ;;  %s6279_s2 = inlined_call_operand.hbm [shape: bf16[2048,256], index: 2, kind: input, shape index: {}]   ;;  %s6280_s3 = inlined_call_operand.vmem [shape: f32[1,256], index: 3, kind: input, shape index: {}]   ;;  %s6281_s4 = inlined_call_operand.hbm [shape: bf16[256,128], index: 4, kind: input, shape index: {}]   ;;  %s6282_s5 = inlined_call_operand.vmem [shape: f32[1,128], index: 5, kind: input, shape index: {}]   ;;  %s6283_s6 = inlined_call_operand.vmem [shape: s32[8,1], index: 6, kind: input, shape index: {}]   ;;  %s6284_s7 = inlined_call_operand.hbm [shape: f32[8,128], index: 7, kind: output, shape index: {0}]   ;;  %s6285_s8 = inlined_call_operand.vmem [shape: f32[1,128], index: 8, kind: output, shape index: {1}]  }
   0x1   :  { %15 = vsyncpa [#allocation6], 0 }
   0x2   :  { %16 = vsyncpa [#allocation9], 0  ;;  %s34_s29 = sshll.u32 %s6278_s1, 4  ;;  %s35_s29 = int_to_ptr.hbm [resolvable:$true] %s34_s29 }
   0x3   :  { %17 = vsyncpa [#allocation4], 0  ;;  %s4905_s30 = smov [#allocation5]   ;;  %s23_s12 = sshll.u32 %s6277_s0, 4  ;;  %s24_s12 = int_to_ptr.hbm [resolvable:$true] %s23_s12 }
   0x4   :  { %s36_s9 = sshll.u32 %s4905_s30, 4  ;;  %s4906_s13 = smov [#allocation2]   ;;  %s37_s9 = int_to_ptr.vmem [resolvable:$true] %s36_s9 }
   0x5   :  { %39 = dma.hbm_to_vmem [thread:$0]  %s35_s29, 2048, %s37_s9, [#allocation6]  }
   0x6   :  { %s25_s14 = sshll.u32 %s4906_s13, 4  ;;  %s44_s17 = sshll.u32 %s6279_s2, 4  ;;  %s26_s14 = int_to_ptr.vmem [resolvable:$true] %s25_s14  ;;  %s45_s17 = int_to_ptr.hbm [resolvable:$true] %s44_s17 }
   0x7   :  { %28 = dma.hbm_to_vmem [thread:$0]  %s24_s12, 2048, %s26_s14, [#allocation3]  }
   0x8   :  { %s4907_s1 = smov [#allocation7]   ;;  %s59_s21 = sshll.u32 %s6281_s4, 4  ;;  %s60_s21 = int_to_ptr.hbm [resolvable:$true] %s59_s21 }
   0x9   :  { %s46_s18 = sshll.u32 %s4907_s1, 4  ;;  %s4908_s22 = smov 128   ;;  %s47_s18 = int_to_ptr.vmem [resolvable:$true] %s46_s18 }
   0xa   :  { %s4909_s0 = smov 8   ;;  %s4910_s23 = smov [#allocation8]  }
   0xb   :  { %52 = dma.hbm_to_vmem [thread:$0]  %s45_s17, 32768, %s47_s18, [#allocation6], %s4908_s22, %s4908_s22, %s4909_s0  }
   0xc   :  { %s61_s24 = sshll.u32 %s4910_s23, 4  ;;  %s4911_s25 = smov 64   ;;  %s62_s24 = int_to_ptr.vmem [resolvable:$true] %s61_s24 }
   0xd   :  { %s4912_s26 = smov 4  }
   0xe   :  { %67 = dma.hbm_to_vmem [thread:$0]  %s60_s21, 2048, %s62_s24, [#allocation9], %s4911_s25, %s4911_s25, %s4912_s26  }
   0xf   :  { %4897 = dma.done.wait [#allocation3], 2048  }
  0x10   :  { %4898 = vsyncadd [#allocation3], 4294965248 }
  0x11   :  { %4899 = dma.done.wait [#allocation6], 34816  }
  0x12   :  { %4900 = vsyncadd [#allocation6], 4294932480 }
  0x13   :  { %4901 = dma.done.wait [#allocation9], 2048  }
  0x14   :  { %4902 = vsyncadd [#allocation9], 4294965248  ;;  %v3389_v0 = vld [vmem:[#allocation7 + $0x70] sm:$0xf]  ;;  %v4437_v1 = vld [vmem:[#allocation7 + $0x74] sm:$0xf0] }
  0x15   :  { %v3453_v2 = vld [vmem:[#allocation7 + $0xf0] sm:$0xf]  ;;  %v4976_v3 = vor.u32 %v4437_v1, %v3389_v0  ;;  %v4453_v4 = vld [vmem:[#allocation7 + $0xf4] sm:$0xf0]  ;;  %v3381_v11 = vld [vmem:[#allocation7 + $0x60] sm:$0xf] }
  0x16   :  { %v3517_v5 = vld [vmem:[#allocation7 + $0x170] sm:$0xf]  ;;  %v4469_v6 = vld [vmem:[#allocation7 + $0x174] sm:$0xf0]  ;;  %v4978_v7 = vor.u32 %v4453_v4, %v3453_v2  ;;  %v4435_v13 = vld [vmem:[#allocation7 + $0x64] sm:$0xf0] }
  0x17   :  { %v4980_v8 = vor.u32 %v4469_v6, %v3517_v5  ;;  %v3581_v9 = vld [vmem:[#allocation7 + $0x1f0] sm:$0xf]  ;;  %v4485_v10 = vld [vmem:[#allocation7 + $0x1f4] sm:$0xf0]  ;;  %1694 = vmatpush.bf16.msra.mxu0 %v4976_v3  ;;  %v3445_v14 = vld [vmem:[#allocation7 + $0xe0] sm:$0xf]  ;;  %v4987_v16 = vor.u32 %v4435_v13, %v3381_v11 }
  0x18   :  { %v4983_v12 = vor.u32 %v4485_v10, %v3581_v9  ;;  %v4451_v15 = vld [vmem:[#allocation7 + $0xe4] sm:$0xf0]  ;;  %1707 = vmatpush.bf16.msra.mxu1 %v4978_v7  ;;  %v3509_v18 = vld [vmem:[#allocation7 + $0x160] sm:$0xf]  ;;  %v3373_v23 = vld [vmem:[#allocation7 + $0x50] sm:$0xf] }
  0x19   :  { %1720 = vmatpush.bf16.msra.mxu2 %v4980_v8  ;;  %v4989_v17 = vor.u32 %v4451_v15, %v3445_v14  ;;  %v4467_v19 = vld [vmem:[#allocation7 + $0x164] sm:$0xf0]  ;;  %v3573_v20 = vld [vmem:[#allocation7 + $0x1e0] sm:$0xf]  ;;  %v4433_v24 = vld [vmem:[#allocation7 + $0x54] sm:$0xf0] }
  0x1a   :  { %1733 = vmatpush.bf16.msra.mxu3 %v4983_v12  ;;  %v4992_v21 = vor.u32 %v4467_v19, %v3509_v18  ;;  %v4483_v22 = vld [vmem:[#allocation7 + $0x1e4] sm:$0xf0]  ;;  %v3437_v26 = vld [vmem:[#allocation7 + $0xd0] sm:$0xf]  ;;  %v4449_v27 = vld [vmem:[#allocation7 + $0xd4] sm:$0xf0]  ;;  %v4997_v29 = vor.u32 %v4433_v24, %v3373_v23 }
  0x1b   :  { %v4994_v25 = vor.u32 %v4483_v22, %v3573_v20  ;;  %v3501_v28 = vld [vmem:[#allocation7 + $0x150] sm:$0xf]  ;;  %1695 = vmatpush.bf16.msra.mxu0 %v4987_v16  ;;  %v4465_v30 = vld [vmem:[#allocation7 + $0x154] sm:$0xf0]  ;;  %v5001_v33 = vor.u32 %v4449_v27, %v3437_v26  ;;  %v3365_v35 = vld [vmem:[#allocation7 + $0x40] sm:$0xf] }
  0x1c   :  { %v3565_v31 = vld [vmem:[#allocation7 + $0x1d0] sm:$0xf]  ;;  %v4481_v32 = vld [vmem:[#allocation7 + $0x1d4] sm:$0xf0]  ;;  %1708 = vmatpush.bf16.msra.mxu1 %v4989_v17  ;;  %v5003_v34 = vor.u32 %v4465_v30, %v3501_v28  ;;  %v4431_v36 = vld [vmem:[#allocation7 + $0x44] sm:$0xf0] }
  0x1d   :  { %1721 = vmatpush.bf16.msra.mxu2 %v4992_v21  ;;  %v3429_v37 = vld [vmem:[#allocation7 + $0xc0] sm:$0xf]  ;;  %v5006_v38 = vor.u32 %v4481_v32, %v3565_v31  ;;  %v4447_v39 = vld [vmem:[#allocation7 + $0xc4] sm:$0xf0]  ;;  %v5009_v44 = vor.u32 %v4431_v36, %v3365_v35  ;;  %v3357_v47 = vld [vmem:[#allocation7 + $0x30] sm:$0xf] }
  0x1e   :  { %1734 = vmatpush.bf16.msra.mxu3 %v4994_v25  ;;  %v3493_v40 = vld [vmem:[#allocation7 + $0x140] sm:$0xf]  ;;  %v4463_v41 = vld [vmem:[#allocation7 + $0x144] sm:$0xf0]  ;;  %v5013_v45 = vor.u32 %v4447_v39, %v3429_v37  ;;  %v4429_v48 = vld [vmem:[#allocation7 + $0x34] sm:$0xf0] }
  0x1f   :  { %v3557_v42 = vld [vmem:[#allocation7 + $0x1c0] sm:$0xf]  ;;  %v4479_v43 = vld [vmem:[#allocation7 + $0x1c4] sm:$0xf0]  ;;  %1696 = vmatpush.bf16.msra.mxu0 %v4997_v29  ;;  %v5015_v46 = vor.u32 %v4463_v41, %v3493_v40  ;;  %v3421_v49 = vld [vmem:[#allocation7 + $0xb0] sm:$0xf]  ;;  %v5021_v56 = vor.u32 %v4429_v48, %v3357_v47 }
  0x20   :  { %1709 = vmatpush.bf16.msra.mxu1 %v5001_v33  ;;  %v5018_v50 = vor.u32 %v4479_v43, %v3557_v42  ;;  %v4445_v51 = vld [vmem:[#allocation7 + $0xb4] sm:$0xf0]  ;;  %v3485_v52 = vld [vmem:[#allocation7 + $0x130] sm:$0xf]  ;;  %v3349_v59 = vld [vmem:[#allocation7 + $0x20] sm:$0xf] }
  0x21   :  { %1722 = vmatpush.bf16.msra.mxu2 %v5003_v34  ;;  %v4461_v53 = vld [vmem:[#allocation7 + $0x134] sm:$0xf0]  ;;  %v3549_v54 = vld [vmem:[#allocation7 + $0x1b0] sm:$0xf]  ;;  %v5025_v57 = vor.u32 %v4445_v51, %v3421_v49  ;;  %v4427_v60 = vld [vmem:[#allocation7 + $0x24] sm:$0xf0] }
  0x22   :  { %1735 = vmatpush.bf16.msra.mxu3 %v5006_v38  ;;  %v4477_v55 = vld [vmem:[#allocation7 + $0x1b4] sm:$0xf0]  ;;  %v5027_v58 = vor.u32 %v4461_v53, %v3485_v52  ;;  %v3413_v61 = vld [vmem:[#allocation7 + $0xa0] sm:$0xf]  ;;  %v4443_v63 = vld [vmem:[#allocation7 + $0xa4] sm:$0xf0]  ;;  %v5033_v5 = vor.u32 %v4427_v60, %v3349_v59 }
  0x23   :  { %1697 = vmatpush.bf16.msra.mxu0 %v5009_v44  ;;  %v5030_v62 = vor.u32 %v4477_v55, %v3549_v54  ;;  %v3477_v0 = vld [vmem:[#allocation7 + $0x120] sm:$0xf]  ;;  %v4459_v1 = vld [vmem:[#allocation7 + $0x124] sm:$0xf0]  ;;  %v5037_v6 = vor.u32 %v4443_v63, %v3413_v61  ;;  %v3341_v10 = vld [vmem:[#allocation7 + $0x10] sm:$0xf] }
  0x24   :  { %1710 = vmatpush.bf16.msra.mxu1 %v5013_v45  ;;  %v3541_v2 = vld [vmem:[#allocation7 + $0x1a0] sm:$0xf]  ;;  %v4475_v4 = vld [vmem:[#allocation7 + $0x1a4] sm:$0xf0]  ;;  %v5039_v9 = vor.u32 %v4459_v1, %v3477_v0  ;;  %v4425_v11 = vld [vmem:[#allocation7 + $0x14] sm:$0xf0] }
  0x25   :  { %1723 = vmatpush.bf16.msra.mxu2 %v5015_v46  ;;  %v3405_v13 = vld [vmem:[#allocation7 + $0x90] sm:$0xf]  ;;  %v5042_v14 = vor.u32 %v4475_v4, %v3541_v2  ;;  %v4441_v15 = vld [vmem:[#allocation7 + $0x94] sm:$0xf0]  ;;  %v5045_v23 = vor.u32 %v4425_v11, %v3341_v10  ;;  %v3333_v24 = vld [vmem:[#allocation7] sm:$0xf] }
  0x26   :  { %1736 = vmatpush.bf16.msra.mxu3 %v5018_v50  ;;  %6497 = vst [vmem:[#allocation15_spill] sm:$0xff] %v5039_v9  ;;  %v3469_v18 = vld [vmem:[#allocation7 + $0x110] sm:$0xf]  ;;  %v4457_v19 = vld [vmem:[#allocation7 + $0x114] sm:$0xf0]  ;;  %v5049_v27 = vor.u32 %v4441_v15, %v3405_v13  ;;  %vm2867_vm9 = vcmask 1040384  }
  0x27   :  { %1698 = vmatpush.bf16.msra.mxu0 %v5021_v56  ;;  %6498 = vst [vmem:[#allocation16_spill] sm:$0xff] %v5042_v14  ;;  %v3533_v20 = vld [vmem:[#allocation7 + $0x190] sm:$0xf]  ;;  %v4473_v22 = vld [vmem:[#allocation7 + $0x194] sm:$0xf0]  ;;  %v5051_v28 = vor.u32 %v4457_v19, %v3469_v18  ;;  %vm3121_vm11 = vcmask 64512  }
  0x28   :  { %1711 = vmatpush.bf16.msra.mxu1 %v5025_v57  ;;  %6499 = vst [vmem:[#allocation17_spill] sm:$0xff] %v5045_v23  ;;  %v4423_v26 = vld [vmem:[#allocation7 + $0x4] sm:$0xf0]  ;;  %v3397_v30 = vld [vmem:[#allocation7 + $0x80] sm:$0xf]  ;;  %v5054_v35 = vor.u32 %v4473_v22, %v3533_v20  ;;  %s4916_s29 = smov 1.0  }
  0x29   :  { %1724 = vmatpush.bf16.msra.mxu2 %v5027_v58  ;;  %6500 = vst [vmem:[#allocation18_spill] sm:$0xff] %v5049_v27  ;;  %v4439_v31 = vld [vmem:[#allocation7 + $0x84] sm:$0xf0]  ;;  %v3461_v32 = vld [vmem:[#allocation7 + $0x100] sm:$0xf]  ;;  %v5057_v43 = vor.u32 %v4423_v26, %v3333_v24  ;;  %s3315_s18 = sshll.u32 %s6284_s7, 4  ;;  %s3316_s18 = int_to_ptr.hbm [resolvable:$true] %s3315_s18 }
  0x2a   :  { %1737 = vmatpush.bf16.msra.mxu3 %v5030_v62  ;;  %6501 = vst [vmem:[#allocation19_spill] sm:$0xff] %v5051_v28  ;;  %v4455_v36 = vld [vmem:[#allocation7 + $0x104] sm:$0xf0]  ;;  %v3525_v37 = vld [vmem:[#allocation7 + $0x180] sm:$0xf]  ;;  %v5061_v51 = vor.u32 %v4439_v31, %v3397_v30  ;;  %s4917_s19 = smov [#allocation10]  }
  0x2b   :  { %1699 = vmatpush.bf16.msra.mxu0 %v5033_v5  ;;  %6502 = vst [vmem:[#allocation20_spill] sm:$0xff] %v5054_v35  ;;  %v4471_v39 = vld [vmem:[#allocation7 + $0x184] sm:$0xf0]  ;;  %v3645_v40 = vld [vmem:[#allocation7 + $0x270] sm:$0xf]  ;;  %v5063_v52 = vor.u32 %v4455_v36, %v3461_v32  ;;  %s3313_s20 = sshll.u32 %s4917_s19, 4  ;;  %s3314_s20 = int_to_ptr.vmem [resolvable:$true] %s3313_s20 }
  0x2c   :  { %1712 = vmatpush.bf16.msra.mxu1 %v5037_v6  ;;  %v4501_v41 = vld [vmem:[#allocation7 + $0x274] sm:$0xf0]  ;;  %v3709_v42 = vld [vmem:[#allocation7 + $0x2f0] sm:$0xf]  ;;  %6503 = vst [vmem:[#allocation21_spill] sm:$0xff] %v5057_v43  ;;  %v5066_v55 = vor.u32 %v4471_v39, %v3525_v37 }
  0x2d   :  { %1725 = vmatpush.bf16.msra.mxu2 %v5039_v9  ;;  %v4517_v47 = vld [vmem:[#allocation7 + $0x2f4] sm:$0xf0]  ;;  %v3773_v48 = vld [vmem:[#allocation7 + $0x370] sm:$0xf]  ;;  %6504 = vst [vmem:[#allocation22_spill] sm:$0xff] %v5061_v51  ;;  %v5068_v59 = vor.u32 %v4501_v41, %v3645_v40 }
  0x2e   :  { %1738 = vmatpush.bf16.msra.mxu3 %v5042_v14  ;;  %v4533_v49 = vld [vmem:[#allocation7 + $0x374] sm:$0xf0]  ;;  %6505 = vst [vmem:[#allocation23_spill] sm:$0xff] %v5063_v52  ;;  %v3837_v53 = vld [vmem:[#allocation7 + $0x3f0] sm:$0xf]  ;;  %v5070_v60 = vor.u32 %v4517_v47, %v3709_v42 }
  0x2f   :  { %1700 = vmatpush.bf16.msra.mxu0 %v5045_v23  ;;  %v4549_v54 = vld [vmem:[#allocation7 + $0x3f4] sm:$0xf0]  ;;  %6506 = vst [vmem:[#allocation24_spill] sm:$0xff] %v5066_v55  ;;  %v5072_v61 = vor.u32 %v4533_v49, %v3773_v48  ;;  %v3637_v63 = vld [vmem:[#allocation7 + $0x260] sm:$0xf]  ;;  %v90_v47 = vld [vmem:[#allocation2 + $0x10] sm:$0xff] }
  0x30   :  { %1713 = vmatpush.bf16.msra.mxu1 %v5049_v27  ;;  %6507 = vst [vmem:[#allocation25_spill] sm:$0xff] %v5068_v59  ;;  %v4499_v0 = vld [vmem:[#allocation7 + $0x264] sm:$0xf0]  ;;  %v3701_v1 = vld [vmem:[#allocation7 + $0x2e0] sm:$0xf]  ;;  %v5075_v2 = vor.u32 %v4549_v54, %v3837_v53 }
  0x31   :  { %1726 = vmatpush.bf16.msra.mxu2 %v5051_v28  ;;  %6508 = vst [vmem:[#allocation26_spill] sm:$0xff] %v5070_v60  ;;  %v4515_v4 = vld [vmem:[#allocation7 + $0x2e4] sm:$0xf0]  ;;  %v3765_v10 = vld [vmem:[#allocation7 + $0x360] sm:$0xf]  ;;  %v5081_v18 = vor.u32 %v4499_v0, %v3637_v63  ;;  %v5101_v63 = vpack.c.bf16 %v90_v47, %v90_v47  ;;  %v103_v28 = vld [vmem:[#allocation2 + $0x78] sm:$0xff] }
  0x32   :  { %1739 = vmatpush.bf16.msra.mxu3 %v5054_v35  ;;  %6509 = vst [vmem:[#allocation27_spill] sm:$0xff] %v5072_v61  ;;  %v4531_v11 = vld [vmem:[#allocation7 + $0x364] sm:$0xf0]  ;;  %v3829_v13 = vld [vmem:[#allocation7 + $0x3e0] sm:$0xf]  ;;  %v5085_v20 = vor.u32 %v4515_v4, %v3701_v1  ;;  %v91_v1 = vld [vmem:[#allocation2 + $0x18] sm:$0xff] }
  0x33   :  { %1701 = vmatpush.bf16.msra.mxu0 %v5057_v43  ;;  %6510 = vst [vmem:[#allocation28_spill] sm:$0xff] %v5075_v2  ;;  %v4547_v15 = vld [vmem:[#allocation7 + $0x3e4] sm:$0xf0]  ;;  %v3629_v19 = vld [vmem:[#allocation7 + $0x250] sm:$0xf]  ;;  %v5087_v22 = vor.u32 %v4531_v11, %v3765_v10  ;;  %v88_v48 = vld [vmem:[#allocation2] sm:$0xff] }
  0x34   :  { %1714 = vmatpush.bf16.msra.mxu1 %v5061_v51  ;;  %6511 = vst [vmem:[#allocation29_spill] sm:$0xff] %v5081_v18  ;;  %v4497_v24 = vld [vmem:[#allocation7 + $0x254] sm:$0xf0]  ;;  %v3693_v26 = vld [vmem:[#allocation7 + $0x2d0] sm:$0xf]  ;;  %v5090_v31 = vor.u32 %v4547_v15, %v3829_v13  ;;  %v5103_v0 = vpack.c.bf16 %v88_v48, %v88_v48  ;;  %v5108_v15 = vpack.c.bf16 %v91_v1, %v91_v1 }
  0x35   :  { %1727 = vmatpush.bf16.msra.mxu2 %v5063_v52  ;;  %6512 = vst [vmem:[#allocation30_spill] sm:$0xff] %v5085_v20  ;;  %v4513_v30 = vld [vmem:[#allocation7 + $0x2d4] sm:$0xf0]  ;;  %v3757_v32 = vld [vmem:[#allocation7 + $0x350] sm:$0xf]  ;;  %v5093_v40 = vor.u32 %v4497_v24, %v3629_v19 }
  0x36   :  { %1740 = vmatpush.bf16.msra.mxu3 %v5066_v55  ;;  %6513 = vst [vmem:[#allocation31_spill] sm:$0xff] %v5087_v22  ;;  %v4529_v36 = vld [vmem:[#allocation7 + $0x354] sm:$0xf0]  ;;  %v3821_v37 = vld [vmem:[#allocation7 + $0x3d0] sm:$0xf]  ;;  %v5095_v41 = vor.u32 %v4513_v30, %v3693_v26  ;;  %1702 = vmatmul.bf16.vlgmr.msra.gmra.mxu0 %v5103_v0  ;;  %v89_v30 = vld [vmem:[#allocation2 + $0x8] sm:$0xff] }
  0x37   :  { %1746 = vmatpush.bf16.msrb.mxu0 %v5068_v59  ;;  %6514 = vst [vmem:[#allocation32_spill] sm:$0xff] %v5090_v31  ;;  %v4545_v39 = vld [vmem:[#allocation7 + $0x3d4] sm:$0xf0]  ;;  %v3621_v42 = vld [vmem:[#allocation7 + $0x240] sm:$0xf]  ;;  %v5099_v49 = vor.u32 %v4529_v36, %v3757_v32  ;;  %v5122_v48 = vpack.c.bf16 %v89_v30, %v89_v30 }
  0x38   :  { %1759 = vmatpush.bf16.msrb.mxu1 %v5070_v60  ;;  %6515 = vst [vmem:[#allocation33_spill] sm:$0xff] %v5093_v40  ;;  %v4495_v53 = vld [vmem:[#allocation7 + $0x244] sm:$0xf0]  ;;  %v3685_v54 = vld [vmem:[#allocation7 + $0x2c0] sm:$0xf]  ;;  %v5106_v4 = vor.u32 %v4545_v39, %v3821_v37  ;;  %1728 = vmatmul.bf16.vlgmr.msra.gmra.mxu2 %v5101_v63  ;;  %v99_v52 = vld [vmem:[#allocation2 + $0x58] sm:$0xff] }
  0x39   :  { %1772 = vmatpush.bf16.msrb.mxu2 %v5072_v61  ;;  %6516 = vst [vmem:[#allocation34_spill] sm:$0xff] %v5095_v41  ;;  %v4511_v10 = vld [vmem:[#allocation7 + $0x2c4] sm:$0xf0]  ;;  %v3749_v11 = vld [vmem:[#allocation7 + $0x340] sm:$0xf]  ;;  %v5113_v26 = vor.u32 %v4495_v53, %v3621_v42  ;;  %1741 = vmatmul.bf16.vlgmr.msra.gmra.mxu3 %v5108_v15  ;;  %v95_v61 = vld [vmem:[#allocation2 + $0x38] sm:$0xff] }
  0x3a   :  { %1785 = vmatpush.bf16.msrb.mxu3 %v5075_v2  ;;  %6517 = vst [vmem:[#allocation35_spill] sm:$0xff] %v5099_v49  ;;  %v4527_v13 = vld [vmem:[#allocation7 + $0x344] sm:$0xf0]  ;;  %v3813_v19 = vld [vmem:[#allocation7 + $0x3c0] sm:$0xf]  ;;  %v5118_v32 = vor.u32 %v4511_v10, %v3685_v54  ;;  %1715 = vmatmul.bf16.vlgmr.msra.gmra.mxu1 %v5122_v48 }
  0x3b   :  { %1747 = vmatpush.bf16.msrb.mxu0 %v5081_v18  ;;  %6518 = vst [vmem:[#allocation36_spill] sm:$0xff] %v5106_v4  ;;  %v4543_v24 = vld [vmem:[#allocation7 + $0x3c4] sm:$0xf0]  ;;  %v5120_v36 = vor.u32 %v4527_v13, %v3749_v11  ;;  %v3613_v37 = vld [vmem:[#allocation7 + $0x230] sm:$0xf] }
  0x3c   :  { %1760 = vmatpush.bf16.msrb.mxu1 %v5085_v20  ;;  %6519 = vst [vmem:[#allocation37_spill] sm:$0xff] %v5113_v26  ;;  %v4493_v39 = vld [vmem:[#allocation7 + $0x234] sm:$0xf0]  ;;  %v3677_v47 = vld [vmem:[#allocation7 + $0x2b0] sm:$0xf]  ;;  %v5125_v42 = vor.u32 %v4543_v24, %v3813_v19 }
  0x3d   :  { %1773 = vmatpush.bf16.msrb.mxu2 %v5087_v22  ;;  %6520 = vst [vmem:[#allocation38_spill] sm:$0xff] %v5118_v32  ;;  %v4509_v53 = vld [vmem:[#allocation7 + $0x2b4] sm:$0xf0]  ;;  %v3741_v1 = vld [vmem:[#allocation7 + $0x330] sm:$0xf]  ;;  %v5129_v54 = vor.u32 %v4493_v39, %v3613_v37 }
  0x3e   :  { %1786 = vmatpush.bf16.msrb.mxu3 %v5090_v31  ;;  %6521 = vst [vmem:[#allocation39_spill] sm:$0xff] %v5120_v36  ;;  %v3805_v31 = vld [vmem:[#allocation7 + $0x3b0] sm:$0xf]  ;;  %v5133_v10 = vor.u32 %v4509_v53, %v3677_v47  ;;  %v3605_v13 = vld [vmem:[#allocation7 + $0x220] sm:$0xf] }
  0x3f   :  { %1748 = vmatpush.bf16.msrb.mxu0 %v5093_v40  ;;  %6522 = vst [vmem:[#allocation40_spill] sm:$0xff] %v5125_v42  ;;  %v4525_v40 = vld [vmem:[#allocation7 + $0x334] sm:$0xf0]  ;;  %v4491_v19 = vld [vmem:[#allocation7 + $0x224] sm:$0xf0] }
  0x40   :  { %1761 = vmatpush.bf16.msrb.mxu1 %v5095_v41  ;;  %v4541_v41 = vld [vmem:[#allocation7 + $0x3b4] sm:$0xf0]  ;;  %6523 = vst [vmem:[#allocation41_spill] sm:$0xff] %v5129_v54  ;;  %v5135_v11 = vor.u32 %v4525_v40, %v3741_v1  ;;  %v3669_v24 = vld [vmem:[#allocation7 + $0x2a0] sm:$0xf] }
  0x41   :  { %1774 = vmatpush.bf16.msrb.mxu2 %v5099_v49  ;;  %6524 = vst [vmem:[#allocation42_spill] sm:$0xff] %v5133_v10  ;;  %v5138_v30 = vor.u32 %v4541_v41, %v3805_v31  ;;  %v3733_v49 = vld [vmem:[#allocation7 + $0x320] sm:$0xf]  ;;  %v4539_v39 = vld [vmem:[#allocation7 + $0x3a4] sm:$0xf0] }
  0x42   :  { %1787 = vmatpush.bf16.msrb.mxu3 %v5106_v4  ;;  %6525 = vst [vmem:[#allocation43_spill] sm:$0xff] %v5135_v11  ;;  %v4507_v4 = vld [vmem:[#allocation7 + $0x2a4] sm:$0xf0]  ;;  %v3797_v37 = vld [vmem:[#allocation7 + $0x3a0] sm:$0xf] }
  0x43   :  { %1749 = vmatpush.bf16.msrb.mxu0 %v5113_v26  ;;  %6526 = vst [vmem:[#allocation44_spill] sm:$0xff] %v5138_v30  ;;  %v4523_v26 = vld [vmem:[#allocation7 + $0x324] sm:$0xf0]  ;;  %v5145_v40 = vor.u32 %v4507_v4, %v3669_v24  ;;  %v3597_v53 = vld [vmem:[#allocation7 + $0x210] sm:$0xf]  ;;  %v5150_v1 = vor.u32 %v4539_v39, %v3797_v37 }
  0x44   :  { %1762 = vmatpush.bf16.msrb.mxu1 %v5118_v32  ;;  %v5141_v32 = vor.u32 %v4491_v19, %v3605_v13  ;;  %v5147_v47 = vor.u32 %v4523_v26, %v3733_v49  ;;  %v4489_v31 = vld [vmem:[#allocation7 + $0x214] sm:$0xf0]  ;;  %v3661_v41 = vld [vmem:[#allocation7 + $0x290] sm:$0xf]  ;;  %v3589_v4 = vld [vmem:[#allocation7 + $0x200] sm:$0xf] }
  0x45   :  { %1775 = vmatpush.bf16.msrb.mxu2 %v5120_v36  ;;  %6528 = vst [vmem:[#allocation46_spill] sm:$0xff] %v5145_v40  ;;  %v3725_v36 = vld [vmem:[#allocation7 + $0x310] sm:$0xf]  ;;  %v4537_v19 = vld [vmem:[#allocation7 + $0x394] sm:$0xf0] }
  0x46   :  { %1788 = vmatpush.bf16.msrb.mxu3 %v5125_v42  ;;  %6527 = vst [vmem:[#allocation45_spill] sm:$0xff] %v5141_v32  ;;  %v4505_v42 = vld [vmem:[#allocation7 + $0x294] sm:$0xf0]  ;;  %v3789_v13 = vld [vmem:[#allocation7 + $0x390] sm:$0xf] }
  0x47   :  { %1750 = vmatpush.bf16.msrb.mxu0 %v5129_v54  ;;  %6529 = vst [vmem:[#allocation47_spill] sm:$0xff] %v5147_v47  ;;  %v4521_v54 = vld [vmem:[#allocation7 + $0x314] sm:$0xf0]  ;;  %v4487_v24 = vld [vmem:[#allocation7 + $0x204] sm:$0xf0]  ;;  %v5157_v49 = vor.u32 %v4505_v42, %v3661_v41 }
  0x48   :  { %1763 = vmatpush.bf16.msrb.mxu1 %v5133_v10  ;;  %6530 = vst [vmem:[#allocation48_spill] sm:$0xff] %v5150_v1  ;;  %v5153_v10 = vor.u32 %v4489_v31, %v3597_v53  ;;  %v5159_v26 = vor.u32 %v4521_v54, %v3725_v36  ;;  %v3653_v37 = vld [vmem:[#allocation7 + $0x280] sm:$0xf]  ;;  %v4503_v39 = vld [vmem:[#allocation7 + $0x284] sm:$0xf0] }
  0x49   :  { %1776 = vmatpush.bf16.msrb.mxu2 %v5135_v11  ;;  %6532 = vst [vmem:[#allocation50_spill] sm:$0xff] %v5157_v49  ;;  %v5162_v11 = vor.u32 %v4537_v19, %v3789_v13  ;;  %v3781_v53 = vld [vmem:[#allocation7 + $0x380] sm:$0xf]  ;;  %v4535_v31 = vld [vmem:[#allocation7 + $0x384] sm:$0xf0]  ;;  %v5169_v41 = vor.u32 %v4503_v39, %v3653_v37 }
  0x4a   :  { %1789 = vmatpush.bf16.msrb.mxu3 %v5138_v30  ;;  %6531 = vst [vmem:[#allocation49_spill] sm:$0xff] %v5153_v10  ;;  %v3717_v30 = vld [vmem:[#allocation7 + $0x300] sm:$0xf]  ;;  %v3901_v22 = vld [vmem:[#allocation7 + $0x470] sm:$0xf]  ;;  %v5174_v2 = vor.u32 %v4535_v31, %v3781_v53 }
  0x4b   :  { %1751 = vmatpush.bf16.msrb.mxu0 %v5141_v32  ;;  %6533 = vst [vmem:[#allocation51_spill] sm:$0xff] %v5159_v26  ;;  %v4519_v32 = vld [vmem:[#allocation7 + $0x304] sm:$0xf0]  ;;  %v4565_v20 = vld [vmem:[#allocation7 + $0x474] sm:$0xf0] }
  0x4c   :  { %1764 = vmatpush.bf16.msrb.mxu1 %v5145_v40  ;;  %6534 = vst [vmem:[#allocation52_spill] sm:$0xff] %v5162_v11  ;;  %v3965_v18 = vld [vmem:[#allocation7 + $0x4f0] sm:$0xf]  ;;  %v4581_v42 = vld [vmem:[#allocation7 + $0x4f4] sm:$0xf0]  ;;  %v5171_v13 = vor.u32 %v4519_v32, %v3717_v30  ;;  %v93_v32 = vld [vmem:[#allocation2 + $0x28] sm:$0xff] }
  0x4d   :  { %1777 = vmatpush.bf16.msrb.mxu2 %v5147_v47  ;;  %v5165_v47 = vor.u32 %v4487_v24, %v3589_v4  ;;  %v4029_v36 = vld [vmem:[#allocation7 + $0x570] sm:$0xf]  ;;  %v4597_v54 = vld [vmem:[#allocation7 + $0x574] sm:$0xf0]  ;;  %6536 = vst [vmem:[#allocation54_spill] sm:$0xff] %v5169_v41  ;;  %v5176_v4 = vor.u32 %v4565_v20, %v3901_v22  ;;  %v5178_v60 = vor.u32 %v4581_v42, %v3965_v18 }
  0x4e   :  { %1790 = vmatpush.bf16.msrb.mxu3 %v5150_v1  ;;  %6537 = vst [vmem:[#allocation55_spill] sm:$0xff] %v5171_v13  ;;  %v4093_v19 = vld [vmem:[#allocation7 + $0x5f0] sm:$0xf]  ;;  %v4613_v1 = vld [vmem:[#allocation7 + $0x5f4] sm:$0xf0]  ;;  %v5191_v42 = vpack.c.bf16 %v95_v61, %v95_v61 }
  0x4f   :  { %1752 = vmatpush.bf16.msrb.mxu0 %v5153_v10  ;;  %6535 = vst [vmem:[#allocation53_spill] sm:$0xff] %v5165_v47  ;;  %v94_v40 = vld [vmem:[#allocation2 + $0x30] sm:$0xff]  ;;  %v3893_v24 = vld [vmem:[#allocation7 + $0x460] sm:$0xf]  ;;  %v4563_v37 = vld [vmem:[#allocation7 + $0x464] sm:$0xf0]  ;;  %v5183_v30 = vor.u32 %v4613_v1, %v4093_v19 }
  0x50   :  { %1765 = vmatpush.bf16.msrb.mxu1 %v5157_v49  ;;  %6538 = vst [vmem:[#allocation56_spill] sm:$0xff] %v5174_v2  ;;  %v92_v10 = vld [vmem:[#allocation2 + $0x20] sm:$0xff]  ;;  %v5180_v49 = vor.u32 %v4597_v54, %v4029_v36  ;;  %v4595_v53 = vld [vmem:[#allocation7 + $0x564] sm:$0xf0]  ;;  %v5185_v31 = vpack.c.bf16 %v94_v40, %v94_v40  ;;  %v5195_v1 = vor.u32 %v4563_v37, %v3893_v24  ;;  %v4561_v19 = vld [vmem:[#allocation7 + $0x454] sm:$0xf0] }
  0x51   :  { %1778 = vmatpush.bf16.msrb.mxu2 %v5159_v26  ;;  %6539 = vst [vmem:[#allocation57_spill] sm:$0xff] %v5176_v4  ;;  %v3957_v39 = vld [vmem:[#allocation7 + $0x4e0] sm:$0xf]  ;;  %v4579_v26 = vld [vmem:[#allocation7 + $0x4e4] sm:$0xf0]  ;;  %v5189_v22 = vpack.c.bf16 %v92_v10, %v92_v10  ;;  %v5197_v36 = vpack.c.bf16 %v93_v32, %v93_v32 }
  0x52   :  { %1791 = vmatpush.bf16.msrb.mxu3 %v5162_v11  ;;  %6540 = vst [vmem:[#allocation58_spill] sm:$0xff] %v5178_v60  ;;  %v4021_v11 = vld [vmem:[#allocation7 + $0x560] sm:$0xf]  ;;  %v4611_v20 = vld [vmem:[#allocation7 + $0x5e4] sm:$0xf0]  ;;  %v5201_v40 = vor.u32 %v4579_v26, %v3957_v39 }
  0x53   :  { %6541 = vst [vmem:[#allocation59_spill] sm:$0xff] %v5180_v49  ;;  %1753 = vmatpush.bf16.msrb.mxu0 %v5165_v47  ;;  %v4085_v18 = vld [vmem:[#allocation7 + $0x5e0] sm:$0xf]  ;;  %v5203_v54 = vor.u32 %v4595_v53, %v4021_v11  ;;  %v3885_v10 = vld [vmem:[#allocation7 + $0x450] sm:$0xf] }
  0x54   :  { %6542 = vst [vmem:[#allocation60_spill] sm:$0xff] %v5183_v30  ;;  %1766 = vmatpush.bf16.msrb.mxu1 %v5169_v41  ;;  %v3949_v61 = vld [vmem:[#allocation7 + $0x4d0] sm:$0xf]  ;;  %v4577_v24 = vld [vmem:[#allocation7 + $0x4d4] sm:$0xf0]  ;;  %v5212_v11 = vor.u32 %v4561_v19, %v3885_v10 }
  0x55   :  { %1779 = vmatpush.bf16.msrb.mxu2 %v5171_v13  ;;  %6543 = vst [vmem:[#allocation61_spill] sm:$0xff] %v5195_v1  ;;  %v4013_v37 = vld [vmem:[#allocation7 + $0x550] sm:$0xf]  ;;  %v4593_v32 = vld [vmem:[#allocation7 + $0x554] sm:$0xf0]  ;;  %v5217_v26 = vor.u32 %v4577_v24, %v3949_v61 }
  0x56   :  { %1792 = vmatpush.bf16.msrb.mxu3 %v5174_v2  ;;  %6544 = vst [vmem:[#allocation62_spill] sm:$0xff] %v5201_v40  ;;  %v5206_v2 = vor.u32 %v4611_v20, %v4085_v18  ;;  %1754 = vmatmul.bf16.vlgmr.msrb.gmra.mxu0 %v5189_v22  ;;  %v5219_v39 = vor.u32 %v4593_v32, %v4013_v37  ;;  %v3877_v53 = vld [vmem:[#allocation7 + $0x440] sm:$0xf]  ;;  %v4559_v18 = vld [vmem:[#allocation7 + $0x444] sm:$0xf0] }
  0x57   :  { %1798 = vmatpush.bf16.msra.mxu0 %v5176_v4  ;;  %6545 = vst [vmem:[#allocation63_spill] sm:$0xff] %v5203_v54  ;;  %v4077_v4 = vld [vmem:[#allocation7 + $0x5d0] sm:$0xf]  ;;  %1767 = vmatmul.bf16.vlgmr.msrb.gmra.mxu1 %v5197_v36  ;;  %v3941_v20 = vld [vmem:[#allocation7 + $0x4c0] sm:$0xf] }
  0x58   :  { %1811 = vmatpush.bf16.msra.mxu1 %v5178_v60  ;;  %6546 = vst [vmem:[#allocation64_spill] sm:$0xff] %v5206_v2  ;;  %1780 = vmatmul.bf16.vlgmr.msrb.gmra.mxu2 %v5185_v31  ;;  %v4609_v60 = vld [vmem:[#allocation7 + $0x5d4] sm:$0xf0]  ;;  %v4005_v10 = vld [vmem:[#allocation7 + $0x540] sm:$0xf] }
  0x59   :  { %1824 = vmatpush.bf16.msra.mxu2 %v5180_v49  ;;  %1793 = vmatmul.bf16.vlgmr.msrb.gmra.mxu3 %v5191_v42  ;;  %6547 = vst [vmem:[#allocation65_spill] sm:$0xff] %v5212_v11  ;;  %v4591_v19 = vld [vmem:[#allocation7 + $0x544] sm:$0xf0]  ;;  %v4069_v49 = vld [vmem:[#allocation7 + $0x5c0] sm:$0xf] }
  0x5a   :  { %1837 = vmatpush.bf16.msra.mxu3 %v5183_v30  ;;  %6548 = vst [vmem:[#allocation66_spill] sm:$0xff] %v5217_v26  ;;  %v5222_v30 = vor.u32 %v4609_v60, %v4077_v4  ;;  %v4607_v13 = vld [vmem:[#allocation7 + $0x5c4] sm:$0xf0]  ;;  %v5231_v24 = vor.u32 %v4591_v19, %v4005_v10  ;;  %v3869_v37 = vld [vmem:[#allocation7 + $0x430] sm:$0xf] }
  0x5b   :  { %1799 = vmatpush.bf16.msra.mxu0 %v5195_v1  ;;  %6549 = vst [vmem:[#allocation67_spill] sm:$0xff] %v5219_v39  ;;  %v4575_v1 = vld [vmem:[#allocation7 + $0x4c4] sm:$0xf0]  ;;  %v4557_v60 = vld [vmem:[#allocation7 + $0x434] sm:$0xf0]  ;;  %v5234_v32 = vor.u32 %v4607_v13, %v4069_v49 }
  0x5c   :  { %1812 = vmatpush.bf16.msra.mxu1 %v5201_v40  ;;  %6550 = vst [vmem:[#allocation68_spill] sm:$0xff] %v5222_v30  ;;  %v5225_v40 = vor.u32 %v4559_v18, %v3877_v53  ;;  %v5229_v61 = vor.u32 %v4575_v1, %v3941_v20  ;;  %v3933_v4 = vld [vmem:[#allocation7 + $0x4b0] sm:$0xf]  ;;  %v4605_v18 = vld [vmem:[#allocation7 + $0x5b4] sm:$0xf0] }
  0x5d   :  { %1825 = vmatpush.bf16.msra.mxu2 %v5203_v54  ;;  %6553 = vst [vmem:[#allocation71_spill] sm:$0xff] %v5231_v24  ;;  %v3997_v54 = vld [vmem:[#allocation7 + $0x530] sm:$0xf]  ;;  %v3861_v10 = vld [vmem:[#allocation7 + $0x420] sm:$0xf] }
  0x5e   :  { %1838 = vmatpush.bf16.msra.mxu3 %v5206_v2  ;;  %6551 = vst [vmem:[#allocation69_spill] sm:$0xff] %v5225_v40  ;;  %v4573_v2 = vld [vmem:[#allocation7 + $0x4b4] sm:$0xf0]  ;;  %v4061_v53 = vld [vmem:[#allocation7 + $0x5b0] sm:$0xf] }
  0x5f   :  { %1800 = vmatpush.bf16.msra.mxu0 %v5212_v11  ;;  %6552 = vst [vmem:[#allocation70_spill] sm:$0xff] %v5229_v61  ;;  %v4589_v11 = vld [vmem:[#allocation7 + $0x534] sm:$0xf0]  ;;  %v5241_v1 = vor.u32 %v4573_v2, %v3933_v4  ;;  %v4555_v49 = vld [vmem:[#allocation7 + $0x424] sm:$0xf0]  ;;  %v5246_v19 = vor.u32 %v4605_v18, %v4061_v53 }
  0x60   :  { %1813 = vmatpush.bf16.msra.mxu1 %v5217_v26  ;;  %6554 = vst [vmem:[#allocation72_spill] sm:$0xff] %v5234_v32  ;;  %v5237_v26 = vor.u32 %v4557_v60, %v3869_v37  ;;  %v5243_v20 = vor.u32 %v4589_v11, %v3997_v54  ;;  %v3925_v13 = vld [vmem:[#allocation7 + $0x4a0] sm:$0xf]  ;;  %v4603_v60 = vld [vmem:[#allocation7 + $0x5a4] sm:$0xf0] }
  0x61   :  { %1826 = vmatpush.bf16.msra.mxu2 %v5219_v39  ;;  %6556 = vst [vmem:[#allocation74_spill] sm:$0xff] %v5241_v1  ;;  %v3989_v39 = vld [vmem:[#allocation7 + $0x520] sm:$0xf]  ;;  %v3853_v11 = vld [vmem:[#allocation7 + $0x410] sm:$0xf] }
  0x62   :  { %1839 = vmatpush.bf16.msra.mxu3 %v5222_v30  ;;  %6555 = vst [vmem:[#allocation73_spill] sm:$0xff] %v5237_v26  ;;  %v4571_v30 = vld [vmem:[#allocation7 + $0x4a4] sm:$0xf0]  ;;  %v4053_v37 = vld [vmem:[#allocation7 + $0x5a0] sm:$0xf] }
  0x63   :  { %1801 = vmatpush.bf16.msra.mxu0 %v5225_v40  ;;  %6557 = vst [vmem:[#allocation75_spill] sm:$0xff] %v5243_v20  ;;  %v4587_v40 = vld [vmem:[#allocation7 + $0x524] sm:$0xf0]  ;;  %v5253_v2 = vor.u32 %v4571_v30, %v3925_v13  ;;  %v4553_v4 = vld [vmem:[#allocation7 + $0x414] sm:$0xf0]  ;;  %v5258_v18 = vor.u32 %v4603_v60, %v4053_v37 }
  0x64   :  { %1814 = vmatpush.bf16.msra.mxu1 %v5229_v61  ;;  %6558 = vst [vmem:[#allocation76_spill] sm:$0xff] %v5246_v19  ;;  %v5249_v61 = vor.u32 %v4555_v49, %v3861_v10  ;;  %v5255_v54 = vor.u32 %v4587_v40, %v3989_v39  ;;  %v3917_v53 = vld [vmem:[#allocation7 + $0x490] sm:$0xf]  ;;  %v4601_v49 = vld [vmem:[#allocation7 + $0x594] sm:$0xf0] }
  0x65   :  { %1827 = vmatpush.bf16.msra.mxu2 %v5231_v24  ;;  %6560 = vst [vmem:[#allocation78_spill] sm:$0xff] %v5253_v2  ;;  %v3981_v24 = vld [vmem:[#allocation7 + $0x510] sm:$0xf]  ;;  %v3845_v30 = vld [vmem:[#allocation7 + $0x400] sm:$0xf] }
  0x66   :  { %1840 = vmatpush.bf16.msra.mxu3 %v5234_v32  ;;  %6559 = vst [vmem:[#allocation77_spill] sm:$0xff] %v5249_v61  ;;  %v4569_v32 = vld [vmem:[#allocation7 + $0x494] sm:$0xf0]  ;;  %v4045_v10 = vld [vmem:[#allocation7 + $0x590] sm:$0xf] }
  0x67   :  { %1802 = vmatpush.bf16.msra.mxu0 %v5237_v26  ;;  %6561 = vst [vmem:[#allocation79_spill] sm:$0xff] %v5255_v54  ;;  %v4585_v26 = vld [vmem:[#allocation7 + $0x514] sm:$0xf0]  ;;  %v4551_v13 = vld [vmem:[#allocation7 + $0x404] sm:$0xf0]  ;;  %v5265_v39 = vor.u32 %v4569_v32, %v3917_v53  ;;  %v5270_v41 = vor.u32 %v4601_v49, %v4045_v10 }
  0x68   :  { %1815 = vmatpush.bf16.msra.mxu1 %v5241_v1  ;;  %6562 = vst [vmem:[#allocation80_spill] sm:$0xff] %v5258_v18  ;;  %v5261_v1 = vor.u32 %v4553_v4, %v3853_v11  ;;  %v3909_v40 = vld [vmem:[#allocation7 + $0x480] sm:$0xf]  ;;  %v5267_v37 = vor.u32 %v4585_v26, %v3981_v24  ;;  %v4567_v60 = vld [vmem:[#allocation7 + $0x484] sm:$0xf0] }
  0x69   :  { %1828 = vmatpush.bf16.msra.mxu2 %v5243_v20  ;;  %6564 = vst [vmem:[#allocation82_spill] sm:$0xff] %v5265_v39  ;;  %v4583_v20 = vld [vmem:[#allocation7 + $0x504] sm:$0xf0]  ;;  %v4037_v11 = vld [vmem:[#allocation7 + $0x580] sm:$0xf]  ;;  %v5277_v24 = vor.u32 %v4567_v60, %v3909_v40 }
  0x6a   :  { %1841 = vmatpush.bf16.msra.mxu3 %v5246_v19  ;;  %6563 = vst [vmem:[#allocation81_spill] sm:$0xff] %v5261_v1  ;;  %v3973_v19 = vld [vmem:[#allocation7 + $0x500] sm:$0xf]  ;;  %v4599_v4 = vld [vmem:[#allocation7 + $0x584] sm:$0xf0] }
  0x6b   :  { %1803 = vmatpush.bf16.msra.mxu0 %v5249_v61  ;;  %6565 = vst [vmem:[#allocation83_spill] sm:$0xff] %v5267_v37  ;;  %v4157_v61 = vld [vmem:[#allocation7 + $0x670] sm:$0xf]  ;;  %v4629_v47 = vld [vmem:[#allocation7 + $0x674] sm:$0xf0]  ;;  %v5279_v10 = vor.u32 %v4583_v20, %v3973_v19  ;;  %v5282_v55 = vor.u32 %v4599_v4, %v4037_v11 }
  0x6c   :  { %1816 = vmatpush.bf16.msra.mxu1 %v5253_v2  ;;  %6566 = vst [vmem:[#allocation84_spill] sm:$0xff] %v5270_v41  ;;  %v4221_v59 = vld [vmem:[#allocation7 + $0x6f0] sm:$0xf]  ;;  %v5273_v2 = vor.u32 %v4551_v13, %v3845_v30  ;;  %v4645_v32 = vld [vmem:[#allocation7 + $0x6f4] sm:$0xf0]  ;;  %v5284_v30 = vor.u32 %v4629_v47, %v4157_v61 }
  0x6d   :  { %1829 = vmatpush.bf16.msra.mxu2 %v5255_v54  ;;  %v4285_v53 = vld [vmem:[#allocation7 + $0x770] sm:$0xf]  ;;  %v4661_v26 = vld [vmem:[#allocation7 + $0x774] sm:$0xf0]  ;;  %6568 = vst [vmem:[#allocation86_spill] sm:$0xff] %v5277_v24  ;;  %v96_v54 = vld [vmem:[#allocation2 + $0x40] sm:$0xff]  ;;  %v5286_v51 = vor.u32 %v4645_v32, %v4221_v59 }
  0x6e   :  { %1842 = vmatpush.bf16.msra.mxu3 %v5258_v18  ;;  %6567 = vst [vmem:[#allocation85_spill] sm:$0xff] %v5273_v2  ;;  %v4349_v49 = vld [vmem:[#allocation7 + $0x7f0] sm:$0xf]  ;;  %v4677_v18 = vld [vmem:[#allocation7 + $0x7f4] sm:$0xf0] }
  0x6f   :  { %1804 = vmatpush.bf16.msra.mxu0 %v5261_v1  ;;  %6569 = vst [vmem:[#allocation87_spill] sm:$0xff] %v5279_v10  ;;  %v98_v13 = vld [vmem:[#allocation2 + $0x50] sm:$0xff]  ;;  %v97_v1 = vld [vmem:[#allocation2 + $0x48] sm:$0xff]  ;;  %v4149_v40 = vld [vmem:[#allocation7 + $0x660] sm:$0xf]  ;;  %v5291_v19 = vor.u32 %v4677_v18, %v4349_v49  ;;  %v5303_v18 = vpack.c.bf16 %v99_v52, %v99_v52 }
  0x70   :  { %1817 = vmatpush.bf16.msra.mxu1 %v5265_v39  ;;  %6570 = vst [vmem:[#allocation88_spill] sm:$0xff] %v5282_v55  ;;  %v5288_v39 = vor.u32 %v4661_v26, %v4285_v53  ;;  %v4627_v60 = vld [vmem:[#allocation7 + $0x664] sm:$0xf0]  ;;  %v4213_v20 = vld [vmem:[#allocation7 + $0x6e0] sm:$0xf]  ;;  %v5297_v59 = vpack.c.bf16 %v98_v13, %v98_v13  ;;  %v5299_v61 = vpack.c.bf16 %v97_v1, %v97_v1 }
  0x71   :  { %1830 = vmatpush.bf16.msra.mxu2 %v5267_v37  ;;  %6571 = vst [vmem:[#allocation89_spill] sm:$0xff] %v5284_v30  ;;  %v5293_v37 = vpack.c.bf16 %v96_v54, %v96_v54  ;;  %v4643_v11 = vld [vmem:[#allocation7 + $0x6e4] sm:$0xf0]  ;;  %v4277_v4 = vld [vmem:[#allocation7 + $0x760] sm:$0xf]  ;;  %v5305_v54 = vor.u32 %v4627_v60, %v4149_v40 }
  0x72   :  { %1843 = vmatpush.bf16.msra.mxu3 %v5270_v41  ;;  %6572 = vst [vmem:[#allocation90_spill] sm:$0xff] %v5286_v51  ;;  %v4659_v47 = vld [vmem:[#allocation7 + $0x764] sm:$0xf0]  ;;  %v4341_v32 = vld [vmem:[#allocation7 + $0x7e0] sm:$0xf]  ;;  %v5309_v26 = vor.u32 %v4643_v11, %v4213_v20 }
  0x73   :  { %6573 = vst [vmem:[#allocation91_spill] sm:$0xff] %v5288_v39  ;;  %1805 = vmatpush.bf16.msra.mxu0 %v5273_v2  ;;  %v4675_v53 = vld [vmem:[#allocation7 + $0x7e4] sm:$0xf0]  ;;  %v5311_v49 = vor.u32 %v4659_v47, %v4277_v4  ;;  %v4141_v1 = vld [vmem:[#allocation7 + $0x650] sm:$0xf] }
  0x74   :  { %6574 = vst [vmem:[#allocation92_spill] sm:$0xff] %v5291_v19  ;;  %1818 = vmatpush.bf16.msra.mxu1 %v5277_v24  ;;  %v4625_v13 = vld [vmem:[#allocation7 + $0x654] sm:$0xf0]  ;;  %v4269_v40 = vld [vmem:[#allocation7 + $0x750] sm:$0xf] }
  0x75   :  { %1831 = vmatpush.bf16.msra.mxu2 %v5279_v10  ;;  %6575 = vst [vmem:[#allocation93_spill] sm:$0xff] %v5305_v54  ;;  %v4205_v10 = vld [vmem:[#allocation7 + $0x6d0] sm:$0xf]  ;;  %v4641_v52 = vld [vmem:[#allocation7 + $0x6d4] sm:$0xf0]  ;;  %v5321_v4 = vor.u32 %v4625_v13, %v4141_v1 }
  0x76   :  { %1844 = vmatpush.bf16.msra.mxu3 %v5282_v55  ;;  %6576 = vst [vmem:[#allocation94_spill] sm:$0xff] %v5309_v26  ;;  %1806 = vmatmul.bf16.vlgmr.msra.gmra.mxu0 %v5293_v37  ;;  %v4657_v60 = vld [vmem:[#allocation7 + $0x754] sm:$0xf0]  ;;  %v4333_v20 = vld [vmem:[#allocation7 + $0x7d0] sm:$0xf]  ;;  %v5325_v47 = vor.u32 %v4641_v52, %v4205_v10 }
  0x77   :  { %1850 = vmatpush.bf16.msrb.mxu0 %v5284_v30  ;;  %6577 = vst [vmem:[#allocation95_spill] sm:$0xff] %v5311_v49  ;;  %v5315_v30 = vor.u32 %v4675_v53, %v4341_v32  ;;  %1819 = vmatmul.bf16.vlgmr.msra.gmra.mxu1 %v5299_v61  ;;  %v4673_v11 = vld [vmem:[#allocation7 + $0x7d4] sm:$0xf0]  ;;  %v5327_v32 = vor.u32 %v4657_v60, %v4269_v40  ;;  %v4133_v53 = vld [vmem:[#allocation7 + $0x640] sm:$0xf] }
  0x78   :  { %1863 = vmatpush.bf16.msrb.mxu1 %v5286_v51  ;;  %1832 = vmatmul.bf16.vlgmr.msra.gmra.mxu2 %v5297_v59  ;;  %6579 = vst [vmem:[#allocation97_spill] sm:$0xff] %v5321_v4  ;;  %v5330_v51 = vor.u32 %v4673_v11, %v4333_v20  ;;  %v4639_v55 = vld [vmem:[#allocation7 + $0x6c4] sm:$0xf0]  ;;  %v4261_v24 = vld [vmem:[#allocation7 + $0x740] sm:$0xf] }
  0x79   :  { %1876 = vmatpush.bf16.msrb.mxu2 %v5288_v39  ;;  %6578 = vst [vmem:[#allocation96_spill] sm:$0xff] %v5315_v30  ;;  %1845 = vmatmul.bf16.vlgmr.msra.gmra.mxu3 %v5303_v18  ;;  %v4197_v39 = vld [vmem:[#allocation7 + $0x6c0] sm:$0xf]  ;;  %v4671_v13 = vld [vmem:[#allocation7 + $0x7c4] sm:$0xf0] }
  0x7a   :  { %1889 = vmatpush.bf16.msrb.mxu3 %v5291_v19  ;;  %6580 = vst [vmem:[#allocation98_spill] sm:$0xff] %v5325_v47  ;;  %v4623_v19 = vld [vmem:[#allocation7 + $0x644] sm:$0xf0]  ;;  %v4325_v1 = vld [vmem:[#allocation7 + $0x7c0] sm:$0xf]  ;;  %v5337_v10 = vor.u32 %v4639_v55, %v4197_v39 }
  0x7b   :  { %1851 = vmatpush.bf16.msrb.mxu0 %v5305_v54  ;;  %6581 = vst [vmem:[#allocation99_spill] sm:$0xff] %v5327_v32  ;;  %v4655_v54 = vld [vmem:[#allocation7 + $0x744] sm:$0xf0]  ;;  %v4125_v40 = vld [vmem:[#allocation7 + $0x630] sm:$0xf]  ;;  %v5342_v11 = vor.u32 %v4671_v13, %v4325_v1 }
  0x7c   :  { %1864 = vmatpush.bf16.msrb.mxu1 %v5309_v26  ;;  %6582 = vst [vmem:[#allocation100_spill] sm:$0xff] %v5330_v51  ;;  %v5333_v26 = vor.u32 %v4623_v19, %v4133_v53  ;;  %v5339_v52 = vor.u32 %v4655_v54, %v4261_v24  ;;  %v4621_v60 = vld [vmem:[#allocation7 + $0x634] sm:$0xf0]  ;;  %v4189_v20 = vld [vmem:[#allocation7 + $0x6b0] sm:$0xf] }
  0x7d   :  { %1877 = vmatpush.bf16.msrb.mxu2 %v5311_v49  ;;  %6584 = vst [vmem:[#allocation102_spill] sm:$0xff] %v5337_v10  ;;  %v4253_v49 = vld [vmem:[#allocation7 + $0x730] sm:$0xf]  ;;  %v4669_v53 = vld [vmem:[#allocation7 + $0x7b4] sm:$0xf0] }
  0x7e   :  { %1890 = vmatpush.bf16.msrb.mxu3 %v5315_v30  ;;  %6583 = vst [vmem:[#allocation101_spill] sm:$0xff] %v5333_v26  ;;  %v4637_v30 = vld [vmem:[#allocation7 + $0x6b4] sm:$0xf0]  ;;  %v4317_v19 = vld [vmem:[#allocation7 + $0x7b0] sm:$0xf] }
  0x7f   :  { %1852 = vmatpush.bf16.msrb.mxu0 %v5321_v4  ;;  %6585 = vst [vmem:[#allocation103_spill] sm:$0xff] %v5339_v52  ;;  %v4653_v4 = vld [vmem:[#allocation7 + $0x734] sm:$0xf0]  ;;  %v5349_v55 = vor.u32 %v4637_v30, %v4189_v20  ;;  %v4117_v24 = vld [vmem:[#allocation7 + $0x620] sm:$0xf]  ;;  %v5354_v13 = vor.u32 %v4669_v53, %v4317_v19 }
  0x80   :  { %1865 = vmatpush.bf16.msrb.mxu1 %v5325_v47  ;;  %6586 = vst [vmem:[#allocation104_spill] sm:$0xff] %v5342_v11  ;;  %v5345_v47 = vor.u32 %v4621_v60, %v4125_v40  ;;  %v5351_v39 = vor.u32 %v4653_v4, %v4253_v49  ;;  %v4619_v54 = vld [vmem:[#allocation7 + $0x624] sm:$0xf0]  ;;  %v4181_v1 = vld [vmem:[#allocation7 + $0x6a0] sm:$0xf] }
  0x81   :  { %1878 = vmatpush.bf16.msrb.mxu2 %v5327_v32  ;;  %6588 = vst [vmem:[#allocation106_spill] sm:$0xff] %v5349_v55  ;;  %v4245_v32 = vld [vmem:[#allocation7 + $0x720] sm:$0xf]  ;;  %v4667_v60 = vld [vmem:[#allocation7 + $0x7a4] sm:$0xf0] }
  0x82   :  { %1891 = vmatpush.bf16.msrb.mxu3 %v5330_v51  ;;  %6587 = vst [vmem:[#allocation105_spill] sm:$0xff] %v5345_v47  ;;  %v4635_v51 = vld [vmem:[#allocation7 + $0x6a4] sm:$0xf0]  ;;  %v4309_v40 = vld [vmem:[#allocation7 + $0x7a0] sm:$0xf] }
  0x83   :  { %1853 = vmatpush.bf16.msrb.mxu0 %v5333_v26  ;;  %6589 = vst [vmem:[#allocation107_spill] sm:$0xff] %v5351_v39  ;;  %v4651_v26 = vld [vmem:[#allocation7 + $0x724] sm:$0xf0]  ;;  %v5361_v30 = vor.u32 %v4635_v51, %v4181_v1  ;;  %v4109_v4 = vld [vmem:[#allocation7 + $0x610] sm:$0xf]  ;;  %v5366_v53 = vor.u32 %v4667_v60, %v4309_v40 }
  0x84   :  { %1866 = vmatpush.bf16.msrb.mxu1 %v5337_v10  ;;  %6590 = vst [vmem:[#allocation108_spill] sm:$0xff] %v5354_v13  ;;  %v5357_v10 = vor.u32 %v4619_v54, %v4117_v24  ;;  %v5363_v49 = vor.u32 %v4651_v26, %v4245_v32  ;;  %v4617_v20 = vld [vmem:[#allocation7 + $0x614] sm:$0xf0]  ;;  %v4173_v19 = vld [vmem:[#allocation7 + $0x690] sm:$0xf] }
  0x85   :  { %1879 = vmatpush.bf16.msrb.mxu2 %v5339_v52  ;;  %6592 = vst [vmem:[#allocation110_spill] sm:$0xff] %v5361_v30  ;;  %v4237_v52 = vld [vmem:[#allocation7 + $0x710] sm:$0xf]  ;;  %v4665_v54 = vld [vmem:[#allocation7 + $0x794] sm:$0xf0] }
  0x86   :  { %1892 = vmatpush.bf16.msrb.mxu3 %v5342_v11  ;;  %6591 = vst [vmem:[#allocation109_spill] sm:$0xff] %v5357_v10  ;;  %v4633_v11 = vld [vmem:[#allocation7 + $0x694] sm:$0xf0]  ;;  %v4301_v24 = vld [vmem:[#allocation7 + $0x790] sm:$0xf] }
  0x87   :  { %1854 = vmatpush.bf16.msrb.mxu0 %v5345_v47  ;;  %6593 = vst [vmem:[#allocation111_spill] sm:$0xff] %v5363_v49  ;;  %v4649_v47 = vld [vmem:[#allocation7 + $0x714] sm:$0xf0]  ;;  %v4101_v51 = vld [vmem:[#allocation7 + $0x600] sm:$0xf]  ;;  %v5373_v26 = vor.u32 %v4633_v11, %v4173_v19 }
  0x88   :  { %1867 = vmatpush.bf16.msrb.mxu1 %v5349_v55  ;;  %6594 = vst [vmem:[#allocation112_spill] sm:$0xff] %v5366_v53  ;;  %v5369_v55 = vor.u32 %v4617_v20, %v4109_v4  ;;  %v4615_v1 = vld [vmem:[#allocation7 + $0x604] sm:$0xf0]  ;;  %v5375_v32 = vor.u32 %v4649_v47, %v4237_v52  ;;  %v4165_v40 = vld [vmem:[#allocation7 + $0x680] sm:$0xf] }
  0x89   :  { %1880 = vmatpush.bf16.msrb.mxu2 %v5351_v39  ;;  %6596 = vst [vmem:[#allocation114_spill] sm:$0xff] %v5373_v26  ;;  %v4631_v60 = vld [vmem:[#allocation7 + $0x684] sm:$0xf0]  ;;  %v5378_v39 = vor.u32 %v4665_v54, %v4301_v24  ;;  %v4293_v4 = vld [vmem:[#allocation7 + $0x780] sm:$0xf] }
  0x8a   :  { %1893 = vmatpush.bf16.msrb.mxu3 %v5354_v13  ;;  %6595 = vst [vmem:[#allocation113_spill] sm:$0xff] %v5369_v55  ;;  %v4229_v13 = vld [vmem:[#allocation7 + $0x700] sm:$0xf]  ;;  %v4663_v20 = vld [vmem:[#allocation7 + $0x784] sm:$0xf0]  ;;  %v5385_v19 = vor.u32 %v4631_v60, %v4165_v40 }
  0x8b   :  { %1855 = vmatpush.bf16.msrb.mxu0 %v5357_v10  ;;  %6597 = vst [vmem:[#allocation115_spill] sm:$0xff] %v5375_v32  ;;  %v4647_v10 = vld [vmem:[#allocation7 + $0x704] sm:$0xf0]  ;;  %v4436_v2 = vld [vmem:[#allocation7 + $0x74] sm:$0xf]  ;;  %v5390_v35 = vor.u32 %v4663_v20, %v4293_v4 }
  0x8c   :  { %1868 = vmatpush.bf16.msrb.mxu1 %v5361_v30  ;;  %6598 = vst [vmem:[#allocation116_spill] sm:$0xff] %v5378_v39  ;;  %v3391_v41 = vld [vmem:[#allocation7 + $0x78] sm:$0xf0]  ;;  %v4452_v43 = vld [vmem:[#allocation7 + $0xf4] sm:$0xf]  ;;  %v5387_v24 = vor.u32 %v4647_v10, %v4229_v13  ;;  %v100_v30 = vld [vmem:[#allocation2 + $0x60] sm:$0xff] }
  0x8d   :  { %1881 = vmatpush.bf16.msrb.mxu2 %v5363_v49  ;;  %v5381_v49 = vor.u32 %v4615_v1, %v4101_v51  ;;  %v3455_v11 = vld [vmem:[#allocation7 + $0xf8] sm:$0xf0]  ;;  %v4468_v47 = vld [vmem:[#allocation7 + $0x174] sm:$0xf]  ;;  %6600 = vst [vmem:[#allocation118_spill] sm:$0xff] %v5385_v19  ;;  %v5392_v51 = vor.u32 %v4436_v2, %v3391_v41 }
  0x8e   :  { %1894 = vmatpush.bf16.msrb.mxu3 %v5366_v53  ;;  %v3519_v52 = vld [vmem:[#allocation7 + $0x178] sm:$0xf0]  ;;  %6601 = vst [vmem:[#allocation119_spill] sm:$0xff] %v5387_v24  ;;  %v4484_v54 = vld [vmem:[#allocation7 + $0x1f4] sm:$0xf]  ;;  %v5394_v27 = vor.u32 %v4452_v43, %v3455_v11 }
  0x8f   :  { %1856 = vmatpush.bf16.msrb.mxu0 %v5369_v55  ;;  %6599 = vst [vmem:[#allocation117_spill] sm:$0xff] %v5381_v49  ;;  %v3583_v53 = vld [vmem:[#allocation7 + $0x1f8] sm:$0xf0]  ;;  %v102_v1 = vld [vmem:[#allocation2 + $0x70] sm:$0xff]  ;;  %v101_v55 = vld [vmem:[#allocation2 + $0x68] sm:$0xff] }
  0x90   :  { %1869 = vmatpush.bf16.msrb.mxu1 %v5373_v26  ;;  %6602 = vst [vmem:[#allocation120_spill] sm:$0xff] %v5390_v35  ;;  %v5396_v26 = vor.u32 %v4468_v47, %v3519_v52  ;;  %v4434_v40 = vld [vmem:[#allocation7 + $0x64] sm:$0xf]  ;;  %v3383_v60 = vld [vmem:[#allocation7 + $0x68] sm:$0xf0]  ;;  %v5399_v13 = vor.u32 %v4484_v54, %v3583_v53  ;;  %v5405_v43 = vpack.c.bf16 %v102_v1, %v102_v1 }
  0x91   :  { %1882 = vmatpush.bf16.msrb.mxu2 %v5375_v32  ;;  %6603 = vst [vmem:[#allocation121_spill] sm:$0xff] %v5392_v51  ;;  %v4450_v10 = vld [vmem:[#allocation7 + $0xe4] sm:$0xf]  ;;  %v5401_v32 = vpack.c.bf16 %v100_v30, %v100_v30  ;;  %v3447_v4 = vld [vmem:[#allocation7 + $0xe8] sm:$0xf0]  ;;  %v5407_v2 = vpack.c.bf16 %v101_v55, %v101_v55  ;;  %v5411_v53 = vpack.c.bf16 %v103_v28, %v103_v28 }
  0x92   :  { %1895 = vmatpush.bf16.msrb.mxu3 %v5378_v39  ;;  %6604 = vst [vmem:[#allocation122_spill] sm:$0xff] %v5394_v27  ;;  %v4466_v20 = vld [vmem:[#allocation7 + $0x164] sm:$0xf]  ;;  %v3511_v41 = vld [vmem:[#allocation7 + $0x168] sm:$0xf0]  ;;  %v5413_v30 = vor.u32 %v4434_v40, %v3383_v60  ;;  %v5417_v52 = vor.u32 %v4450_v10, %v3447_v4 }
  0x93   :  { %6605 = vst [vmem:[#allocation123_spill] sm:$0xff] %v5396_v26  ;;  %1857 = vmatpush.bf16.msrb.mxu0 %v5381_v49  ;;  %v4482_v11 = vld [vmem:[#allocation7 + $0x1e4] sm:$0xf]  ;;  %v3575_v47 = vld [vmem:[#allocation7 + $0x1e8] sm:$0xf0]  ;;  %v5419_v54 = vor.u32 %v4466_v20, %v3511_v41 }
  0x94   :  { %6606 = vst [vmem:[#allocation124_spill] sm:$0xff] %v5399_v13  ;;  %1870 = vmatpush.bf16.msrb.mxu1 %v5385_v19  ;;  %v4432_v55 = vld [vmem:[#allocation7 + $0x54] sm:$0xf]  ;;  %v3375_v1 = vld [vmem:[#allocation7 + $0x58] sm:$0xf0] }
  0x95   :  { %1883 = vmatpush.bf16.msrb.mxu2 %v5387_v24  ;;  %6607 = vst [vmem:[#allocation125_spill] sm:$0xff] %v5413_v30  ;;  %v4448_v24 = vld [vmem:[#allocation7 + $0xd4] sm:$0xf]  ;;  %v3439_v28 = vld [vmem:[#allocation7 + $0xd8] sm:$0xf0]  ;;  %v5429_v20 = vor.u32 %v4432_v55, %v3375_v1 }
  0x96   :  { %1896 = vmatpush.bf16.msrb.mxu3 %v5390_v35  ;;  %6608 = vst [vmem:[#allocation126_spill] sm:$0xff] %v5417_v52  ;;  %1858 = vmatmul.bf16.vlgmr.msrb.gmra.mxu0 %v5401_v32  ;;  %v4464_v40 = vld [vmem:[#allocation7 + $0x154] sm:$0xf]  ;;  %v3503_v60 = vld [vmem:[#allocation7 + $0x158] sm:$0xf0]  ;;  %v5433_v41 = vor.u32 %v4448_v24, %v3439_v28 }
  0x97   :  { %1902 = vmatpush.bf16.msra.mxu0 %v5392_v51  ;;  %6609 = vst [vmem:[#allocation127_spill] sm:$0xff] %v5419_v54  ;;  %v5423_v51 = vor.u32 %v4482_v11, %v3575_v47  ;;  %1871 = vmatmul.bf16.vlgmr.msrb.gmra.mxu1 %v5407_v2  ;;  %v4480_v10 = vld [vmem:[#allocation7 + $0x1d4] sm:$0xf]  ;;  %v3567_v4 = vld [vmem:[#allocation7 + $0x1d8] sm:$0xf0]  ;;  %v5435_v11 = vor.u32 %v4464_v40, %v3503_v60 }
  0x98   :  { %1915 = vmatpush.bf16.msra.mxu1 %v5394_v27  ;;  %1884 = vmatmul.bf16.vlgmr.msrb.gmra.mxu2 %v5405_v43  ;;  %6611 = vst [vmem:[#allocation129_spill] sm:$0xff] %v5429_v20  ;;  %v4430_v47 = vld [vmem:[#allocation7 + $0x44] sm:$0xf]  ;;  %v5438_v27 = vor.u32 %v4480_v10, %v3567_v4  ;;  %v3431_v35 = vld [vmem:[#allocation7 + $0xc8] sm:$0xf0] }
  0x99   :  { %1928 = vmatpush.bf16.msra.mxu2 %v5396_v26  ;;  %6610 = vst [vmem:[#allocation128_spill] sm:$0xff] %v5423_v51  ;;  %1897 = vmatmul.bf16.vlgmr.msrb.gmra.mxu3 %v5411_v53  ;;  %v4446_v26 = vld [vmem:[#allocation7 + $0xc4] sm:$0xf]  ;;  %v3559_v1 = vld [vmem:[#allocation7 + $0x1c8] sm:$0xf0] }
  0x9a   :  { %1941 = vmatpush.bf16.msra.mxu3 %v5399_v13  ;;  %6612 = vst [vmem:[#allocation130_spill] sm:$0xff] %v5433_v41  ;;  %v3367_v13 = vld [vmem:[#allocation7 + $0x48] sm:$0xf0]  ;;  %v4462_v19 = vld [vmem:[#allocation7 + $0x144] sm:$0xf]  ;;  %v5445_v24 = vor.u32 %v4446_v26, %v3431_v35 }
  0x9b   :  { %1903 = vmatpush.bf16.msra.mxu0 %v5413_v30  ;;  %6613 = vst [vmem:[#allocation131_spill] sm:$0xff] %v5435_v11  ;;  %v3495_v30 = vld [vmem:[#allocation7 + $0x148] sm:$0xf0]  ;;  %v4478_v55 = vld [vmem:[#allocation7 + $0x1c4] sm:$0xf] }
  0x9c   :  { %1916 = vmatpush.bf16.msra.mxu1 %v5417_v52  ;;  %6614 = vst [vmem:[#allocation132_spill] sm:$0xff] %v5438_v27  ;;  %v5441_v52 = vor.u32 %v4430_v47, %v3367_v13  ;;  %v5447_v28 = vor.u32 %v4462_v19, %v3495_v30  ;;  %v4428_v40 = vld [vmem:[#allocation7 + $0x34] sm:$0xf]  ;;  %v3359_v60 = vld [vmem:[#allocation7 + $0x38] sm:$0xf0]  ;;  %v5450_v4 = vor.u32 %v4478_v55, %v3559_v1 }
  0x9d   :  { %1929 = vmatpush.bf16.msra.mxu2 %v5419_v54  ;;  %6616 = vst [vmem:[#allocation134_spill] sm:$0xff] %v5445_v24  ;;  %v4444_v10 = vld [vmem:[#allocation7 + $0xb4] sm:$0xf]  ;;  %v3551_v47 = vld [vmem:[#allocation7 + $0x1b8] sm:$0xf0] }
  0x9e   :  { %1942 = vmatpush.bf16.msra.mxu3 %v5423_v51  ;;  %6615 = vst [vmem:[#allocation133_spill] sm:$0xff] %v5441_v52  ;;  %v3423_v51 = vld [vmem:[#allocation7 + $0xb8] sm:$0xf0]  ;;  %v4460_v54 = vld [vmem:[#allocation7 + $0x134] sm:$0xf] }
  0x9f   :  { %1904 = vmatpush.bf16.msra.mxu0 %v5429_v20  ;;  %6617 = vst [vmem:[#allocation135_spill] sm:$0xff] %v5447_v28  ;;  %v3487_v20 = vld [vmem:[#allocation7 + $0x138] sm:$0xf0]  ;;  %v4476_v13 = vld [vmem:[#allocation7 + $0x1b4] sm:$0xf]  ;;  %v5457_v35 = vor.u32 %v4444_v10, %v3423_v51 }
  0xa0   :  { %1917 = vmatpush.bf16.msra.mxu1 %v5433_v41  ;;  %6618 = vst [vmem:[#allocation136_spill] sm:$0xff] %v5450_v4  ;;  %v5453_v41 = vor.u32 %v4428_v40, %v3359_v60  ;;  %v5459_v26 = vor.u32 %v4460_v54, %v3487_v20  ;;  %v4426_v19 = vld [vmem:[#allocation7 + $0x24] sm:$0xf]  ;;  %v3351_v30 = vld [vmem:[#allocation7 + $0x28] sm:$0xf0]  ;;  %v5462_v1 = vor.u32 %v4476_v13, %v3551_v47 }
  0xa1   :  { %1930 = vmatpush.bf16.msra.mxu2 %v5435_v11  ;;  %6620 = vst [vmem:[#allocation138_spill] sm:$0xff] %v5457_v35  ;;  %v4442_v55 = vld [vmem:[#allocation7 + $0xa4] sm:$0xf]  ;;  %v3543_v60 = vld [vmem:[#allocation7 + $0x1a8] sm:$0xf0] }
  0xa2   :  { %1943 = vmatpush.bf16.msra.mxu3 %v5438_v27  ;;  %6619 = vst [vmem:[#allocation137_spill] sm:$0xff] %v5453_v41  ;;  %v3415_v27 = vld [vmem:[#allocation7 + $0xa8] sm:$0xf0]  ;;  %v4458_v11 = vld [vmem:[#allocation7 + $0x124] sm:$0xf] }
  0xa3   :  { %1905 = vmatpush.bf16.msra.mxu0 %v5441_v52  ;;  %6621 = vst [vmem:[#allocation139_spill] sm:$0xff] %v5459_v26  ;;  %v3479_v52 = vld [vmem:[#allocation7 + $0x128] sm:$0xf0]  ;;  %v4474_v40 = vld [vmem:[#allocation7 + $0x1a4] sm:$0xf]  ;;  %v5469_v51 = vor.u32 %v4442_v55, %v3415_v27 }
  0xa4   :  { %1918 = vmatpush.bf16.msra.mxu1 %v5445_v24  ;;  %6622 = vst [vmem:[#allocation140_spill] sm:$0xff] %v5462_v1  ;;  %v5465_v24 = vor.u32 %v4426_v19, %v3351_v30  ;;  %v5471_v54 = vor.u32 %v4458_v11, %v3479_v52  ;;  %v4424_v20 = vld [vmem:[#allocation7 + $0x14] sm:$0xf]  ;;  %v3343_v10 = vld [vmem:[#allocation7 + $0x18] sm:$0xf0]  ;;  %v5474_v47 = vor.u32 %v4474_v40, %v3543_v60 }
  0xa5   :  { %1931 = vmatpush.bf16.msra.mxu2 %v5447_v28  ;;  %6624 = vst [vmem:[#allocation142_spill] sm:$0xff] %v5469_v51  ;;  %v4440_v13 = vld [vmem:[#allocation7 + $0x94] sm:$0xf]  ;;  %v3535_v30 = vld [vmem:[#allocation7 + $0x198] sm:$0xf0] }
  0xa6   :  { %1944 = vmatpush.bf16.msra.mxu3 %v5450_v4  ;;  %6623 = vst [vmem:[#allocation141_spill] sm:$0xff] %v5465_v24  ;;  %v3407_v4 = vld [vmem:[#allocation7 + $0x98] sm:$0xf0]  ;;  %v4456_v28 = vld [vmem:[#allocation7 + $0x114] sm:$0xf] }
  0xa7   :  { %1906 = vmatpush.bf16.msra.mxu0 %v5453_v41  ;;  %6625 = vst [vmem:[#allocation143_spill] sm:$0xff] %v5471_v54  ;;  %v3471_v41 = vld [vmem:[#allocation7 + $0x118] sm:$0xf0]  ;;  %v4472_v19 = vld [vmem:[#allocation7 + $0x194] sm:$0xf]  ;;  %v5481_v52 = vor.u32 %v4440_v13, %v3407_v4 }
  0xa8   :  { %1919 = vmatpush.bf16.msra.mxu1 %v5457_v35  ;;  %6626 = vst [vmem:[#allocation144_spill] sm:$0xff] %v5474_v47  ;;  %v5477_v35 = vor.u32 %v4424_v20, %v3343_v10  ;;  %v4422_v27 = vld [vmem:[#allocation7 + $0x4] sm:$0xf]  ;;  %v3335_v55 = vld [vmem:[#allocation7 + $0x8] sm:$0xf0]  ;;  %v5483_v11 = vor.u32 %v4456_v28, %v3471_v41 }
  0xa9   :  { %1932 = vmatpush.bf16.msra.mxu2 %v5459_v26  ;;  %6628 = vst [vmem:[#allocation146_spill] sm:$0xff] %v5481_v52  ;;  %v4438_v40 = vld [vmem:[#allocation7 + $0x84] sm:$0xf]  ;;  %v3399_v60 = vld [vmem:[#allocation7 + $0x88] sm:$0xf0]  ;;  %v5486_v26 = vor.u32 %v4472_v19, %v3535_v30 }
  0xaa   :  { %1945 = vmatpush.bf16.msra.mxu3 %v5462_v1  ;;  %6627 = vst [vmem:[#allocation145_spill] sm:$0xff] %v5477_v35  ;;  %v4454_v1 = vld [vmem:[#allocation7 + $0x104] sm:$0xf]  ;;  %v3527_v10 = vld [vmem:[#allocation7 + $0x188] sm:$0xf0]  ;;  %v5493_v13 = vor.u32 %v4438_v40, %v3399_v60 }
  0xab   :  { %1907 = vmatpush.bf16.msra.mxu0 %v5465_v24  ;;  %v3463_v24 = vld [vmem:[#allocation7 + $0x108] sm:$0xf0]  ;;  %v4470_v20 = vld [vmem:[#allocation7 + $0x184] sm:$0xf]  ;;  %v4500_v49 = vld [vmem:[#allocation7 + $0x274] sm:$0xf] }
  0xac   :  { %1920 = vmatpush.bf16.msra.mxu1 %v5469_v51  ;;  %v3647_v39 = vld [vmem:[#allocation7 + $0x278] sm:$0xf0]  ;;  %v4516_v23 = vld [vmem:[#allocation7 + $0x2f4] sm:$0xf]  ;;  %6630 = vst [vmem:[#allocation148_spill] sm:$0xff] %v5493_v13  ;;  %v5495_v19 = vor.u32 %v4454_v1, %v3463_v24  ;;  %v5498_v51 = vor.u32 %v4470_v20, %v3527_v10 }
  0xad   :  { %1933 = vmatpush.bf16.msra.mxu2 %v5471_v54  ;;  %v5489_v54 = vor.u32 %v4422_v27, %v3335_v55  ;;  %v3711_v4 = vld [vmem:[#allocation7 + $0x2f8] sm:$0xf0]  ;;  %v4532_v41 = vld [vmem:[#allocation7 + $0x374] sm:$0xf]  ;;  %v4498_v14 = vld [vmem:[#allocation7 + $0x264] sm:$0xf] }
  0xae   :  { %1946 = vmatpush.bf16.msra.mxu3 %v5474_v47  ;;  %v3775_v28 = vld [vmem:[#allocation7 + $0x378] sm:$0xf0]  ;;  %6631 = vst [vmem:[#allocation149_spill] sm:$0xff] %v5495_v19  ;;  %v4548_v30 = vld [vmem:[#allocation7 + $0x3f4] sm:$0xf]  ;;  %v5502_v27 = vor.u32 %v4516_v23, %v3711_v4 }
  0xaf   :  { %1908 = vmatpush.bf16.msra.mxu0 %v5477_v35  ;;  %6629 = vst [vmem:[#allocation147_spill] sm:$0xff] %v5489_v54  ;;  %v3839_v47 = vld [vmem:[#allocation7 + $0x3f8] sm:$0xf0]  ;;  %v5500_v35 = vor.u32 %v4500_v49, %v3647_v39  ;;  %v5504_v55 = vor.u32 %v4532_v41, %v3775_v28  ;;  %v4514_v9 = vld [vmem:[#allocation7 + $0x2e4] sm:$0xf] }
  0xb0   :  { %1921 = vmatpush.bf16.msra.mxu1 %v5481_v52  ;;  %6632 = vst [vmem:[#allocation150_spill] sm:$0xff] %v5498_v51  ;;  %v3639_v52 = vld [vmem:[#allocation7 + $0x268] sm:$0xf0]  ;;  %v5507_v40 = vor.u32 %v4548_v30, %v3839_v47  ;;  %v4530_v1 = vld [vmem:[#allocation7 + $0x364] sm:$0xf] }
  0xb1   :  { %1934 = vmatpush.bf16.msra.mxu2 %v5483_v11  ;;  %6633 = vst [vmem:[#allocation151_spill] sm:$0xff] %v5500_v35  ;;  %v3703_v24 = vld [vmem:[#allocation7 + $0x2e8] sm:$0xf0]  ;;  %v4546_v39 = vld [vmem:[#allocation7 + $0x3e4] sm:$0xf]  ;;  %v5513_v23 = vor.u32 %v4498_v14, %v3639_v52 }
  0xb2   :  { %1947 = vmatpush.bf16.msra.mxu3 %v5486_v26  ;;  %6634 = vst [vmem:[#allocation152_spill] sm:$0xff] %v5502_v27  ;;  %v3767_v60 = vld [vmem:[#allocation7 + $0x368] sm:$0xf0]  ;;  %v5517_v47 = vor.u32 %v4514_v9, %v3703_v24  ;;  %v4496_v10 = vld [vmem:[#allocation7 + $0x254] sm:$0xf] }
  0xb3   :  { %6635 = vst [vmem:[#allocation153_spill] sm:$0xff] %v5504_v55  ;;  %1909 = vmatpush.bf16.msra.mxu0 %v5489_v54  ;;  %v3831_v49 = vld [vmem:[#allocation7 + $0x3e8] sm:$0xf0]  ;;  %v5519_v20 = vor.u32 %v4530_v1, %v3767_v60  ;;  %v3631_v4 = vld [vmem:[#allocation7 + $0x258] sm:$0xf0] }
  0xb4   :  { %6636 = vst [vmem:[#allocation154_spill] sm:$0xff] %v5507_v40  ;;  %1922 = vmatpush.bf16.msra.mxu1 %v5493_v13  ;;  %v4512_v41 = vld [vmem:[#allocation7 + $0x2d4] sm:$0xf]  ;;  %v5522_v28 = vor.u32 %v4546_v39, %v3831_v49  ;;  %v3695_v30 = vld [vmem:[#allocation7 + $0x2d8] sm:$0xf0]  ;;  %v5528_v9 = vor.u32 %v4496_v10, %v3631_v4 }
  0xb5   :  { %1935 = vmatpush.bf16.msra.mxu2 %v5495_v19  ;;  %6637 = vst [vmem:[#allocation155_spill] sm:$0xff] %v5513_v23  ;;  %v4544_v14 = vld [vmem:[#allocation7 + $0x3d4] sm:$0xf]  ;;  %v3823_v52 = vld [vmem:[#allocation7 + $0x3d8] sm:$0xf0]  ;;  %v5533_v1 = vor.u32 %v4512_v41, %v3695_v30 }
  0xb6   :  { %1948 = vmatpush.bf16.msra.mxu3 %v5498_v51  ;;  %6638 = vst [vmem:[#allocation156_spill] sm:$0xff] %v5517_v47  ;;  %v4528_v51 = vld [vmem:[#allocation7 + $0x354] sm:$0xf]  ;;  %1910 = vmatmul.bf16.vlgmr.msra.gmra.mxu0 %v5103_v0  ;;  %v4494_v24 = vld [vmem:[#allocation7 + $0x244] sm:$0xf] }
  0xb7   :  { %1954 = vmatpush.bf16.msrb.mxu0 %v5500_v35  ;;  %6639 = vst [vmem:[#allocation157_spill] sm:$0xff] %v5519_v20  ;;  %v3759_v35 = vld [vmem:[#allocation7 + $0x358] sm:$0xf0]  ;;  %1923 = vmatmul.bf16.vlgmr.msra.gmra.mxu1 %v5122_v48  ;;  %v3623_v60 = vld [vmem:[#allocation7 + $0x248] sm:$0xf0] }
  0xb8   :  { %1967 = vmatpush.bf16.msrb.mxu1 %v5502_v27  ;;  %6640 = vst [vmem:[#allocation158_spill] sm:$0xff] %v5522_v28  ;;  %1936 = vmatmul.bf16.vlgmr.msra.gmra.mxu2 %v5101_v63  ;;  %v5535_v63 = vor.u32 %v4528_v51, %v3759_v35  ;;  %v4510_v39 = vld [vmem:[#allocation7 + $0x2c4] sm:$0xf]  ;;  %v3687_v0 = vld [vmem:[#allocation7 + $0x2c8] sm:$0xf0]  ;;  %v5546_v35 = vor.u32 %v4494_v24, %v3623_v60 }
  0xb9   :  { %1980 = vmatpush.bf16.msrb.mxu2 %v5504_v55  ;;  %1949 = vmatmul.bf16.vlgmr.msra.gmra.mxu3 %v5108_v15  ;;  %6641 = vst [vmem:[#allocation159_spill] sm:$0xff] %v5528_v9  ;;  %v5538_v15 = vor.u32 %v4544_v14, %v3823_v52  ;;  %v4526_v49 = vld [vmem:[#allocation7 + $0x344] sm:$0xf]  ;;  %v3751_v10 = vld [vmem:[#allocation7 + $0x348] sm:$0xf0]  ;;  %v5550_v41 = vor.u32 %v4510_v39, %v3687_v0  ;;  %v1703_v39 = vpop.f32.mrf.mxu0 }
  0xba   :  { %1993 = vmatpush.bf16.msrb.mxu3 %v5507_v40  ;;  %6642 = vst [vmem:[#allocation160_spill] sm:$0xff] %v5533_v1  ;;  %v5543_v48 = vld [vmem:[%s6280_s3] sm:$0x3]  ;;  %v4542_v4 = vld [vmem:[#allocation7 + $0x3c4] sm:$0xf]  ;;  %v5552_v30 = vor.u32 %v4526_v49, %v3751_v10 }
  0xbb   :  { %1955 = vmatpush.bf16.msrb.mxu0 %v5513_v23  ;;  %6643 = vst [vmem:[#allocation161_spill] sm:$0xff] %v5535_v63  ;;  %v4492_v51 = vld [vmem:[#allocation7 + $0x234] sm:$0xf]  ;;  %v3615_v14 = vld [vmem:[#allocation7 + $0x238] sm:$0xf0] }
  0xbc   :  { %1968 = vmatpush.bf16.msrb.mxu1 %v5517_v47  ;;  %6644 = vst [vmem:[#allocation162_spill] sm:$0xff] %v5538_v15  ;;  %v4508_v52 = vld [vmem:[#allocation7 + $0x2b4] sm:$0xf]  ;;  %v3743_v60 = vld [vmem:[#allocation7 + $0x338] sm:$0xf0] }
  0xbd   :  { %1981 = vmatpush.bf16.msrb.mxu2 %v5519_v20  ;;  %v3815_v20 = vld [vmem:[#allocation7 + $0x3c8] sm:$0xf0]  ;;  %6645 = vst [vmem:[#allocation163_spill] sm:$0xff] %v5546_v35  ;;  %v4524_v24 = vld [vmem:[#allocation7 + $0x334] sm:$0xf] }
  0xbe   :  { %1994 = vmatpush.bf16.msrb.mxu3 %v5522_v28  ;;  %6646 = vst [vmem:[#allocation164_spill] sm:$0xff] %v5550_v41  ;;  %v6432_v28 = vperm.slane %v5543_v48, 0  ;;  %v5556_v47 = vor.u32 %v4542_v4, %v3815_v20  ;;  %v4540_v23 = vld [vmem:[#allocation7 + $0x3b4] sm:$0xf]  ;;  %v3807_v40 = vld [vmem:[#allocation7 + $0x3b8] sm:$0xf0]  ;;  %v5565_v49 = vor.u32 %v4524_v24, %v3743_v60 }
  0xbf   :  { %1956 = vmatpush.bf16.msrb.mxu0 %v5528_v9  ;;  %6647 = vst [vmem:[#allocation165_spill] sm:$0xff] %v5552_v30  ;;  %v3679_v9 = vld [vmem:[#allocation7 + $0x2b8] sm:$0xf0]  ;;  %v4490_v20 = vld [vmem:[#allocation7 + $0x224] sm:$0xf] }
  0xc0   :  { %1969 = vmatpush.bf16.msrb.mxu1 %v5533_v1  ;;  %6648 = vst [vmem:[#allocation166_spill] sm:$0xff] %v5556_v47  ;;  %v5563_v0 = vor.u32 %v4508_v52, %v3679_v9  ;;  %v3607_v10 = vld [vmem:[#allocation7 + $0x228] sm:$0xf0]  ;;  %v4506_v4 = vld [vmem:[#allocation7 + $0x2a4] sm:$0xf]  ;;  %v1716_v52 = vpop.f32.mrf.mxu1 }
  0xc1   :  { %1982 = vmatpush.bf16.msrb.mxu2 %v5535_v63  ;;  %v5559_v63 = vor.u32 %v4492_v51, %v3615_v14  ;;  %6651 = vst [vmem:[#allocation169_spill] sm:$0xff] %v5565_v49  ;;  %v3671_v51 = vld [vmem:[#allocation7 + $0x2a8] sm:$0xf0]  ;;  %v4522_v14 = vld [vmem:[#allocation7 + $0x324] sm:$0xf]  ;;  %v5573_v9 = vor.u32 %v4490_v20, %v3607_v10 }
  0xc2   :  { %1995 = vmatpush.bf16.msrb.mxu3 %v5538_v15  ;;  %6650 = vst [vmem:[#allocation168_spill] sm:$0xff] %v5563_v0  ;;  %v1704_v15 = vadd.f32 %v1703_v39, %v6432_v28  ;;  %v3735_v1 = vld [vmem:[#allocation7 + $0x328] sm:$0xf0]  ;;  %v5577_v24 = vor.u32 %v4506_v4, %v3671_v51  ;;  %v4504_v39 = vld [vmem:[#allocation7 + $0x294] sm:$0xf] }
  0xc3   :  { %1957 = vmatpush.bf16.msrb.mxu0 %v5546_v35  ;;  %6649 = vst [vmem:[#allocation167_spill] sm:$0xff] %v5559_v63  ;;  %v5570_v35 = vor.u32 %v4540_v23, %v3807_v40  ;;  %v3799_v55 = vld [vmem:[#allocation7 + $0x3a8] sm:$0xf0]  ;;  %v5579_v60 = vor.u32 %v4522_v14, %v3735_v1  ;;  %v4488_v40 = vld [vmem:[#allocation7 + $0x214] sm:$0xf]  ;;  %v1705_v14 = vpop.f32.mrf.mxu0 }
  0xc4   :  { %1970 = vmatpush.bf16.msrb.mxu1 %v5550_v41  ;;  %v4538_v41 = vld [vmem:[#allocation7 + $0x3a4] sm:$0xf]  ;;  %6653 = vst [vmem:[#allocation171_spill] sm:$0xff] %v5573_v9  ;;  %v3599_v23 = vld [vmem:[#allocation7 + $0x218] sm:$0xf0]  ;;  %v1717_v28 = vadd.f32 %v1716_v52, %v1704_v15 }
  0xc5   :  { %1983 = vmatpush.bf16.msrb.mxu2 %v5552_v30  ;;  %6652 = vst [vmem:[#allocation170_spill] sm:$0xff] %v5570_v35  ;;  %v4520_v20 = vld [vmem:[#allocation7 + $0x314] sm:$0xf]  ;;  %v3727_v10 = vld [vmem:[#allocation7 + $0x318] sm:$0xf0]  ;;  %v1729_v30 = vpop.f32.mrf.mxu2  ;;  %v5585_v1 = vor.u32 %v4488_v40, %v3599_v23 }
  0xc6   :  { %1996 = vmatpush.bf16.msrb.mxu3 %v5556_v47  ;;  %6654 = vst [vmem:[#allocation172_spill] sm:$0xff] %v5577_v24  ;;  %v5582_v47 = vor.u32 %v4538_v41, %v3799_v55  ;;  %v4536_v27 = vld [vmem:[#allocation7 + $0x394] sm:$0xf]  ;;  %v1730_v19 = vadd.f32 %v1729_v30, %v1717_v28  ;;  %v4486_v4 = vld [vmem:[#allocation7 + $0x204] sm:$0xf]  ;;  %v5591_v15 = vor.u32 %v4520_v20, %v3727_v10 }
  0xc7   :  { %1958 = vmatpush.bf16.msrb.mxu0 %v5559_v63  ;;  %6655 = vst [vmem:[#allocation173_spill] sm:$0xff] %v5579_v60  ;;  %v3663_v63 = vld [vmem:[#allocation7 + $0x298] sm:$0xf0]  ;;  %v3591_v51 = vld [vmem:[#allocation7 + $0x208] sm:$0xf0] }
  0xc8   :  { %1971 = vmatpush.bf16.msrb.mxu1 %v5563_v0  ;;  %6656 = vst [vmem:[#allocation174_spill] sm:$0xff] %v5582_v47  ;;  %v3791_v0 = vld [vmem:[#allocation7 + $0x398] sm:$0xf0]  ;;  %v5589_v55 = vor.u32 %v4504_v39, %v3663_v63  ;;  %v4502_v41 = vld [vmem:[#allocation7 + $0x284] sm:$0xf]  ;;  %v5599_v63 = vor.u32 %v4486_v4, %v3591_v51 }
  0xc9   :  { %1984 = vmatpush.bf16.msrb.mxu2 %v5565_v49  ;;  %v1742_v49 = vpop.f32.mrf.mxu3  ;;  %6657 = vst [vmem:[#allocation175_spill] sm:$0xff] %v5585_v1  ;;  %v3655_v52 = vld [vmem:[#allocation7 + $0x288] sm:$0xf0]  ;;  %v5596_v30 = vor.u32 %v4536_v27, %v3791_v0  ;;  %v4534_v23 = vld [vmem:[#allocation7 + $0x384] sm:$0xf] }
  0xca   :  { %1997 = vmatpush.bf16.msrb.mxu3 %v5570_v35  ;;  %6658 = vst [vmem:[#allocation176_spill] sm:$0xff] %v5589_v55  ;;  %v4518_v35 = vld [vmem:[#allocation7 + $0x304] sm:$0xf]  ;;  %v5593_v28 = vadd.f32 %v1742_v49, %v1730_v19  ;;  %v3719_v40 = vld [vmem:[#allocation7 + $0x308] sm:$0xf0]  ;;  %v5603_v19 = vor.u32 %v4502_v41, %v3655_v52 }
  0xcb   :  { %1959 = vmatpush.bf16.msrb.mxu0 %v5573_v9  ;;  %6659 = vst [vmem:[#allocation177_spill] sm:$0xff] %v5591_v15  ;;  %v3783_v14 = vld [vmem:[#allocation7 + $0x388] sm:$0xf0]  ;;  %v4564_v9 = vld [vmem:[#allocation7 + $0x474] sm:$0xf]  ;;  %v5605_v27 = vor.u32 %v4518_v35, %v3719_v40 }
  0xcc   :  { %1972 = vmatpush.bf16.msrb.mxu1 %v5577_v24  ;;  %6660 = vst [vmem:[#allocation178_spill] sm:$0xff] %v5596_v30  ;;  %v3903_v24 = vld [vmem:[#allocation7 + $0x478] sm:$0xf0]  ;;  %v4580_v13 = vld [vmem:[#allocation7 + $0x4f4] sm:$0xf] }
  0xcd   :  { %1985 = vmatpush.bf16.msrb.mxu2 %v5579_v60  ;;  %v3967_v39 = vld [vmem:[#allocation7 + $0x4f8] sm:$0xf0]  ;;  %v4596_v20 = vld [vmem:[#allocation7 + $0x574] sm:$0xf]  ;;  %v1718_v60 = vpop.f32.mrf.mxu1  ;;  %v5610_v4 = vor.u32 %v4564_v9, %v3903_v24  ;;  %v1731_v51 = vpop.f32.mrf.mxu2  ;;  %v3895_v54 = vld [vmem:[#allocation7 + $0x468] sm:$0xf0] }
  0xce   :  { %1998 = vmatpush.bf16.msrb.mxu3 %v5582_v47  ;;  %v4031_v10 = vld [vmem:[#allocation7 + $0x578] sm:$0xf0]  ;;  %v4612_v0 = vld [vmem:[#allocation7 + $0x5f4] sm:$0xf]  ;;  %v5608_v47 = vor.u32 %v4534_v23, %v3783_v14  ;;  %v3959_v52 = vld [vmem:[#allocation7 + $0x4e8] sm:$0xf0] }
  0xcf   :  { %1960 = vmatpush.bf16.msrb.mxu0 %v5585_v1  ;;  %v4095_v49 = vld [vmem:[#allocation7 + $0x5f8] sm:$0xf0]  ;;  %6661 = vst [vmem:[#allocation179_spill] sm:$0xff] %v5610_v4  ;;  %v5612_v1 = vor.u32 %v4580_v13, %v3967_v39  ;;  %v5614_v60 = vor.u32 %v4596_v20, %v4031_v10  ;;  %v4594_v40 = vld [vmem:[#allocation7 + $0x564] sm:$0xf] }
  0xd0   :  { %1973 = vmatpush.bf16.msrb.mxu1 %v5589_v55  ;;  %v4562_v55 = vld [vmem:[#allocation7 + $0x464] sm:$0xf]  ;;  %v5617_v35 = vor.u32 %v4612_v0, %v4095_v49  ;;  %v4087_v13 = vld [vmem:[#allocation7 + $0x5e8] sm:$0xf0]  ;;  %v4560_v39 = vld [vmem:[#allocation7 + $0x454] sm:$0xf] }
  0xd1   :  { %1986 = vmatpush.bf16.msrb.mxu2 %v5591_v15  ;;  %6662 = vst [vmem:[#allocation180_spill] sm:$0xff] %v5612_v1  ;;  %v4578_v15 = vld [vmem:[#allocation7 + $0x4e4] sm:$0xf]  ;;  %v1744_v41 = vpop.f32.mrf.mxu3  ;;  %v5623_v24 = vor.u32 %v4562_v55, %v3895_v54  ;;  %v3887_v20 = vld [vmem:[#allocation7 + $0x458] sm:$0xf0] }
  0xd2   :  { %1999 = vmatpush.bf16.msrb.mxu3 %v5596_v30  ;;  %6663 = vst [vmem:[#allocation181_spill] sm:$0xff] %v5614_v60  ;;  %v4023_v30 = vld [vmem:[#allocation7 + $0x568] sm:$0xf0]  ;;  %v4610_v9 = vld [vmem:[#allocation7 + $0x5e4] sm:$0xf]  ;;  %v5627_v23 = vor.u32 %v4578_v15, %v3959_v52  ;;  %v5638_v15 = vor.u32 %v4560_v39, %v3887_v20 }
  0xd3   :  { %1961 = vmatpush.bf16.msrb.mxu0 %v5599_v63  ;;  %6664 = vst [vmem:[#allocation182_spill] sm:$0xff] %v5617_v35  ;;  %v5629_v14 = vor.u32 %v4594_v40, %v4023_v30  ;;  %v4576_v10 = vld [vmem:[#allocation7 + $0x4d4] sm:$0xf]  ;;  %v5632_v0 = vor.u32 %v4610_v9, %v4087_v13  ;;  %v3951_v49 = vld [vmem:[#allocation7 + $0x4d8] sm:$0xf0] }
  0xd4   :  { %1974 = vmatpush.bf16.msrb.mxu1 %v5603_v19  ;;  %6665 = vst [vmem:[#allocation183_spill] sm:$0xff] %v5623_v24  ;;  %v4592_v54 = vld [vmem:[#allocation7 + $0x554] sm:$0xf]  ;;  %v4015_v55 = vld [vmem:[#allocation7 + $0x558] sm:$0xf0] }
  0xd5   :  { %1987 = vmatpush.bf16.msrb.mxu2 %v5605_v27  ;;  %6666 = vst [vmem:[#allocation184_spill] sm:$0xff] %v5627_v23  ;;  %v4608_v51 = vld [vmem:[#allocation7 + $0x5d4] sm:$0xf]  ;;  %v4079_v41 = vld [vmem:[#allocation7 + $0x5d8] sm:$0xf0]  ;;  %v5645_v30 = vor.u32 %v4592_v54, %v4015_v55 }
  0xd6   :  { %2000 = vmatpush.bf16.msrb.mxu3 %v5608_v47  ;;  %6667 = vst [vmem:[#allocation185_spill] sm:$0xff] %v5629_v14  ;;  %1962 = vmatmul.bf16.vlgmr.msrb.gmra.mxu0 %v5189_v22  ;;  %v4558_v52 = vld [vmem:[#allocation7 + $0x444] sm:$0xf]  ;;  %v3879_v40 = vld [vmem:[#allocation7 + $0x448] sm:$0xf0]  ;;  %v5648_v22 = vor.u32 %v4608_v51, %v4079_v41 }
  0xd7   :  { %2006 = vmatpush.bf16.msra.mxu0 %v5610_v4  ;;  %6668 = vst [vmem:[#allocation186_spill] sm:$0xff] %v5632_v0  ;;  %1975 = vmatmul.bf16.vlgmr.msrb.gmra.mxu1 %v5197_v36  ;;  %v4574_v9 = vld [vmem:[#allocation7 + $0x4c4] sm:$0xf]  ;;  %v4007_v39 = vld [vmem:[#allocation7 + $0x548] sm:$0xf0] }
  0xd8   :  { %2019 = vmatpush.bf16.msra.mxu1 %v5612_v1  ;;  %1988 = vmatmul.bf16.vlgmr.msrb.gmra.mxu2 %v5185_v31  ;;  %6669 = vst [vmem:[#allocation187_spill] sm:$0xff] %v5638_v15  ;;  %v5643_v31 = vor.u32 %v4576_v10, %v3951_v49  ;;  %v4590_v13 = vld [vmem:[#allocation7 + $0x544] sm:$0xf]  ;;  %v4071_v36 = vld [vmem:[#allocation7 + $0x5c8] sm:$0xf0]  ;;  %v1755_v10 = vpop.f32.mrf.mxu0 }
  0xd9   :  { %2032 = vmatpush.bf16.msra.mxu2 %v5614_v60  ;;  %2001 = vmatmul.bf16.vlgmr.msrb.gmra.mxu3 %v5191_v42  ;;  %6671 = vst [vmem:[#allocation189_spill] sm:$0xff] %v5645_v30  ;;  %v3943_v42 = vld [vmem:[#allocation7 + $0x4c8] sm:$0xf0]  ;;  %v4606_v20 = vld [vmem:[#allocation7 + $0x5c4] sm:$0xf]  ;;  %v5657_v54 = vor.u32 %v4590_v13, %v4007_v39 }
  0xda   :  { %2045 = vmatpush.bf16.msra.mxu3 %v5617_v35  ;;  %6670 = vst [vmem:[#allocation188_spill] sm:$0xff] %v5643_v31  ;;  %v5655_v49 = vor.u32 %v4574_v9, %v3943_v42  ;;  %v4556_v55 = vld [vmem:[#allocation7 + $0x434] sm:$0xf]  ;;  %v3871_v51 = vld [vmem:[#allocation7 + $0x438] sm:$0xf0] }
  0xdb   :  { %2007 = vmatpush.bf16.msra.mxu0 %v5623_v24  ;;  %6672 = vst [vmem:[#allocation190_spill] sm:$0xff] %v5648_v22  ;;  %v4572_v41 = vld [vmem:[#allocation7 + $0x4b4] sm:$0xf]  ;;  %v3999_v24 = vld [vmem:[#allocation7 + $0x538] sm:$0xf0]  ;;  %v5664_v9 = vor.u32 %v4556_v55, %v3871_v51 }
  0xdc   :  { %2020 = vmatpush.bf16.msra.mxu1 %v5627_v23  ;;  %v5651_v23 = vor.u32 %v4558_v52, %v3879_v40  ;;  %6674 = vst [vmem:[#allocation192_spill] sm:$0xff] %v5655_v49  ;;  %v3935_v52 = vld [vmem:[#allocation7 + $0x4b8] sm:$0xf0]  ;;  %v4588_v40 = vld [vmem:[#allocation7 + $0x534] sm:$0xf] }
  0xdd   :  { %2033 = vmatpush.bf16.msra.mxu2 %v5629_v14  ;;  %6675 = vst [vmem:[#allocation193_spill] sm:$0xff] %v5657_v54  ;;  %v1768_v14 = vpop.f32.mrf.mxu1  ;;  %v4063_v35 = vld [vmem:[#allocation7 + $0x5b8] sm:$0xf0]  ;;  %v5670_v42 = vor.u32 %v4588_v40, %v3999_v24  ;;  %v4554_v13 = vld [vmem:[#allocation7 + $0x424] sm:$0xf] }
  0xde   :  { %2046 = vmatpush.bf16.msra.mxu3 %v5632_v0  ;;  %6673 = vst [vmem:[#allocation191_spill] sm:$0xff] %v5651_v23  ;;  %v1756_v0 = vadd.f32 %v1755_v10, %v5593_v28  ;;  %v5668_v28 = vor.u32 %v4572_v41, %v3935_v52  ;;  %v3863_v39 = vld [vmem:[#allocation7 + $0x428] sm:$0xf0]  ;;  %v4552_v40 = vld [vmem:[#allocation7 + $0x414] sm:$0xf] }
  0xdf   :  { %2008 = vmatpush.bf16.msra.mxu0 %v5638_v15  ;;  %v5661_v15 = vor.u32 %v4606_v20, %v4071_v36  ;;  %6677 = vst [vmem:[#allocation195_spill] sm:$0xff] %v5664_v9  ;;  %v4570_v20 = vld [vmem:[#allocation7 + $0x4a4] sm:$0xf]  ;;  %v1781_v36 = vpop.f32.mrf.mxu2  ;;  %v3991_v55 = vld [vmem:[#allocation7 + $0x528] sm:$0xf0]  ;;  %v5676_v41 = vor.u32 %v4554_v13, %v3863_v39 }
  0xe0   :  { %2021 = vmatpush.bf16.msra.mxu1 %v5643_v31  ;;  %v4604_v31 = vld [vmem:[#allocation7 + $0x5b4] sm:$0xf]  ;;  %6678 = vst [vmem:[#allocation196_spill] sm:$0xff] %v5668_v28  ;;  %v1757_v52 = vpop.f32.mrf.mxu0  ;;  %v3919_v13 = vld [vmem:[#allocation7 + $0x498] sm:$0xf0] }
  0xe1   :  { %2034 = vmatpush.bf16.msra.mxu2 %v5645_v30  ;;  %6676 = vst [vmem:[#allocation194_spill] sm:$0xff] %v5661_v15  ;;  %v1769_v30 = vadd.f32 %v1768_v14, %v1756_v0  ;;  %v5673_v10 = vor.u32 %v4604_v31, %v4063_v35  ;;  %v3927_v14 = vld [vmem:[#allocation7 + $0x4a8] sm:$0xf0]  ;;  %v4586_v0 = vld [vmem:[#allocation7 + $0x524] sm:$0xf] }
  0xe2   :  { %2047 = vmatpush.bf16.msra.mxu3 %v5648_v22  ;;  %6679 = vst [vmem:[#allocation197_spill] sm:$0xff] %v5670_v42  ;;  %v4055_v22 = vld [vmem:[#allocation7 + $0x5a8] sm:$0xf0]  ;;  %v5682_v35 = vor.u32 %v4570_v20, %v3927_v14  ;;  %v5684_v31 = vor.u32 %v4586_v0, %v3991_v55  ;;  %v3983_v39 = vld [vmem:[#allocation7 + $0x518] sm:$0xf0] }
  0xe3   :  { %2009 = vmatpush.bf16.msra.mxu0 %v5651_v23  ;;  %6680 = vst [vmem:[#allocation198_spill] sm:$0xff] %v5673_v10  ;;  %v1782_v51 = vadd.f32 %v1781_v36, %v1769_v30  ;;  %v1794_v23 = vpop.f32.mrf.mxu3  ;;  %v3855_v30 = vld [vmem:[#allocation7 + $0x418] sm:$0xf0]  ;;  %v4568_v36 = vld [vmem:[#allocation7 + $0x494] sm:$0xf] }
  0xe4   :  { %2022 = vmatpush.bf16.msra.mxu1 %v5655_v49  ;;  %v4602_v49 = vld [vmem:[#allocation7 + $0x5a4] sm:$0xf]  ;;  %6681 = vst [vmem:[#allocation199_spill] sm:$0xff] %v5676_v41  ;;  %v4047_v52 = vld [vmem:[#allocation7 + $0x598] sm:$0xf0] }
  0xe5   :  { %2035 = vmatpush.bf16.msra.mxu2 %v5657_v54  ;;  %v5678_v24 = vadd.f32 %v1794_v23, %v1782_v51  ;;  %6682 = vst [vmem:[#allocation200_spill] sm:$0xff] %v5682_v35  ;;  %v4584_v23 = vld [vmem:[#allocation7 + $0x514] sm:$0xf]  ;;  %v4550_v20 = vld [vmem:[#allocation7 + $0x404] sm:$0xf] }
  0xe6   :  { %2048 = vmatpush.bf16.msra.mxu3 %v5661_v15  ;;  %6683 = vst [vmem:[#allocation201_spill] sm:$0xff] %v5684_v31  ;;  %v1770_v15 = vpop.f32.mrf.mxu1  ;;  %v4600_v51 = vld [vmem:[#allocation7 + $0x594] sm:$0xf]  ;;  %v3847_v14 = vld [vmem:[#allocation7 + $0x408] sm:$0xf0]  ;;  %v5696_v0 = vor.u32 %v4584_v23, %v3983_v39 }
  0xe7   :  { %2010 = vmatpush.bf16.msra.mxu0 %v5664_v9  ;;  %v5687_v9 = vor.u32 %v4602_v49, %v4055_v22  ;;  %v5694_v15 = vor.u32 %v4568_v36, %v3919_v13  ;;  %v4566_v22 = vld [vmem:[#allocation7 + $0x484] sm:$0xf]  ;;  %v3911_v49 = vld [vmem:[#allocation7 + $0x488] sm:$0xf0]  ;;  %v4628_v60 = vld [vmem:[#allocation7 + $0x674] sm:$0xf]  ;;  %v5702_v36 = vor.u32 %v4550_v20, %v3847_v14 }
  0xe8   :  { %2023 = vmatpush.bf16.msra.mxu1 %v5668_v28  ;;  %v4582_v55 = vld [vmem:[#allocation7 + $0x504] sm:$0xf]  ;;  %v5699_v28 = vor.u32 %v4600_v51, %v4047_v52  ;;  %v4644_v1 = vld [vmem:[#allocation7 + $0x6f4] sm:$0xf]  ;;  %v4223_v13 = vld [vmem:[#allocation7 + $0x6f8] sm:$0xf0] }
  0xe9   :  { %2036 = vmatpush.bf16.msra.mxu2 %v5670_v42  ;;  %6684 = vst [vmem:[#allocation202_spill] sm:$0xff] %v5687_v9  ;;  %v5690_v42 = vor.u32 %v4552_v40, %v3855_v30  ;;  %v3975_v40 = vld [vmem:[#allocation7 + $0x508] sm:$0xf0]  ;;  %v4598_v30 = vld [vmem:[#allocation7 + $0x584] sm:$0xf]  ;;  %v5715_v20 = vor.u32 %v4644_v1, %v4223_v13 }
  0xea   :  { %2049 = vmatpush.bf16.msra.mxu3 %v5673_v10  ;;  %6686 = vst [vmem:[#allocation204_spill] sm:$0xff] %v5694_v15  ;;  %v1783_v10 = vpop.f32.mrf.mxu2  ;;  %v4660_v23 = vld [vmem:[#allocation7 + $0x774] sm:$0xf]  ;;  %v4287_v39 = vld [vmem:[#allocation7 + $0x778] sm:$0xf0]  ;;  %v5708_v51 = vor.u32 %v4582_v55, %v3975_v40 }
  0xeb   :  { %2011 = vmatpush.bf16.msra.mxu0 %v5676_v41  ;;  %6685 = vst [vmem:[#allocation203_spill] sm:$0xff] %v5690_v42  ;;  %v4039_v41 = vld [vmem:[#allocation7 + $0x588] sm:$0xf0]  ;;  %v1796_v54 = vpop.f32.mrf.mxu3  ;;  %v5706_v10 = vor.u32 %v4566_v22, %v3911_v49  ;;  %v4676_v52 = vld [vmem:[#allocation7 + $0x7f4] sm:$0xf]  ;;  %v5717_v14 = vor.u32 %v4660_v23, %v4287_v39 }
  0xec   :  { %2024 = vmatpush.bf16.msra.mxu1 %v5682_v35  ;;  %v4159_v35 = vld [vmem:[#allocation7 + $0x678] sm:$0xf0]  ;;  %6687 = vst [vmem:[#allocation205_spill] sm:$0xff] %v5715_v20  ;;  %v4642_v4 = vld [vmem:[#allocation7 + $0x6e4] sm:$0xf] }
  0xed   :  { %2037 = vmatpush.bf16.msra.mxu2 %v5684_v31  ;;  %v4351_v54 = vld [vmem:[#allocation7 + $0x7f8] sm:$0xf0]  ;;  %6688 = vst [vmem:[#allocation206_spill] sm:$0xff] %v5717_v14  ;;  %v4626_v31 = vld [vmem:[#allocation7 + $0x664] sm:$0xf] }
  0xee   :  { %2050 = vmatpush.bf16.msra.mxu3 %v5687_v9  ;;  %v5711_v9 = vor.u32 %v4598_v30, %v4039_v41  ;;  %v5720_v22 = vor.u32 %v4676_v52, %v4351_v54  ;;  %v4215_v49 = vld [vmem:[#allocation7 + $0x6e8] sm:$0xf0]  ;;  %v4658_v55 = vld [vmem:[#allocation7 + $0x764] sm:$0xf]  ;;  %v4624_v13 = vld [vmem:[#allocation7 + $0x654] sm:$0xf] }
  0xef   :  { %2012 = vmatpush.bf16.msra.mxu0 %v5690_v42  ;;  %v5713_v42 = vor.u32 %v4628_v60, %v4159_v35  ;;  %v4279_v40 = vld [vmem:[#allocation7 + $0x768] sm:$0xf0]  ;;  %v4674_v60 = vld [vmem:[#allocation7 + $0x7e4] sm:$0xf]  ;;  %v5730_v35 = vor.u32 %v4642_v4, %v4215_v49  ;;  %v4143_v23 = vld [vmem:[#allocation7 + $0x658] sm:$0xf0] }
  0xf0   :  { %2025 = vmatpush.bf16.msra.mxu1 %v5694_v15  ;;  %v4151_v15 = vld [vmem:[#allocation7 + $0x668] sm:$0xf0]  ;;  %6689 = vst [vmem:[#allocation207_spill] sm:$0xff] %v5720_v22  ;;  %v5732_v30 = vor.u32 %v4658_v55, %v4279_v40  ;;  %v4640_v39 = vld [vmem:[#allocation7 + $0x6d4] sm:$0xf]  ;;  %v5742_v55 = vor.u32 %v4624_v13, %v4143_v23 }
  0xf1   :  { %2038 = vmatpush.bf16.msra.mxu2 %v5696_v0  ;;  %v4343_v41 = vld [vmem:[#allocation7 + $0x7e8] sm:$0xf0]  ;;  %v5726_v1 = vor.u32 %v4626_v31, %v4151_v15  ;;  %6691 = vst [vmem:[#allocation209_spill] sm:$0xff] %v5730_v35  ;;  %v4207_v54 = vld [vmem:[#allocation7 + $0x6d8] sm:$0xf0] }
  0xf2   :  { %2051 = vmatpush.bf16.msra.mxu3 %v5699_v28  ;;  %6692 = vst [vmem:[#allocation210_spill] sm:$0xff] %v5732_v30  ;;  %v5736_v52 = vor.u32 %v4674_v60, %v4343_v41  ;;  %v4656_v31 = vld [vmem:[#allocation7 + $0x754] sm:$0xf]  ;;  %v4271_v15 = vld [vmem:[#allocation7 + $0x758] sm:$0xf0] }
  0xf3   :  { %2013 = vmatpush.bf16.msra.mxu0 %v5702_v36  ;;  %6690 = vst [vmem:[#allocation208_spill] sm:$0xff] %v5726_v1  ;;  %v4672_v4 = vld [vmem:[#allocation7 + $0x7d4] sm:$0xf]  ;;  %v4335_v49 = vld [vmem:[#allocation7 + $0x7d8] sm:$0xf0]  ;;  %v5748_v40 = vor.u32 %v4656_v31, %v4271_v15  ;;  %v1807_v13 = vpop.f32.mrf.mxu0 }
  0xf4   :  { %2026 = vmatpush.bf16.msra.mxu1 %v5706_v10  ;;  %6693 = vst [vmem:[#allocation211_spill] sm:$0xff] %v5736_v52  ;;  %v4622_v60 = vld [vmem:[#allocation7 + $0x644] sm:$0xf]  ;;  %v1820_v31 = vpop.f32.mrf.mxu1 }
  0xf5   :  { %2039 = vmatpush.bf16.msra.mxu2 %v5708_v51  ;;  %6694 = vst [vmem:[#allocation212_spill] sm:$0xff] %v5742_v55  ;;  %v4638_v41 = vld [vmem:[#allocation7 + $0x6c4] sm:$0xf] }
  0xf6   :  { %2052 = vmatpush.bf16.msra.mxu3 %v5711_v9  ;;  %2014 = vmatmul.bf16.vlgmr.msra.gmra.mxu0 %v5293_v37  ;;  %v5746_v37 = vor.u32 %v4640_v39, %v4207_v54  ;;  %6696 = vst [vmem:[#allocation214_spill] sm:$0xff] %v5748_v40  ;;  %v4670_v23 = vld [vmem:[#allocation7 + $0x7c4] sm:$0xf]  ;;  %v1808_v39 = vadd.f32 %v1807_v13, %v5678_v24  ;;  %v4191_v24 = vld [vmem:[#allocation7 + $0x6b8] sm:$0xf0] }
  0xf7   :  { %2058 = vmatpush.bf16.msrb.mxu0 %v5713_v42  ;;  %2027 = vmatmul.bf16.vlgmr.msra.gmra.mxu1 %v5299_v61  ;;  %v5751_v61 = vor.u32 %v4672_v4, %v4335_v49  ;;  %v4620_v49 = vld [vmem:[#allocation7 + $0x634] sm:$0xf] }
  0xf8   :  { %2071 = vmatpush.bf16.msrb.mxu1 %v5715_v20  ;;  %2040 = vmatmul.bf16.vlgmr.msra.gmra.mxu2 %v5297_v59  ;;  %6695 = vst [vmem:[#allocation213_spill] sm:$0xff] %v5746_v37  ;;  %v4135_v59 = vld [vmem:[#allocation7 + $0x648] sm:$0xf0]  ;;  %v4668_v13 = vld [vmem:[#allocation7 + $0x7b4] sm:$0xf] }
  0xf9   :  { %2084 = vmatpush.bf16.msrb.mxu2 %v5717_v14  ;;  %2053 = vmatmul.bf16.vlgmr.msra.gmra.mxu3 %v5303_v18  ;;  %6697 = vst [vmem:[#allocation215_spill] sm:$0xff] %v5751_v61  ;;  %v4199_v18 = vld [vmem:[#allocation7 + $0x6c8] sm:$0xf0]  ;;  %v5755_v54 = vor.u32 %v4622_v60, %v4135_v59  ;;  %v4652_v60 = vld [vmem:[#allocation7 + $0x734] sm:$0xf] }
  0xfa   :  { %2097 = vmatpush.bf16.msrb.mxu3 %v5720_v22  ;;  %v4654_v22 = vld [vmem:[#allocation7 + $0x744] sm:$0xf]  ;;  %v4327_v14 = vld [vmem:[#allocation7 + $0x7c8] sm:$0xf0]  ;;  %v5759_v15 = vor.u32 %v4638_v41, %v4199_v18  ;;  %v4255_v59 = vld [vmem:[#allocation7 + $0x738] sm:$0xf0] }
  0xfb   :  { %2059 = vmatpush.bf16.msrb.mxu0 %v5726_v1  ;;  %v4263_v1 = vld [vmem:[#allocation7 + $0x748] sm:$0xf0]  ;;  %6698 = vst [vmem:[#allocation216_spill] sm:$0xff] %v5755_v54  ;;  %v4319_v20 = vld [vmem:[#allocation7 + $0x7b8] sm:$0xf0] }
  0xfc   :  { %2072 = vmatpush.bf16.msrb.mxu1 %v5730_v35  ;;  %6699 = vst [vmem:[#allocation217_spill] sm:$0xff] %v5759_v15  ;;  %v5761_v4 = vor.u32 %v4654_v22, %v4263_v1  ;;  %v5764_v35 = vor.u32 %v4670_v23, %v4327_v14  ;;  %v5773_v1 = vor.u32 %v4652_v60, %v4255_v59  ;;  %v4618_v14 = vld [vmem:[#allocation7 + $0x624] sm:$0xf]  ;;  %v4119_v41 = vld [vmem:[#allocation7 + $0x628] sm:$0xf0] }
  0xfd   :  { %2085 = vmatpush.bf16.msrb.mxu2 %v5732_v30  ;;  %v4636_v30 = vld [vmem:[#allocation7 + $0x6b4] sm:$0xf]  ;;  %v4634_v18 = vld [vmem:[#allocation7 + $0x6a4] sm:$0xf]  ;;  %v5776_v23 = vor.u32 %v4668_v13, %v4319_v20 }
  0xfe   :  { %2098 = vmatpush.bf16.msrb.mxu3 %v5736_v52  ;;  %6700 = vst [vmem:[#allocation218_spill] sm:$0xff] %v5761_v4  ;;  %v4127_v52 = vld [vmem:[#allocation7 + $0x638] sm:$0xf0]  ;;  %v5771_v22 = vor.u32 %v4636_v30, %v4191_v24  ;;  %v5779_v30 = vor.u32 %v4618_v14, %v4119_v41  ;;  %v1822_v24 = vpop.f32.mrf.mxu1  ;;  %v4616_v13 = vld [vmem:[#allocation7 + $0x614] sm:$0xf] }
  0xff   :  { %2060 = vmatpush.bf16.msrb.mxu0 %v5742_v55  ;;  %6701 = vst [vmem:[#allocation219_spill] sm:$0xff] %v5764_v35  ;;  %v1821_v55 = vadd.f32 %v1820_v31, %v1808_v39  ;;  %v1833_v39 = vpop.f32.mrf.mxu2  ;;  %v4183_v31 = vld [vmem:[#allocation7 + $0x6a8] sm:$0xf0]  ;;  %v4648_v14 = vld [vmem:[#allocation7 + $0x714] sm:$0xf] }
 0x100   :  { %2073 = vmatpush.bf16.msrb.mxu1 %v5746_v37  ;;  %6703 = vst [vmem:[#allocation221_spill] sm:$0xff] %v5773_v1  ;;  %v4311_v37 = vld [vmem:[#allocation7 + $0x7a8] sm:$0xf0]  ;;  %v5783_v60 = vor.u32 %v4634_v18, %v4183_v31  ;;  %v4239_v41 = vld [vmem:[#allocation7 + $0x718] sm:$0xf0] }
 0x101   :  { %2086 = vmatpush.bf16.msrb.mxu2 %v5748_v40  ;;  %v5767_v40 = vor.u32 %v4620_v49, %v4127_v52  ;;  %6704 = vst [vmem:[#allocation222_spill] sm:$0xff] %v5776_v23  ;;  %v4247_v52 = vld [vmem:[#allocation7 + $0x728] sm:$0xf0]  ;;  %v1834_v49 = vadd.f32 %v1833_v39, %v1821_v55  ;;  %v4111_v55 = vld [vmem:[#allocation7 + $0x618] sm:$0xf0] }
 0x102   :  { %2099 = vmatpush.bf16.msrb.mxu3 %v5751_v61  ;;  %v1846_v61 = vpop.f32.mrf.mxu3  ;;  %6705 = vst [vmem:[#allocation223_spill] sm:$0xff] %v5779_v30  ;;  %v4632_v39 = vld [vmem:[#allocation7 + $0x694] sm:$0xf]  ;;  %v4614_v18 = vld [vmem:[#allocation7 + $0x604] sm:$0xf] }
 0x103   :  { %2061 = vmatpush.bf16.msrb.mxu0 %v5755_v54  ;;  %6702 = vst [vmem:[#allocation220_spill] sm:$0xff] %v5767_v40  ;;  %v4650_v54 = vld [vmem:[#allocation7 + $0x724] sm:$0xf]  ;;  %v1847_v20 = vadd.f32 %v1846_v61, %v1834_v49  ;;  %v4664_v24 = vld [vmem:[#allocation7 + $0x794] sm:$0xf] }
 0x104   :  { %2074 = vmatpush.bf16.msrb.mxu1 %v5759_v15  ;;  %v4666_v15 = vld [vmem:[#allocation7 + $0x7a4] sm:$0xf]  ;;  %6706 = vst [vmem:[#allocation224_spill] sm:$0xff] %v5783_v60  ;;  %v5785_v59 = vor.u32 %v4650_v54, %v4247_v52  ;;  %v5797_v54 = vor.u32 %v4648_v14, %v4239_v41  ;;  %v4167_v52 = vld [vmem:[#allocation7 + $0x688] sm:$0xf0] }
 0x105   :  { %2087 = vmatpush.bf16.msrb.mxu2 %v5761_v4  ;;  %v1809_v4 = vpop.f32.mrf.mxu0  ;;  %v4646_v49 = vld [vmem:[#allocation7 + $0x704] sm:$0xf] }
 0x106   :  { %2100 = vmatpush.bf16.msrb.mxu3 %v5764_v35  ;;  %v5788_v4 = vor.u32 %v4666_v15, %v4311_v37  ;;  %v4303_v35 = vld [vmem:[#allocation7 + $0x798] sm:$0xf0]  ;;  %v4103_v37 = vld [vmem:[#allocation7 + $0x608] sm:$0xf0]  ;;  %v4630_v15 = vld [vmem:[#allocation7 + $0x684] sm:$0xf] }
 0x107   :  { %2062 = vmatpush.bf16.msrb.mxu0 %v5767_v40  ;;  %v4175_v40 = vld [vmem:[#allocation7 + $0x698] sm:$0xf0]  ;;  %v5800_v31 = vor.u32 %v4664_v24, %v4303_v35  ;;  %v6718_v24 = vld [vmem:[#allocation26_spill] sm:$0xff] }
 0x108   :  { %2075 = vmatpush.bf16.msrb.mxu1 %v5771_v22  ;;  %v5795_v61 = vor.u32 %v4632_v39, %v4175_v40  ;;  %v5803_v40 = vor.u32 %v4614_v18, %v4103_v37  ;;  %v5807_v39 = vor.u32 %v4630_v15, %v4167_v52  ;;  %v6719_v18 = vld [vmem:[#allocation27_spill] sm:$0xff]  ;;  %v6720_v37 = vld [vmem:[#allocation28_spill] sm:$0xff]  ;;  %v6721_v15 = vld [vmem:[#allocation29_spill] sm:$0xff] }
 0x109   :  { %2088 = vmatpush.bf16.msrb.mxu2 %v5773_v1  ;;  %v5791_v1 = vor.u32 %v4616_v13, %v4111_v55  ;;  %v1835_v13 = vpop.f32.mrf.mxu2  ;;  %v4662_v55 = vld [vmem:[#allocation7 + $0x784] sm:$0xf] }
 0x10a   :  { %2101 = vmatpush.bf16.msrb.mxu3 %v5776_v23  ;;  %v4295_v23 = vld [vmem:[#allocation7 + $0x788] sm:$0xf0]  ;;  %v6722_v52 = vld [vmem:[#allocation30_spill] sm:$0xff]  ;;  %v411_v13 = vperm.slane %v5543_v48, 1 }
 0x10b   :  { %2063 = vmatpush.bf16.msrb.mxu0 %v5779_v30  ;;  %v4231_v30 = vld [vmem:[#allocation7 + $0x708] sm:$0xf0]  ;;  %v5812_v35 = vor.u32 %v4662_v55, %v4295_v23  ;;  %v6724_v55 = vld [vmem:[#allocation32_spill] sm:$0xff] }
 0x10c   :  { %2076 = vmatpush.bf16.msrb.mxu1 %v5783_v60  ;;  %v1848_v60 = vpop.f32.mrf.mxu3  ;;  %v5809_v14 = vor.u32 %v4646_v49, %v4231_v30  ;;  %v6723_v49 = vld [vmem:[#allocation31_spill] sm:$0xff] }
 0x10d   :  { %2089 = vmatpush.bf16.msrb.mxu2 %v5785_v59  ;;  %v6717_v60 = vld [vmem:[#allocation25_spill] sm:$0xff] }
 0x10e   :  { %2102 = vmatpush.bf16.msrb.mxu3 %v5788_v4 }
 0x10f   :  { %2064 = vmatpush.bf16.msrb.mxu0 %v5791_v1 }
 0x110   :  { %2077 = vmatpush.bf16.msrb.mxu1 %v5795_v61 }
 0x111   :  { %2090 = vmatpush.bf16.msrb.mxu2 %v5797_v54 }
 0x112   :  { %2103 = vmatpush.bf16.msrb.mxu3 %v5800_v31 }
 0x113   :  { %2065 = vmatpush.bf16.msrb.mxu0 %v5803_v40 }
 0x114   :  { %2078 = vmatpush.bf16.msrb.mxu1 %v5807_v39 }
 0x115   :  { %2091 = vmatpush.bf16.msrb.mxu2 %v5809_v14 }
 0x116   :  { %2104 = vmatpush.bf16.msrb.mxu3 %v5812_v35  ;;  %2066 = vmatmul.bf16.vlgmr.msrb.gmra.mxu0 %v5401_v32  ;;  %v123_v32 = vld [vmem:[#allocation5 + $0x18] sm:$0xff] }
 0x117   :  { %2110 = vmatpush.bf16.msra.mxu0 %v4976_v3  ;;  %2079 = vmatmul.bf16.vlgmr.msrb.gmra.mxu1 %v5407_v2  ;;  %v1859_v3 = vpop.f32.mrf.mxu0  ;;  %v6714_v2 = vld [vmem:[#allocation22_spill] sm:$0xff]  ;;  %v5859_v30 = vpack.c.bf16 %v123_v32, %v123_v32  ;;  %v6735_v32 = vld [vmem:[#allocation43_spill] sm:$0xff] }
 0x118   :  { %2123 = vmatpush.bf16.msra.mxu1 %v4978_v7  ;;  %2092 = vmatmul.bf16.vlgmr.msrb.gmra.mxu2 %v5405_v43  ;;  %v1860_v7 = vadd.f32 %v1859_v3, %v1847_v20  ;;  %v6713_v43 = vld [vmem:[#allocation21_spill] sm:$0xff]  ;;  %v6716_v20 = vld [vmem:[#allocation24_spill] sm:$0xff] }
 0x119   :  { %2136 = vmatpush.bf16.msra.mxu2 %v4980_v8  ;;  %2105 = vmatmul.bf16.vlgmr.msrb.gmra.mxu3 %v5411_v53  ;;  %v1872_v8 = vpop.f32.mrf.mxu1  ;;  %v6715_v53 = vld [vmem:[#allocation23_spill] sm:$0xff]  ;;  %v6725_v3 = vld [vmem:[#allocation33_spill] sm:$0xff] }
 0x11a   :  { %2149 = vmatpush.bf16.msra.mxu3 %v4983_v12  ;;  %v1873_v12 = vadd.f32 %v1872_v8, %v1860_v7  ;;  %v6726_v8 = vld [vmem:[#allocation34_spill] sm:$0xff] }
 0x11b   :  { %2111 = vmatpush.bf16.msra.mxu0 %v4987_v16  ;;  %v1885_v16 = vpop.f32.mrf.mxu2 }
 0x11c   :  { %2124 = vmatpush.bf16.msra.mxu1 %v4989_v17  ;;  %v1886_v17 = vadd.f32 %v1885_v16, %v1873_v12  ;;  %v6727_v12 = vld [vmem:[#allocation35_spill] sm:$0xff] }
 0x11d   :  { %2137 = vmatpush.bf16.msra.mxu2 %v4992_v21  ;;  %v1898_v21 = vpop.f32.mrf.mxu3 }
 0x11e   :  { %2150 = vmatpush.bf16.msra.mxu3 %v4994_v25 }
 0x11f   :  { %2112 = vmatpush.bf16.msra.mxu0 %v4997_v29  ;;  %v1861_v25 = vpop.f32.mrf.mxu0 }
 0x120   :  { %2125 = vmatpush.bf16.msra.mxu1 %v5001_v33  ;;  %v5841_v33 = vadd.f32 %v1898_v21, %v1886_v17  ;;  %v6728_v21 = vld [vmem:[#allocation36_spill] sm:$0xff] }
 0x121   :  { %2138 = vmatpush.bf16.msra.mxu2 %v5003_v34  ;;  %v1874_v29 = vpop.f32.mrf.mxu1  ;;  %v6707_v34 = vld [vmem:[#allocation15_spill] sm:$0xff] }
 0x122   :  { %2151 = vmatpush.bf16.msra.mxu3 %v5006_v38  ;;  %v6708_v38 = vld [vmem:[#allocation16_spill] sm:$0xff]  ;;  %v6729_v29 = vld [vmem:[#allocation37_spill] sm:$0xff] }
 0x123   :  { %2113 = vmatpush.bf16.msra.mxu0 %v5009_v44  ;;  %v1887_v44 = vpop.f32.mrf.mxu2 }
 0x124   :  { %2126 = vmatpush.bf16.msra.mxu1 %v5013_v45 }
 0x125   :  { %2139 = vmatpush.bf16.msra.mxu2 %v5015_v46  ;;  %v1900_v45 = vpop.f32.mrf.mxu3  ;;  %v6709_v46 = vld [vmem:[#allocation17_spill] sm:$0xff] }
 0x126   :  { %2152 = vmatpush.bf16.msra.mxu3 %v5018_v50  ;;  %v6710_v50 = vld [vmem:[#allocation18_spill] sm:$0xff]  ;;  %v6732_v45 = vld [vmem:[#allocation40_spill] sm:$0xff] }
 0x127   :  { %2114 = vmatpush.bf16.msra.mxu0 %v5021_v56  ;;  %v6711_v56 = vld [vmem:[#allocation19_spill] sm:$0xff] }
 0x128   :  { %2127 = vmatpush.bf16.msra.mxu1 %v5025_v57  ;;  %v122_v57 = vld [vmem:[#allocation5 + $0x10] sm:$0xff] }
 0x129   :  { %2140 = vmatpush.bf16.msra.mxu2 %v5027_v58  ;;  %v6712_v58 = vld [vmem:[#allocation20_spill] sm:$0xff] }
 0x12a   :  { %2153 = vmatpush.bf16.msra.mxu3 %v5030_v62  ;;  %v120_v62 = vld [vmem:[#allocation5] sm:$0xff] }
 0x12b   :  { %2115 = vmatpush.bf16.msra.mxu0 %v5033_v5  ;;  %v121_v5 = vld [vmem:[#allocation5 + $0x8] sm:$0xff]  ;;  %v5857_v23 = vpack.c.bf16 %v120_v62, %v120_v62  ;;  %v6734_v62 = vld [vmem:[#allocation42_spill] sm:$0xff] }
 0x12c   :  { %2128 = vmatpush.bf16.msra.mxu1 %v5037_v6  ;;  %v5853_v6 = vpack.c.bf16 %v122_v57, %v122_v57  ;;  %v5863_v41 = vpack.c.bf16 %v121_v5, %v121_v5 }
 0x12d   :  { %2141 = vmatpush.bf16.msra.mxu2 %v6707_v34  ;;  %v6730_v34 = vld [vmem:[#allocation38_spill] sm:$0xff] }
 0x12e   :  { %2154 = vmatpush.bf16.msra.mxu3 %v6708_v38  ;;  %v6731_v38 = vld [vmem:[#allocation39_spill] sm:$0xff] }
 0x12f   :  { %2116 = vmatpush.bf16.msra.mxu0 %v6709_v46 }
 0x130   :  { %2129 = vmatpush.bf16.msra.mxu1 %v6710_v50 }
 0x131   :  { %2142 = vmatpush.bf16.msra.mxu2 %v6711_v56  ;;  %v6733_v56 = vld [vmem:[#allocation41_spill] sm:$0xff] }
 0x132   :  { %2155 = vmatpush.bf16.msra.mxu3 %v6712_v58 }
 0x133   :  { %2117 = vmatpush.bf16.msra.mxu0 %v6713_v43  ;;  %v1911_v7 = vpop.f32.mrf.mxu0  ;;  %v6736_v43 = vld [vmem:[#allocation44_spill] sm:$0xff] }
 0x134   :  { %2130 = vmatpush.bf16.msra.mxu1 %v6714_v2  ;;  %v1912_v16 = vadd.f32 %v1911_v7, %v411_v13  ;;  %v1924_v17 = vpop.f32.mrf.mxu1  ;;  %v6737_v2 = vld [vmem:[#allocation45_spill] sm:$0xff] }
 0x135   :  { %2143 = vmatpush.bf16.msra.mxu2 %v6715_v53  ;;  %v6738_v53 = vld [vmem:[#allocation46_spill] sm:$0xff]  ;;  %v127_v7 = vld [vmem:[#allocation5 + $0x38] sm:$0xff] }
 0x136   :  { %2156 = vmatpush.bf16.msra.mxu3 %v6716_v20  ;;  %2118 = vmatmul.bf16.vlgmr.msra.gmra.mxu0 %v5857_v23  ;;  %v1925_v25 = vadd.f32 %v1924_v17, %v1912_v16  ;;  %v6739_v20 = vld [vmem:[#allocation47_spill] sm:$0xff]  ;;  %v6746_v17 = vld [vmem:[#allocation54_spill] sm:$0xff] }
 0x137   :  { %2162 = vmatpush.bf16.msrb.mxu0 %v6717_v60  ;;  %2131 = vmatmul.bf16.vlgmr.msra.gmra.mxu1 %v5863_v41 }
 0x138   :  { %2175 = vmatpush.bf16.msrb.mxu1 %v6718_v24  ;;  %2144 = vmatmul.bf16.vlgmr.msra.gmra.mxu2 %v5853_v6  ;;  %v6740_v24 = vld [vmem:[#allocation48_spill] sm:$0xff] }
 0x139   :  { %2188 = vmatpush.bf16.msrb.mxu2 %v6719_v18  ;;  %2157 = vmatmul.bf16.vlgmr.msra.gmra.mxu3 %v5859_v30 }
 0x13a   :  { %2201 = vmatpush.bf16.msrb.mxu3 %v6720_v37  ;;  %v6741_v37 = vld [vmem:[#allocation49_spill] sm:$0xff] }
 0x13b   :  { %2163 = vmatpush.bf16.msrb.mxu0 %v6721_v15  ;;  %v1937_v44 = vpop.f32.mrf.mxu2  ;;  %v1913_v58 = vpop.f32.mrf.mxu0  ;;  %v6742_v15 = vld [vmem:[#allocation50_spill] sm:$0xff] }
 0x13c   :  { %2176 = vmatpush.bf16.msrb.mxu1 %v6722_v52  ;;  %v1938_v46 = vadd.f32 %v1937_v44, %v1925_v25  ;;  %v1950_v50 = vpop.f32.mrf.mxu3  ;;  %v1926_v5 = vpop.f32.mrf.mxu1  ;;  %v6743_v52 = vld [vmem:[#allocation51_spill] sm:$0xff]  ;;  %v6754_v58 = vld [vmem:[#allocation62_spill] sm:$0xff] }
 0x13d   :  { %2189 = vmatpush.bf16.msrb.mxu2 %v6723_v49  ;;  %v126_v49 = vld [vmem:[#allocation5 + $0x30] sm:$0xff]  ;;  %v6757_v5 = vld [vmem:[#allocation65_spill] sm:$0xff] }
 0x13e   :  { %2202 = vmatpush.bf16.msrb.mxu3 %v6724_v55  ;;  %v5888_v57 = vadd.f32 %v1950_v50, %v1938_v46  ;;  %v6744_v55 = vld [vmem:[#allocation52_spill] sm:$0xff]  ;;  %v5902_v16 = vpack.c.bf16 %v126_v49, %v126_v49  ;;  %v6751_v46 = vld [vmem:[#allocation59_spill] sm:$0xff] }
 0x13f   :  { %2164 = vmatpush.bf16.msrb.mxu0 %v6725_v3  ;;  %v124_v3 = vld [vmem:[#allocation5 + $0x20] sm:$0xff]  ;;  %v6752_v50 = vld [vmem:[#allocation60_spill] sm:$0xff] }
 0x140   :  { %2177 = vmatpush.bf16.msrb.mxu1 %v6726_v8  ;;  %v125_v8 = vld [vmem:[#allocation5 + $0x28] sm:$0xff]  ;;  %v5906_v25 = vpack.c.bf16 %v124_v3, %v124_v3 }
 0x141   :  { %2190 = vmatpush.bf16.msrb.mxu2 %v6727_v12  ;;  %v6745_v12 = vld [vmem:[#allocation53_spill] sm:$0xff]  ;;  %v5912_v44 = vpack.c.bf16 %v125_v8, %v125_v8  ;;  %v6767_v8 = vld [vmem:[#allocation75_spill] sm:$0xff] }
 0x142   :  { %2203 = vmatpush.bf16.msrb.mxu3 %v6728_v21  ;;  %v6747_v21 = vld [vmem:[#allocation55_spill] sm:$0xff] }
 0x143   :  { %2165 = vmatpush.bf16.msrb.mxu0 %v6729_v29  ;;  %v1939_v60 = vpop.f32.mrf.mxu2  ;;  %v5908_v29 = vpack.c.bf16 %v127_v7, %v127_v7  ;;  %v6766_v7 = vld [vmem:[#allocation74_spill] sm:$0xff] }
 0x144   :  { %2178 = vmatpush.bf16.msrb.mxu1 %v6730_v34  ;;  %v1952_v18 = vpop.f32.mrf.mxu3  ;;  %v6748_v34 = vld [vmem:[#allocation56_spill] sm:$0xff] }
 0x145   :  { %2191 = vmatpush.bf16.msrb.mxu2 %v6731_v38  ;;  %v6749_v38 = vld [vmem:[#allocation57_spill] sm:$0xff]  ;;  %v6760_v60 = vld [vmem:[#allocation68_spill] sm:$0xff]  ;;  %v6762_v18 = vld [vmem:[#allocation70_spill] sm:$0xff] }
 0x146   :  { %2204 = vmatpush.bf16.msrb.mxu3 %v6732_v45  ;;  %v6750_v45 = vld [vmem:[#allocation58_spill] sm:$0xff] }
 0x147   :  { %2166 = vmatpush.bf16.msrb.mxu0 %v6733_v56  ;;  %v6753_v56 = vld [vmem:[#allocation61_spill] sm:$0xff] }
 0x148   :  { %2179 = vmatpush.bf16.msrb.mxu1 %v6734_v62  ;;  %v6755_v62 = vld [vmem:[#allocation63_spill] sm:$0xff] }
 0x149   :  { %2192 = vmatpush.bf16.msrb.mxu2 %v6735_v32  ;;  %v6756_v32 = vld [vmem:[#allocation64_spill] sm:$0xff] }
 0x14a   :  { %2205 = vmatpush.bf16.msrb.mxu3 %v6736_v43 }
 0x14b   :  { %2167 = vmatpush.bf16.msrb.mxu0 %v6737_v2  ;;  %v6758_v2 = vld [vmem:[#allocation66_spill] sm:$0xff] }
 0x14c   :  { %2180 = vmatpush.bf16.msrb.mxu1 %v6738_v53  ;;  %v6759_v53 = vld [vmem:[#allocation67_spill] sm:$0xff] }
 0x14d   :  { %2193 = vmatpush.bf16.msrb.mxu2 %v6739_v20 }
 0x14e   :  { %2206 = vmatpush.bf16.msrb.mxu3 %v6740_v24  ;;  %v6761_v24 = vld [vmem:[#allocation69_spill] sm:$0xff] }
 0x14f   :  { %2168 = vmatpush.bf16.msrb.mxu0 %v6741_v37  ;;  %v6763_v37 = vld [vmem:[#allocation71_spill] sm:$0xff] }
 0x150   :  { %2181 = vmatpush.bf16.msrb.mxu1 %v6742_v15 }
 0x151   :  { %2194 = vmatpush.bf16.msrb.mxu2 %v6743_v52  ;;  %v6764_v52 = vld [vmem:[#allocation72_spill] sm:$0xff] }
 0x152   :  { %2207 = vmatpush.bf16.msrb.mxu3 %v6744_v55  ;;  %v6765_v55 = vld [vmem:[#allocation73_spill] sm:$0xff] }
 0x153   :  { %2169 = vmatpush.bf16.msrb.mxu0 %v6745_v12  ;;  %v1963_v43 = vpop.f32.mrf.mxu0 }
 0x154   :  { %2182 = vmatpush.bf16.msrb.mxu1 %v6746_v17  ;;  %v1976_v20 = vpop.f32.mrf.mxu1  ;;  %v6768_v17 = vld [vmem:[#allocation76_spill] sm:$0xff] }
 0x155   :  { %2195 = vmatpush.bf16.msrb.mxu2 %v6747_v21  ;;  %v6769_v21 = vld [vmem:[#allocation77_spill] sm:$0xff] }
 0x156   :  { %2208 = vmatpush.bf16.msrb.mxu3 %v6748_v34  ;;  %2170 = vmatmul.bf16.vlgmr.msrb.gmra.mxu0 %v5906_v25  ;;  %v6770_v34 = vld [vmem:[#allocation78_spill] sm:$0xff] }
 0x157   :  { %2214 = vmatpush.bf16.msra.mxu0 %v6749_v38  ;;  %2183 = vmatmul.bf16.vlgmr.msrb.gmra.mxu1 %v5912_v44  ;;  %v6771_v38 = vld [vmem:[#allocation79_spill] sm:$0xff] }
 0x158   :  { %2227 = vmatpush.bf16.msra.mxu1 %v6750_v45  ;;  %2196 = vmatmul.bf16.vlgmr.msrb.gmra.mxu2 %v5902_v16 }
 0x159   :  { %2240 = vmatpush.bf16.msra.mxu2 %v6751_v46  ;;  %2209 = vmatmul.bf16.vlgmr.msrb.gmra.mxu3 %v5908_v29  ;;  %v6772_v46 = vld [vmem:[#allocation80_spill] sm:$0xff] }
 0x15a   :  { %2253 = vmatpush.bf16.msra.mxu3 %v6752_v50 }
 0x15b   :  { %2215 = vmatpush.bf16.msra.mxu0 %v6753_v56  ;;  %v5932_v15 = vpop.f32.mrf.mxu2  ;;  %v1965_v3 = vpop.f32.mrf.mxu0  ;;  %v6773_v56 = vld [vmem:[#allocation81_spill] sm:$0xff] }
 0x15c   :  { %2228 = vmatpush.bf16.msra.mxu1 %v6754_v58  ;;  %v5935_v49 = vpop.f32.mrf.mxu3  ;;  %v1978_v12 = vpop.f32.mrf.mxu1  ;;  %v6774_v58 = vld [vmem:[#allocation82_spill] sm:$0xff] }
 0x15d   :  { %2241 = vmatpush.bf16.msra.mxu2 %v6755_v62  ;;  %v6775_v62 = vld [vmem:[#allocation83_spill] sm:$0xff] }
 0x15e   :  { %2254 = vmatpush.bf16.msra.mxu3 %v6756_v32  ;;  %v128_v32 = vld [vmem:[#allocation5 + $0x40] sm:$0xff] }
 0x15f   :  { %2216 = vmatpush.bf16.msra.mxu0 %v6757_v5  ;;  %v6776_v5 = vld [vmem:[#allocation84_spill] sm:$0xff] }
 0x160   :  { %2229 = vmatpush.bf16.msra.mxu1 %v6758_v2  ;;  %v130_v2 = vld [vmem:[#allocation5 + $0x50] sm:$0xff] }
 0x161   :  { %2242 = vmatpush.bf16.msra.mxu2 %v6759_v53  ;;  %v129_v53 = vld [vmem:[#allocation5 + $0x48] sm:$0xff] }
 0x162   :  { %2255 = vmatpush.bf16.msra.mxu3 %v6760_v60  ;;  %v131_v60 = vld [vmem:[#allocation5 + $0x58] sm:$0xff]  ;;  %v5956_v3 = vpack.c.bf16 %v129_v53, %v129_v53  ;;  %v1964_v53 = vadd.f32 %v1963_v43, %v5888_v57  ;;  %v6800_v57 = vld [vmem:[#allocation108_spill] sm:$0xff] }
 0x163   :  { %2217 = vmatpush.bf16.msra.mxu0 %v6761_v24  ;;  %v1991_v45 = vpop.f32.mrf.mxu2  ;;  %v6777_v24 = vld [vmem:[#allocation85_spill] sm:$0xff]  ;;  %v5960_v12 = vpack.c.bf16 %v131_v60, %v131_v60 }
 0x164   :  { %2230 = vmatpush.bf16.msra.mxu1 %v6762_v18  ;;  %v2004_v50 = vpop.f32.mrf.mxu3  ;;  %v5950_v18 = vpack.c.bf16 %v128_v32, %v128_v32  ;;  %v6786_v45 = vld [vmem:[#allocation94_spill] sm:$0xff]  ;;  %v6793_v60 = vld [vmem:[#allocation101_spill] sm:$0xff] }
 0x165   :  { %2243 = vmatpush.bf16.msra.mxu2 %v6763_v37  ;;  %v6778_v37 = vld [vmem:[#allocation86_spill] sm:$0xff]  ;;  %v6788_v50 = vld [vmem:[#allocation96_spill] sm:$0xff] }
 0x166   :  { %2256 = vmatpush.bf16.msra.mxu3 %v6764_v52  ;;  %v6779_v52 = vld [vmem:[#allocation87_spill] sm:$0xff]  ;;  %v6790_v32 = vld [vmem:[#allocation98_spill] sm:$0xff] }
 0x167   :  { %2218 = vmatpush.bf16.msra.mxu0 %v6765_v55  ;;  %v5954_v55 = vpack.c.bf16 %v130_v2, %v130_v2  ;;  %v6792_v2 = vld [vmem:[#allocation100_spill] sm:$0xff] }
 0x168   :  { %2231 = vmatpush.bf16.msra.mxu1 %v6766_v7  ;;  %v6780_v7 = vld [vmem:[#allocation88_spill] sm:$0xff] }
 0x169   :  { %2244 = vmatpush.bf16.msra.mxu2 %v6767_v8  ;;  %v6781_v8 = vld [vmem:[#allocation89_spill] sm:$0xff] }
 0x16a   :  { %2257 = vmatpush.bf16.msra.mxu3 %v6768_v17  ;;  %v6782_v17 = vld [vmem:[#allocation90_spill] sm:$0xff] }
 0x16b   :  { %2219 = vmatpush.bf16.msra.mxu0 %v6769_v21  ;;  %v6783_v21 = vld [vmem:[#allocation91_spill] sm:$0xff] }
 0x16c   :  { %2232 = vmatpush.bf16.msra.mxu1 %v6770_v34  ;;  %v6784_v34 = vld [vmem:[#allocation92_spill] sm:$0xff] }
 0x16d   :  { %2245 = vmatpush.bf16.msra.mxu2 %v6771_v38  ;;  %v6785_v38 = vld [vmem:[#allocation93_spill] sm:$0xff] }
 0x16e   :  { %2258 = vmatpush.bf16.msra.mxu3 %v6772_v46  ;;  %v6787_v46 = vld [vmem:[#allocation95_spill] sm:$0xff] }
 0x16f   :  { %2220 = vmatpush.bf16.msra.mxu0 %v6773_v56 }
 0x170   :  { %2233 = vmatpush.bf16.msra.mxu1 %v6774_v58  ;;  %v6789_v58 = vld [vmem:[#allocation97_spill] sm:$0xff] }
 0x171   :  { %2246 = vmatpush.bf16.msra.mxu2 %v6775_v62 }
 0x172   :  { %2259 = vmatpush.bf16.msra.mxu3 %v6776_v5  ;;  %v6791_v5 = vld [vmem:[#allocation99_spill] sm:$0xff] }
 0x173   :  { %2221 = vmatpush.bf16.msra.mxu0 %v6777_v24  ;;  %v2015_v56 = vpop.f32.mrf.mxu0  ;;  %v6794_v24 = vld [vmem:[#allocation102_spill] sm:$0xff] }
 0x174   :  { %2234 = vmatpush.bf16.msra.mxu1 %v6778_v37  ;;  %v2028_v62 = vpop.f32.mrf.mxu1  ;;  %v6795_v37 = vld [vmem:[#allocation103_spill] sm:$0xff] }
 0x175   :  { %2247 = vmatpush.bf16.msra.mxu2 %v6779_v52  ;;  %v6796_v52 = vld [vmem:[#allocation104_spill] sm:$0xff] }
 0x176   :  { %2260 = vmatpush.bf16.msra.mxu3 %v6780_v7  ;;  %2222 = vmatmul.bf16.vlgmr.msra.gmra.mxu0 %v5950_v18 }
 0x177   :  { %2266 = vmatpush.bf16.msrb.mxu0 %v6781_v8  ;;  %2235 = vmatmul.bf16.vlgmr.msra.gmra.mxu1 %v5956_v3 }
 0x178   :  { %2279 = vmatpush.bf16.msrb.mxu1 %v6782_v17  ;;  %2248 = vmatmul.bf16.vlgmr.msra.gmra.mxu2 %v5954_v55 }
 0x179   :  { %2292 = vmatpush.bf16.msrb.mxu2 %v6783_v21  ;;  %2261 = vmatmul.bf16.vlgmr.msra.gmra.mxu3 %v5960_v12  ;;  %v1977_v21 = vadd.f32 %v1976_v20, %v1964_v53 }
 0x17a   :  { %2305 = vmatpush.bf16.msrb.mxu3 %v6784_v34  ;;  %v6797_v34 = vld [vmem:[#allocation105_spill] sm:$0xff] }
 0x17b   :  { %2267 = vmatpush.bf16.msrb.mxu0 %v6785_v38  ;;  %v2041_v7 = vpop.f32.mrf.mxu2  ;;  %v2017_v17 = vpop.f32.mrf.mxu0  ;;  %v1990_v43 = vadd.f32 %v5932_v15, %v1977_v21  ;;  %v134_v21 = vld [vmem:[#allocation5 + $0x70] sm:$0xff] }
 0x17c   :  { %2280 = vmatpush.bf16.msrb.mxu1 %v6786_v45  ;;  %v2054_v8 = vpop.f32.mrf.mxu3  ;;  %v2030_v38 = vpop.f32.mrf.mxu1  ;;  %v6798_v45 = vld [vmem:[#allocation106_spill] sm:$0xff]  ;;  %v6808_v17 = vld [vmem:[#allocation116_spill] sm:$0xff] }
 0x17d   :  { %2293 = vmatpush.bf16.msrb.mxu2 %v6787_v46  ;;  %v6799_v46 = vld [vmem:[#allocation107_spill] sm:$0xff]  ;;  %v2003_v53 = vadd.f32 %v5935_v49, %v1990_v43  ;;  %v135_v38 = vld [vmem:[#allocation5 + $0x78] sm:$0xff]  ;;  %v6001_v43 = vpack.c.bf16 %v134_v21, %v134_v21 }
 0x17e   :  { %2306 = vmatpush.bf16.msrb.mxu3 %v6788_v50  ;;  %v6801_v50 = vld [vmem:[#allocation109_spill] sm:$0xff]  ;;  %v6811_v49 = vld [vmem:[#allocation119_spill] sm:$0xff] }
 0x17f   :  { %2268 = vmatpush.bf16.msrb.mxu0 %v6789_v58  ;;  %v6802_v58 = vld [vmem:[#allocation110_spill] sm:$0xff]  ;;  %v2016_v15 = vadd.f32 %v2015_v56, %v2003_v53  ;;  %v6813_v56 = vld [vmem:[#allocation121_spill] sm:$0xff] }
 0x180   :  { %2281 = vmatpush.bf16.msrb.mxu1 %v6790_v32  ;;  %v6803_v32 = vld [vmem:[#allocation111_spill] sm:$0xff] }
 0x181   :  { %2294 = vmatpush.bf16.msrb.mxu2 %v6791_v5  ;;  %v6804_v5 = vld [vmem:[#allocation112_spill] sm:$0xff] }
 0x182   :  { %2307 = vmatpush.bf16.msrb.mxu3 %v6792_v2 }
 0x183   :  { %2269 = vmatpush.bf16.msrb.mxu0 %v6793_v60  ;;  %v2043_v20 = vpop.f32.mrf.mxu2  ;;  %v6805_v60 = vld [vmem:[#allocation113_spill] sm:$0xff] }
 0x184   :  { %2282 = vmatpush.bf16.msrb.mxu1 %v6794_v24  ;;  %v2056_v2 = vpop.f32.mrf.mxu3  ;;  %v6806_v24 = vld [vmem:[#allocation114_spill] sm:$0xff] }
 0x185   :  { %2295 = vmatpush.bf16.msrb.mxu2 %v6795_v37  ;;  %v6807_v37 = vld [vmem:[#allocation115_spill] sm:$0xff]  ;;  %v6814_v20 = vld [vmem:[#allocation122_spill] sm:$0xff] }
 0x186   :  { %2308 = vmatpush.bf16.msrb.mxu3 %v6796_v52  ;;  %v132_v52 = vld [vmem:[#allocation5 + $0x60] sm:$0xff]  ;;  %v6815_v2 = vld [vmem:[#allocation123_spill] sm:$0xff] }
 0x187   :  { %2270 = vmatpush.bf16.msrb.mxu0 %v6797_v34  ;;  %v133_v34 = vld [vmem:[#allocation5 + $0x68] sm:$0xff] }
 0x188   :  { %2283 = vmatpush.bf16.msrb.mxu1 %v6798_v45  ;;  %v6809_v45 = vld [vmem:[#allocation117_spill] sm:$0xff] }
 0x189   :  { %2296 = vmatpush.bf16.msrb.mxu2 %v6799_v46  ;;  %v5997_v46 = vpack.c.bf16 %v132_v52, %v132_v52 }
 0x18a   :  { %2309 = vmatpush.bf16.msrb.mxu3 %v6800_v57  ;;  %v6810_v57 = vld [vmem:[#allocation118_spill] sm:$0xff] }
 0x18b   :  { %2271 = vmatpush.bf16.msrb.mxu0 %v6801_v50  ;;  %v6003_v50 = vpack.c.bf16 %v133_v34, %v133_v34 }
 0x18c   :  { %2284 = vmatpush.bf16.msrb.mxu1 %v6802_v58  ;;  %v2029_v58 = vadd.f32 %v2028_v62, %v2016_v15  ;;  %v6817_v62 = vld [vmem:[#allocation125_spill] sm:$0xff]  ;;  %v6820_v15 = vld [vmem:[#allocation128_spill] sm:$0xff] }
 0x18d   :  { %2297 = vmatpush.bf16.msrb.mxu2 %v6803_v32  ;;  %v6812_v32 = vld [vmem:[#allocation120_spill] sm:$0xff] }
 0x18e   :  { %2310 = vmatpush.bf16.msrb.mxu3 %v6804_v5  ;;  %v6007_v5 = vpack.c.bf16 %v135_v38, %v135_v38  ;;  %v2042_v53 = vadd.f32 %v2041_v7, %v2029_v58  ;;  %v6822_v38 = vld [vmem:[#allocation130_spill] sm:$0xff]  ;;  %v6825_v58 = vld [vmem:[#allocation133_spill] sm:$0xff] }
 0x18f   :  { %2272 = vmatpush.bf16.msrb.mxu0 %v6805_v60  ;;  %v6816_v60 = vld [vmem:[#allocation124_spill] sm:$0xff] }
 0x190   :  { %2285 = vmatpush.bf16.msrb.mxu1 %v6806_v24  ;;  %v6818_v24 = vld [vmem:[#allocation126_spill] sm:$0xff]  ;;  %v2055_v52 = vadd.f32 %v2054_v8, %v2042_v53  ;;  %v6828_v8 = vld [vmem:[#allocation136_spill] sm:$0xff] }
 0x191   :  { %2298 = vmatpush.bf16.msrb.mxu2 %v6807_v37  ;;  %v6819_v37 = vld [vmem:[#allocation127_spill] sm:$0xff] }
 0x192   :  { %2311 = vmatpush.bf16.msrb.mxu3 %v6808_v17  ;;  %v6821_v17 = vld [vmem:[#allocation129_spill] sm:$0xff] }
 0x193   :  { %2273 = vmatpush.bf16.msrb.mxu0 %v6809_v45  ;;  %v2067_v7 = vpop.f32.mrf.mxu0  ;;  %v6823_v45 = vld [vmem:[#allocation131_spill] sm:$0xff] }
 0x194   :  { %2286 = vmatpush.bf16.msrb.mxu1 %v6810_v57  ;;  %v2068_v21 = vadd.f32 %v2067_v7, %v2055_v52  ;;  %v2080_v34 = vpop.f32.mrf.mxu1  ;;  %v6824_v57 = vld [vmem:[#allocation132_spill] sm:$0xff]  ;;  %v6831_v52 = vld [vmem:[#allocation139_spill] sm:$0xff] }
 0x195   :  { %2299 = vmatpush.bf16.msrb.mxu2 %v6811_v49  ;;  %v6832_v7 = vld [vmem:[#allocation140_spill] sm:$0xff] }
 0x196   :  { %2312 = vmatpush.bf16.msrb.mxu3 %v6812_v32  ;;  %2274 = vmatmul.bf16.vlgmr.msrb.gmra.mxu0 %v5997_v46  ;;  %v2081_v49 = vadd.f32 %v2080_v34, %v2068_v21  ;;  %v6826_v32 = vld [vmem:[#allocation134_spill] sm:$0xff]  ;;  %v6835_v34 = vld [vmem:[#allocation143_spill] sm:$0xff] }
 0x197   :  { %2318 = vmatpush.bf16.msra.mxu0 %v6813_v56  ;;  %2287 = vmatmul.bf16.vlgmr.msrb.gmra.mxu1 %v6003_v50  ;;  %v6827_v56 = vld [vmem:[#allocation135_spill] sm:$0xff]  ;;  %v6834_v21 = vld [vmem:[#allocation142_spill] sm:$0xff] }
 0x198   :  { %2331 = vmatpush.bf16.msra.mxu1 %v6814_v20  ;;  %2300 = vmatmul.bf16.vlgmr.msrb.gmra.mxu2 %v6001_v43 }
 0x199   :  { %2344 = vmatpush.bf16.msra.mxu2 %v6815_v2  ;;  %2313 = vmatmul.bf16.vlgmr.msrb.gmra.mxu3 %v6007_v5 }
 0x19a   :  { %2357 = vmatpush.bf16.msra.mxu3 %v6816_v60 }
 0x19b   :  { %2319 = vmatpush.bf16.msra.mxu0 %v6817_v62  ;;  %v2093_v20 = vpop.f32.mrf.mxu2  ;;  %v2069_v60 = vpop.f32.mrf.mxu0  ;;  %v6829_v62 = vld [vmem:[#allocation137_spill] sm:$0xff] }
 0x19c   :  { %2332 = vmatpush.bf16.msra.mxu1 %v6818_v24  ;;  %v2094_v2 = vadd.f32 %v2093_v20, %v2081_v49  ;;  %v2106_v53 = vpop.f32.mrf.mxu3  ;;  %v2082_v24 = vpop.f32.mrf.mxu1  ;;  %v6837_v49 = vld [vmem:[#allocation145_spill] sm:$0xff]  ;;  %v6842_v20 = vld [vmem:[#allocation150_spill] sm:$0xff] }
 0x19d   :  { %2345 = vmatpush.bf16.msra.mxu2 %v6819_v37  ;;  %v6830_v37 = vld [vmem:[#allocation138_spill] sm:$0xff]  ;;  %v6845_v60 = vld [vmem:[#allocation153_spill] sm:$0xff] }
 0x19e   :  { %2358 = vmatpush.bf16.msra.mxu3 %v6820_v15  ;;  %v6031_v15 = vadd.f32 %v2106_v53, %v2094_v2  ;;  %v6843_v2 = vld [vmem:[#allocation151_spill] sm:$0xff]  ;;  %v6844_v53 = vld [vmem:[#allocation152_spill] sm:$0xff]  ;;  %v6849_v24 = vld [vmem:[#allocation157_spill] sm:$0xff] }
 0x19f   :  { %2320 = vmatpush.bf16.msra.mxu0 %v6821_v17  ;;  %v6833_v17 = vld [vmem:[#allocation141_spill] sm:$0xff] }
 0x1a0   :  { %2333 = vmatpush.bf16.msra.mxu1 %v6822_v38  ;;  %v6836_v38 = vld [vmem:[#allocation144_spill] sm:$0xff] }
 0x1a1   :  { %2346 = vmatpush.bf16.msra.mxu2 %v6823_v45 }
 0x1a2   :  { %2359 = vmatpush.bf16.msra.mxu3 %v6824_v57 }
 0x1a3   :  { %2321 = vmatpush.bf16.msra.mxu0 %v6825_v58  ;;  %v2095_v45 = vpop.f32.mrf.mxu2  ;;  %v6838_v58 = vld [vmem:[#allocation146_spill] sm:$0xff] }
 0x1a4   :  { %2334 = vmatpush.bf16.msra.mxu1 %v6826_v32  ;;  %v2108_v57 = vpop.f32.mrf.mxu3  ;;  %v6839_v32 = vld [vmem:[#allocation147_spill] sm:$0xff]  ;;  %v6857_v45 = vld [vmem:[#allocation164_spill] sm:$0xff] }
 0x1a5   :  { %2347 = vmatpush.bf16.msra.mxu2 %v6827_v56  ;;  %v6840_v56 = vld [vmem:[#allocation148_spill] sm:$0xff]  ;;  %v6858_v57 = vld [vmem:[#allocation165_spill] sm:$0xff] }
 0x1a6   :  { %2360 = vmatpush.bf16.msra.mxu3 %v6828_v8  ;;  %v6841_v8 = vld [vmem:[#allocation149_spill] sm:$0xff] }
 0x1a7   :  { %2322 = vmatpush.bf16.msra.mxu0 %v6829_v62  ;;  %v6846_v62 = vld [vmem:[#allocation154_spill] sm:$0xff] }
 0x1a8   :  { %2335 = vmatpush.bf16.msra.mxu1 %v6830_v37  ;;  %v6850_v37 = vld [vmem:[#allocation158_spill] sm:$0xff] }
 0x1a9   :  { %2348 = vmatpush.bf16.msra.mxu2 %v6831_v52  ;;  %v6851_v52 = vld [vmem:[#allocation159_spill] sm:$0xff] }
 0x1aa   :  { %2361 = vmatpush.bf16.msra.mxu3 %v6832_v7 }
 0x1ab   :  { %2323 = vmatpush.bf16.msra.mxu0 %v6833_v17  ;;  %v6852_v17 = vld [vmem:[#allocation160_spill] sm:$0xff] }
 0x1ac   :  { %2336 = vmatpush.bf16.msra.mxu1 %v6834_v21 }
 0x1ad   :  { %2349 = vmatpush.bf16.msra.mxu2 %v6835_v34  ;;  %v6855_v34 = vld [vmem:[#allocation162_spill] sm:$0xff] }
 0x1ae   :  { %2362 = vmatpush.bf16.msra.mxu3 %v6836_v38  ;;  %v6856_v38 = vld [vmem:[#allocation163_spill] sm:$0xff] }
 0x1af   :  { %2324 = vmatpush.bf16.msra.mxu0 %v6837_v49 }
 0x1b0   :  { %2337 = vmatpush.bf16.msra.mxu1 %v6838_v58  ;;  %v6859_v58 = vld [vmem:[#allocation166_spill] sm:$0xff] }
 0x1b1   :  { %2350 = vmatpush.bf16.msra.mxu2 %v5483_v11  ;;  %v6848_v11 = vld [vmem:[#allocation156_spill] sm:$0xff] }
 0x1b2   :  { %2363 = vmatpush.bf16.msra.mxu3 %v5486_v26  ;;  %v6847_v26 = vld [vmem:[#allocation155_spill] sm:$0xff] }
 0x1b3   :  { %2325 = vmatpush.bf16.msra.mxu0 %v6839_v32  ;;  %v2119_v7 = vpop.f32.mrf.mxu0 }
 0x1b4   :  { %2338 = vmatpush.bf16.msra.mxu1 %v6840_v56  ;;  %v2132_v21 = vpop.f32.mrf.mxu1 }
 0x1b5   :  { %2351 = vmatpush.bf16.msra.mxu2 %v6841_v8  ;;  %v6860_v8 = vld [vmem:[#allocation167_spill] sm:$0xff] }
 0x1b6   :  { %2364 = vmatpush.bf16.msra.mxu3 %v6842_v20  ;;  %2326 = vmatmul.bf16.vlgmr.msra.gmra.mxu0 %v5857_v23  ;;  %v6854_v23 = vperm.slane %v5543_v48, 0 }
 0x1b7   :  { %2370 = vmatpush.bf16.msrb.mxu0 %v6843_v2  ;;  %2339 = vmatmul.bf16.vlgmr.msra.gmra.mxu1 %v5863_v41 }
 0x1b8   :  { %2383 = vmatpush.bf16.msrb.mxu1 %v6844_v53  ;;  %2352 = vmatmul.bf16.vlgmr.msra.gmra.mxu2 %v5853_v6  ;;  %v6853_v6 = vld [vmem:[#allocation161_spill] sm:$0xff]  ;;  %v6861_v53 = vld [vmem:[#allocation168_spill] sm:$0xff] }
 0x1b9   :  { %2396 = vmatpush.bf16.msrb.mxu2 %v6845_v60  ;;  %2365 = vmatmul.bf16.vlgmr.msra.gmra.mxu3 %v5859_v30  ;;  %v2120_v30 = vadd.f32 %v2119_v7, %v6854_v23  ;;  %v6862_v60 = vld [vmem:[#allocation169_spill] sm:$0xff]  ;;  %v6867_v7 = vld [vmem:[#allocation174_spill] sm:$0xff]  ;;  %v6869_v23 = vld [vmem:[#allocation176_spill] sm:$0xff] }
 0x1ba   :  { %2409 = vmatpush.bf16.msrb.mxu3 %v6846_v62 }
 0x1bb   :  { %2371 = vmatpush.bf16.msrb.mxu0 %v6847_v26  ;;  %v2133_v41 = vadd.f32 %v2132_v21, %v2120_v30  ;;  %v2145_v49 = vpop.f32.mrf.mxu2  ;;  %v2121_v2 = vpop.f32.mrf.mxu0  ;;  %v6863_v26 = vld [vmem:[#allocation170_spill] sm:$0xff]  ;;  %v6870_v30 = vld [vmem:[#allocation177_spill] sm:$0xff] }
 0x1bc   :  { %2384 = vmatpush.bf16.msrb.mxu1 %v6848_v11  ;;  %v2158_v56 = vpop.f32.mrf.mxu3  ;;  %v2134_v62 = vpop.f32.mrf.mxu1  ;;  %v6864_v11 = vld [vmem:[#allocation171_spill] sm:$0xff]  ;;  %v6871_v21 = vld [vmem:[#allocation178_spill] sm:$0xff] }
 0x1bd   :  { %2397 = vmatpush.bf16.msrb.mxu2 %v6849_v24  ;;  %v2146_v32 = vadd.f32 %v2145_v49, %v2133_v41  ;;  %v6865_v24 = vld [vmem:[#allocation172_spill] sm:$0xff]  ;;  %v6887_v2 = vld [vmem:[#allocation194_spill] sm:$0xff] }
 0x1be   :  { %2410 = vmatpush.bf16.msrb.mxu3 %v6850_v37  ;;  %v6866_v37 = vld [vmem:[#allocation173_spill] sm:$0xff]  ;;  %v6873_v41 = vld [vmem:[#allocation180_spill] sm:$0xff] }
 0x1bf   :  { %2372 = vmatpush.bf16.msrb.mxu0 %v6851_v52  ;;  %v6069_v20 = vadd.f32 %v2158_v56, %v2146_v32  ;;  %v6884_v32 = vld [vmem:[#allocation191_spill] sm:$0xff]  ;;  %v6886_v56 = vld [vmem:[#allocation193_spill] sm:$0xff] }
 0x1c0   :  { %2385 = vmatpush.bf16.msrb.mxu1 %v6852_v17 }
 0x1c1   :  { %2398 = vmatpush.bf16.msrb.mxu2 %v6853_v6  ;;  %v6868_v6 = vld [vmem:[#allocation175_spill] sm:$0xff] }
 0x1c2   :  { %2411 = vmatpush.bf16.msrb.mxu3 %v6855_v34  ;;  %v6872_v34 = vld [vmem:[#allocation179_spill] sm:$0xff] }
 0x1c3   :  { %2373 = vmatpush.bf16.msrb.mxu0 %v6856_v38  ;;  %v2147_v52 = vpop.f32.mrf.mxu2  ;;  %v6874_v38 = vld [vmem:[#allocation181_spill] sm:$0xff] }
 0x1c4   :  { %2386 = vmatpush.bf16.msrb.mxu1 %v6857_v45  ;;  %v2160_v17 = vpop.f32.mrf.mxu3  ;;  %v6875_v45 = vld [vmem:[#allocation182_spill] sm:$0xff]  ;;  %v6892_v52 = vld [vmem:[#allocation199_spill] sm:$0xff] }
 0x1c5   :  { %2399 = vmatpush.bf16.msrb.mxu2 %v6858_v57  ;;  %v6880_v57 = vld [vmem:[#allocation187_spill] sm:$0xff]  ;;  %v6894_v17 = vld [vmem:[#allocation201_spill] sm:$0xff] }
 0x1c6   :  { %2412 = vmatpush.bf16.msrb.mxu3 %v6859_v58  ;;  %v6881_v58 = vld [vmem:[#allocation188_spill] sm:$0xff] }
 0x1c7   :  { %2374 = vmatpush.bf16.msrb.mxu0 %v6860_v8 }
 0x1c8   :  { %2387 = vmatpush.bf16.msrb.mxu1 %v6861_v53 }
 0x1c9   :  { %2400 = vmatpush.bf16.msrb.mxu2 %v6862_v60  ;;  %v6888_v60 = vld [vmem:[#allocation195_spill] sm:$0xff] }
 0x1ca   :  { %2413 = vmatpush.bf16.msrb.mxu3 %v6863_v26  ;;  %v6889_v26 = vld [vmem:[#allocation196_spill] sm:$0xff] }
 0x1cb   :  { %2375 = vmatpush.bf16.msrb.mxu0 %v6864_v11  ;;  %v6890_v11 = vld [vmem:[#allocation197_spill] sm:$0xff] }
 0x1cc   :  { %2388 = vmatpush.bf16.msrb.mxu1 %v6865_v24 }
 0x1cd   :  { %2401 = vmatpush.bf16.msrb.mxu2 %v6866_v37  ;;  %v6891_v37 = vld [vmem:[#allocation198_spill] sm:$0xff] }
 0x1ce   :  { %2414 = vmatpush.bf16.msrb.mxu3 %v6867_v7  ;;  %v6893_v7 = vld [vmem:[#allocation200_spill] sm:$0xff] }
 0x1cf   :  { %2376 = vmatpush.bf16.msrb.mxu0 %v6868_v6 }
 0x1d0   :  { %2389 = vmatpush.bf16.msrb.mxu1 %v6869_v23  ;;  %v6895_v23 = vld [vmem:[#allocation202_spill] sm:$0xff] }
 0x1d1   :  { %2402 = vmatpush.bf16.msrb.mxu2 %v6870_v30 }
 0x1d2   :  { %2415 = vmatpush.bf16.msrb.mxu3 %v6871_v21  ;;  %v6896_v21 = vld [vmem:[#allocation203_spill] sm:$0xff] }
 0x1d3   :  { %2377 = vmatpush.bf16.msrb.mxu0 %v5599_v63  ;;  %v6876_v63 = vld [vmem:[#allocation183_spill] sm:$0xff]  ;;  %v2171_v49 = vpop.f32.mrf.mxu0 }
 0x1d4   :  { %2390 = vmatpush.bf16.msrb.mxu1 %v5603_v19  ;;  %v6877_v19 = vld [vmem:[#allocation184_spill] sm:$0xff] }
 0x1d5   :  { %2403 = vmatpush.bf16.msrb.mxu2 %v5605_v27  ;;  %v6879_v27 = vld [vmem:[#allocation186_spill] sm:$0xff] }
 0x1d6   :  { %2416 = vmatpush.bf16.msrb.mxu3 %v5608_v47  ;;  %2378 = vmatmul.bf16.vlgmr.msrb.gmra.mxu0 %v5906_v25  ;;  %v6878_v47 = vld [vmem:[#allocation185_spill] sm:$0xff]  ;;  %v6101_v25 = vpop.f32.mrf.mxu1 }
 0x1d7   :  { %2422 = vmatpush.bf16.msra.mxu0 %v6872_v34  ;;  %2391 = vmatmul.bf16.vlgmr.msrb.gmra.mxu1 %v5912_v44  ;;  %v6885_v44 = vld [vmem:[#allocation192_spill] sm:$0xff] }
 0x1d8   :  { %2435 = vmatpush.bf16.msra.mxu1 %v6873_v41  ;;  %2404 = vmatmul.bf16.vlgmr.msrb.gmra.mxu2 %v5902_v16  ;;  %v6882_v16 = vld [vmem:[#allocation189_spill] sm:$0xff]  ;;  %v6897_v34 = vld [vmem:[#allocation204_spill] sm:$0xff] }
 0x1d9   :  { %2448 = vmatpush.bf16.msra.mxu2 %v6874_v38  ;;  %2417 = vmatmul.bf16.vlgmr.msrb.gmra.mxu3 %v5908_v29  ;;  %v6883_v29 = vld [vmem:[#allocation190_spill] sm:$0xff]  ;;  %v6898_v41 = vld [vmem:[#allocation205_spill] sm:$0xff] }
 0x1da   :  { %2461 = vmatpush.bf16.msra.mxu3 %v6875_v45  ;;  %v6899_v38 = vld [vmem:[#allocation206_spill] sm:$0xff]  ;;  %v6900_v45 = vld [vmem:[#allocation207_spill] sm:$0xff] }
 0x1db   :  { %2423 = vmatpush.bf16.msra.mxu0 %v6876_v63  ;;  %v6107_v8 = vpop.f32.mrf.mxu2  ;;  %v2173_v62 = vpop.f32.mrf.mxu0  ;;  %v6906_v63 = vld [vmem:[#allocation213_spill] sm:$0xff] }
 0x1dc   :  { %2436 = vmatpush.bf16.msra.mxu1 %v6877_v19  ;;  %v6110_v53 = vpop.f32.mrf.mxu3  ;;  %v6911_v19 = vld [vmem:[#allocation218_spill] sm:$0xff] }
 0x1dd   :  { %2449 = vmatpush.bf16.msra.mxu2 %v6878_v47  ;;  %v6912_v47 = vld [vmem:[#allocation219_spill] sm:$0xff] }
 0x1de   :  { %2462 = vmatpush.bf16.msra.mxu3 %v6879_v27  ;;  %v2186_v24 = vpop.f32.mrf.mxu1 }
 0x1df   :  { %2424 = vmatpush.bf16.msra.mxu0 %v6880_v57 }
 0x1e0   :  { %2437 = vmatpush.bf16.msra.mxu1 %v6881_v58 }
 0x1e1   :  { %2450 = vmatpush.bf16.msra.mxu2 %v6882_v16  ;;  %v6913_v16 = vld [vmem:[#allocation220_spill] sm:$0xff] }
 0x1e2   :  { %2463 = vmatpush.bf16.msra.mxu3 %v6883_v29 }
 0x1e3   :  { %2425 = vmatpush.bf16.msra.mxu0 %v6884_v32  ;;  %v2199_v6 = vpop.f32.mrf.mxu2  ;;  %v6914_v32 = vld [vmem:[#allocation221_spill] sm:$0xff] }
 0x1e4   :  { %2438 = vmatpush.bf16.msra.mxu1 %v6885_v44  ;;  %v2212_v30 = vpop.f32.mrf.mxu3  ;;  %v6915_v44 = vld [vmem:[#allocation222_spill] sm:$0xff] }
 0x1e5   :  { %2451 = vmatpush.bf16.msra.mxu2 %v6886_v56  ;;  %v2172_v56 = vadd.f32 %v2171_v49, %v6069_v20  ;;  %v4693_v20 = vld [vmem:[#allocation8 + $0x78] sm:$0xff]  ;;  %v4687_v30 = vld [vmem:[#allocation8 + $0x48] sm:$0xff] }
 0x1e6   :  { %2464 = vmatpush.bf16.msra.mxu3 %v6887_v2  ;;  %v6916_v2 = vld [vmem:[#allocation223_spill] sm:$0xff] }
 0x1e7   :  { %2426 = vmatpush.bf16.msra.mxu0 %v6888_v60  ;;  %v6917_v60 = vld [vmem:[#allocation224_spill] sm:$0xff] }
 0x1e8   :  { %2439 = vmatpush.bf16.msra.mxu1 %v6889_v26 }
 0x1e9   :  { %2452 = vmatpush.bf16.msra.mxu2 %v6890_v11  ;;  %v2185_v11 = vadd.f32 %v6101_v25, %v2172_v56 }
 0x1ea   :  { %2465 = vmatpush.bf16.msra.mxu3 %v6891_v37 }
 0x1eb   :  { %2427 = vmatpush.bf16.msra.mxu0 %v6892_v52  ;;  %v2198_v49 = vadd.f32 %v6107_v8, %v2185_v11  ;;  %v4680_v52 = vld [vmem:[#allocation8 + $0x10] sm:$0xff] }
 0x1ec   :  { %2440 = vmatpush.bf16.msra.mxu1 %v6893_v7 }
 0x1ed   :  { %2453 = vmatpush.bf16.msra.mxu2 %v6894_v17  ;;  %v4688_v17 = vld [vmem:[#allocation8 + $0x50] sm:$0xff] }
 0x1ee   :  { %2466 = vmatpush.bf16.msra.mxu3 %v6895_v23  ;;  %v4679_v23 = vld [vmem:[#allocation8 + $0x8] sm:$0xff] }
 0x1ef   :  { %2428 = vmatpush.bf16.msra.mxu0 %v6896_v21 }
 0x1f0   :  { %2441 = vmatpush.bf16.msra.mxu1 %v6897_v34 }
 0x1f1   :  { %2454 = vmatpush.bf16.msra.mxu2 %v5696_v0  ;;  %v6902_v0 = vld [vmem:[#allocation209_spill] sm:$0xff] }
 0x1f2   :  { %2467 = vmatpush.bf16.msra.mxu3 %v5699_v28  ;;  %v6901_v28 = vld [vmem:[#allocation208_spill] sm:$0xff] }
 0x1f3   :  { %2429 = vmatpush.bf16.msra.mxu0 %v5702_v36  ;;  %v2223_v36 = vpop.f32.mrf.mxu0 }
 0x1f4   :  { %2442 = vmatpush.bf16.msra.mxu1 %v5706_v10  ;;  %v6905_v10 = vld [vmem:[#allocation212_spill] sm:$0xff] }
 0x1f5   :  { %2455 = vmatpush.bf16.msra.mxu2 %v5708_v51  ;;  %v2236_v51 = vpop.f32.mrf.mxu1 }
 0x1f6   :  { %2468 = vmatpush.bf16.msra.mxu3 %v5711_v9  ;;  %2430 = vmatmul.bf16.vlgmr.msra.gmra.mxu0 %v5950_v18  ;;  %v6903_v9 = vld [vmem:[#allocation210_spill] sm:$0xff] }
 0x1f7   :  { %2474 = vmatpush.bf16.msrb.mxu0 %v5713_v42  ;;  %2443 = vmatmul.bf16.vlgmr.msra.gmra.mxu1 %v5956_v3  ;;  %v6904_v42 = vld [vmem:[#allocation211_spill] sm:$0xff]  ;;  %v6907_v18 = vld [vmem:[#allocation214_spill] sm:$0xff]  ;;  %v6909_v3 = vld [vmem:[#allocation216_spill] sm:$0xff] }
 0x1f8   :  { %2487 = vmatpush.bf16.msrb.mxu1 %v6898_v41  ;;  %2456 = vmatmul.bf16.vlgmr.msra.gmra.mxu2 %v5954_v55  ;;  %v6908_v55 = vld [vmem:[#allocation215_spill] sm:$0xff] }
 0x1f9   :  { %2500 = vmatpush.bf16.msrb.mxu2 %v6899_v38  ;;  %2469 = vmatmul.bf16.vlgmr.msra.gmra.mxu3 %v5960_v12  ;;  %v6910_v12 = vld [vmem:[#allocation217_spill] sm:$0xff]  ;;  %v4678_v38 = vld [vmem:[#allocation8] sm:$0xff] }
 0x1fa   :  { %2513 = vmatpush.bf16.msrb.mxu3 %v6900_v45  ;;  %v4686_v45 = vld [vmem:[#allocation8 + $0x40] sm:$0xff] }
 0x1fb   :  { %2475 = vmatpush.bf16.msrb.mxu0 %v6901_v28  ;;  %v2249_v27 = vpop.f32.mrf.mxu2  ;;  %v2225_v58 = vpop.f32.mrf.mxu0 }
 0x1fc   :  { %2488 = vmatpush.bf16.msrb.mxu1 %v6902_v0  ;;  %v2262_v57 = vpop.f32.mrf.mxu3  ;;  %v2526_v0 = vpack.c.bf16 %v5841_v33, %v5841_v33 }
 0x1fd   :  { %2501 = vmatpush.bf16.msrb.mxu2 %v6903_v9  ;;  %v2238_v29 = vpop.f32.mrf.mxu1  ;;  %v2527_v9 = vpack.c.bf16 %v6031_v15, %v6031_v15 }
 0x1fe   :  { %2514 = vmatpush.bf16.msrb.mxu3 %v6904_v42 }
 0x1ff   :  { %2476 = vmatpush.bf16.msrb.mxu0 %v6905_v10 }
 0x200   :  { %2489 = vmatpush.bf16.msrb.mxu1 %v6906_v63 }
 0x201   :  { %2502 = vmatpush.bf16.msrb.mxu2 %v6907_v18 }
 0x202   :  { %2515 = vmatpush.bf16.msrb.mxu3 %v6908_v55 }
 0x203   :  { %2477 = vmatpush.bf16.msrb.mxu0 %v6909_v3  ;;  %v2251_v62 = vpop.f32.mrf.mxu2 }
 0x204   :  { %2490 = vmatpush.bf16.msrb.mxu1 %v6910_v12  ;;  %v2264_v26 = vpop.f32.mrf.mxu3 }
 0x205   :  { %2503 = vmatpush.bf16.msrb.mxu2 %v6911_v19 }
 0x206   :  { %2516 = vmatpush.bf16.msrb.mxu3 %v6912_v47 }
 0x207   :  { %2478 = vmatpush.bf16.msrb.mxu0 %v6913_v16 }
 0x208   :  { %2491 = vmatpush.bf16.msrb.mxu1 %v5771_v22  ;;  %v4685_v22 = vld [vmem:[#allocation8 + $0x38] sm:$0xff] }
 0x209   :  { %2504 = vmatpush.bf16.msrb.mxu2 %v6914_v32 }
 0x20a   :  { %2517 = vmatpush.bf16.msrb.mxu3 %v6915_v44 }
 0x20b   :  { %2479 = vmatpush.bf16.msrb.mxu0 %v6916_v2 }
 0x20c   :  { %2492 = vmatpush.bf16.msrb.mxu1 %v6917_v60 }
 0x20d   :  { %2505 = vmatpush.bf16.msrb.mxu2 %v5785_v59  ;;  %v4692_v59 = vld [vmem:[#allocation8 + $0x70] sm:$0xff] }
 0x20e   :  { %2518 = vmatpush.bf16.msrb.mxu3 %v5788_v4  ;;  %v2211_v4 = vadd.f32 %v6110_v53, %v2198_v49 }
 0x20f   :  { %2480 = vmatpush.bf16.msrb.mxu0 %v5791_v1  ;;  %v4684_v1 = vld [vmem:[#allocation8 + $0x30] sm:$0xff] }
 0x210   :  { %2493 = vmatpush.bf16.msrb.mxu1 %v5795_v61  ;;  %v2224_v61 = vadd.f32 %v2223_v36, %v2211_v4 }
 0x211   :  { %2506 = vmatpush.bf16.msrb.mxu2 %v5797_v54  ;;  %v4683_v54 = vld [vmem:[#allocation8 + $0x28] sm:$0xff] }
 0x212   :  { %2519 = vmatpush.bf16.msrb.mxu3 %v5800_v31  ;;  %v4691_v31 = vld [vmem:[#allocation8 + $0x68] sm:$0xff] }
 0x213   :  { %2481 = vmatpush.bf16.msrb.mxu0 %v5803_v40  ;;  %v2275_v40 = vpop.f32.mrf.mxu0 }
 0x214   :  { %2494 = vmatpush.bf16.msrb.mxu1 %v5807_v39  ;;  %v2237_v39 = vadd.f32 %v2236_v51, %v2224_v61 }
 0x215   :  { %2507 = vmatpush.bf16.msrb.mxu2 %v5809_v14  ;;  %v4682_v14 = vld [vmem:[#allocation8 + $0x20] sm:$0xff] }
 0x216   :  { %2520 = vmatpush.bf16.msrb.mxu3 %v5812_v35  ;;  %2482 = vmatmul.bf16.vlgmr.msrb.gmra.mxu0 %v5997_v46  ;;  %v2288_v35 = vpop.f32.mrf.mxu1  ;;  %v4690_v46 = vld [vmem:[#allocation8 + $0x60] sm:$0xff] }
 0x217   :  { %2660 = vmatpush.bf16.msra.mxu0 %v4685_v22  ;;  %2495 = vmatmul.bf16.vlgmr.msrb.gmra.mxu1 %v6003_v50  ;;  %v2250_v50 = vadd.f32 %v2249_v27, %v2237_v39 }
 0x218   :  { %2673 = vmatpush.bf16.msra.mxu1 %v4693_v20  ;;  %2508 = vmatmul.bf16.vlgmr.msrb.gmra.mxu2 %v6001_v43  ;;  %v4681_v43 = vld [vmem:[#allocation8 + $0x18] sm:$0xff] }
 0x219   :  { %2688 = vmatpush.bf16.msra.mxu2 %v4685_v22  ;;  %2521 = vmatmul.bf16.vlgmr.msrb.gmra.mxu3 %v6007_v5  ;;  %v4689_v5 = vld [vmem:[#allocation8 + $0x58] sm:$0xff]  ;;  %v2263_v25 = vadd.f32 %v2262_v57, %v2250_v50 }
 0x21a   :  { %2701 = vmatpush.bf16.msra.mxu3 %v4693_v20 }
 0x21b   :  { %2661 = vmatpush.bf16.msra.mxu0 %v4684_v1  ;;  %v2301_v8 = vpop.f32.mrf.mxu2  ;;  %v2277_v24 = vpop.f32.mrf.mxu0  ;;  %v2276_v37 = vadd.f32 %v2275_v40, %v2263_v25 }
 0x21c   :  { %2674 = vmatpush.bf16.msra.mxu1 %v4692_v59  ;;  %v2314_v53 = vpop.f32.mrf.mxu3 }
 0x21d   :  { %2689 = vmatpush.bf16.msra.mxu2 %v4684_v1  ;;  %v2289_v6 = vadd.f32 %v2288_v35, %v2276_v37 }
 0x21e   :  { %2702 = vmatpush.bf16.msra.mxu3 %v4692_v59  ;;  %v2290_v7 = vpop.f32.mrf.mxu1 }
 0x21f   :  { %2662 = vmatpush.bf16.msra.mxu0 %v4683_v54  ;;  %v2302_v21 = vadd.f32 %v2301_v8, %v2289_v6 }
 0x220   :  { %2675 = vmatpush.bf16.msra.mxu1 %v4691_v31 }
 0x221   :  { %2690 = vmatpush.bf16.msra.mxu2 %v4683_v54  ;;  %v6172_v28 = vadd.f32 %v2314_v53, %v2302_v21 }
 0x222   :  { %2703 = vmatpush.bf16.msra.mxu3 %v4691_v31 }
 0x223   :  { %2663 = vmatpush.bf16.msra.mxu0 %v4682_v14  ;;  %v2303_v34 = vpop.f32.mrf.mxu2  ;;  %v2686_v42 = vpack.c.bf16 %v6172_v28, %v6172_v28 }
 0x224   :  { %2676 = vmatpush.bf16.msra.mxu1 %v4690_v46  ;;  %v2316_v41 = vpop.f32.mrf.mxu3 }
 0x225   :  { %2691 = vmatpush.bf16.msra.mxu2 %v4682_v14 }
 0x226   :  { %2704 = vmatpush.bf16.msra.mxu3 %v4690_v46 }
 0x227   :  { %2664 = vmatpush.bf16.msra.mxu0 %v4681_v43 }
 0x228   :  { %2677 = vmatpush.bf16.msra.mxu1 %v4689_v5 }
 0x229   :  { %2692 = vmatpush.bf16.msra.mxu2 %v4681_v43 }
 0x22a   :  { %2705 = vmatpush.bf16.msra.mxu3 %v4689_v5 }
 0x22b   :  { %2665 = vmatpush.bf16.msra.mxu0 %v4680_v52 }
 0x22c   :  { %2678 = vmatpush.bf16.msra.mxu1 %v4688_v17 }
 0x22d   :  { %2693 = vmatpush.bf16.msra.mxu2 %v4680_v52 }
 0x22e   :  { %2706 = vmatpush.bf16.msra.mxu3 %v4688_v17  ;;  %v4732_v17 = vld [vmem:[%s6282_s5] ss:$0 sm:$0xff] }
 0x22f   :  { %2666 = vmatpush.bf16.msra.mxu0 %v4679_v23 }
 0x230   :  { %2679 = vmatpush.bf16.msra.mxu1 %v4687_v30 }
 0x231   :  { %2694 = vmatpush.bf16.msra.mxu2 %v4679_v23  ;;  %v6193_v23 = vmul.f32 %v6172_v28, %v6172_v28 }
 0x232   :  { %2707 = vmatpush.bf16.msra.mxu3 %v4687_v30 }
 0x233   :  { %2667 = vmatpush.bf16.msra.mxu0 %v4678_v38  ;;  %v2327_v36 = vpop.f32.mrf.mxu0 }
 0x234   :  { %2680 = vmatpush.bf16.msra.mxu1 %v4686_v45  ;;  %v2328_v10 = vadd.f32 %v2327_v36, %v411_v13  ;;  %v2340_v51 = vpop.f32.mrf.mxu1 }
 0x235   :  { %2695 = vmatpush.bf16.msra.mxu2 %v4678_v38 }
 0x236   :  { %2708 = vmatpush.bf16.msra.mxu3 %v4686_v45  ;;  %2668 = vmatmul.bf16.vlgmr.msra.gmra.mxu0 %v2526_v0  ;;  %v2341_v63 = vadd.f32 %v2340_v51, %v2328_v10 }
 0x237   :  { %2681 = vmatmul.bf16.vlgmr.msra.gmra.mxu1 %v2527_v9 }
 0x238   :  { %2696 = vmatmul.bf16.vlgmr.msra.gmra.mxu2 %v2686_v42  ;;  %v2715_v42 = vlaneseq }
 0x23a   :  { %2912 = vmatpush.xpose.msrb.mxu3 %v5841_v33  ;;  %v6198_v36 = vand.u32 127, %v2715_v42 }
 0x23b   :  { %v2353_v18 = vpop.f32.mrf.mxu2  ;;  %v2329_v19 = vpop.f32.mrf.mxu0 }
 0x23c   :  { %v2354_v55 = vadd.f32 %v2353_v18, %v2341_v63  ;;  %v2366_v3 = vpop.f32.mrf.mxu3  ;;  %v2342_v47 = vpop.f32.mrf.mxu1  ;;  %vm2717_vm0 = vcmp.lt.s32.totalorder %v6198_v36, 10 }
 0x23e   :  { %v2367_v12 = vadd.f32 %v2366_v3, %v2354_v55 }
 0x243   :  { %v2355_v27 = vpop.f32.mrf.mxu2 }
 0x244   :  { %v2368_v57 = vpop.f32.mrf.mxu3 }
 0x253   :  { %v2379_v58 = vpop.f32.mrf.mxu0 }
 0x254   :  { %v2392_v16 = vpop.f32.mrf.mxu1  ;;  %v2380_v62 = vadd.f32 %v2379_v58, %v2367_v12 }
 0x256   :  { %v2393_v49 = vadd.f32 %v2392_v16, %v2380_v62  ;;  %v6211_v62 = vmul.f32 %v6031_v15, %v6031_v15 }
 0x25b   :  { %v2405_v29 = vpop.f32.mrf.mxu2  ;;  %v2381_v44 = vpop.f32.mrf.mxu0 }
 0x25c   :  { %v2418_v32 = vpop.f32.mrf.mxu3  ;;  %v2394_v56 = vpop.f32.mrf.mxu1  ;;  %v2406_v1 = vadd.f32 %v2405_v29, %v2393_v49  ;;  %v2734_v44 = vld [vmem:[%s6283_s6] sm:$0xff] }
 0x25d   :  { %v4913_v56 = vmov 0  }
 0x25e   :  { %v2419_v61 = vadd.f32 %v2418_v32, %v2406_v1  ;;  %4730 = vset.pattern.permute.xlu2 %v4913_v56  ;;  %4731 = vset.pattern.permute.xlu0 %v4913_v56 }
 0x25f   :  { %2736 = vperm.xlu2 %4730, %v2734_v44  }
 0x263   :  { %v2407_v2 = vpop.f32.mrf.mxu2 }
 0x264   :  { %v2420_v60 = vpop.f32.mrf.mxu3 }
 0x273   :  { %v2431_v48 = vpop.f32.mrf.mxu0 }
 0x274   :  { %v2444_v13 = vpop.f32.mrf.mxu1  ;;  %v2432_v54 = vadd.f32 %v2431_v48, %v2419_v61 }
 0x276   :  { %v2445_v31 = vadd.f32 %v2444_v13, %v2432_v54 }
 0x27b   :  { %v2457_v26 = vpop.f32.mrf.mxu2  ;;  %v2433_v22 = vpop.f32.mrf.mxu0 }
 0x27c   :  { %v2470_v11 = vpop.f32.mrf.mxu3  ;;  %v2446_v20 = vpop.f32.mrf.mxu1  ;;  %v2458_v40 = vadd.f32 %v2457_v26, %v2445_v31  ;;  %v6215_v26 = vmul.f32 %v5841_v33, %v5841_v33 }
 0x27e   :  { %v2471_v39 = vadd.f32 %v2470_v11, %v2458_v40  ;;  %v3019_v11 = vadd.f32 %v6211_v62, %v6215_v26 }
 0x283   :  { %v2459_v59 = vpop.f32.mrf.mxu2 }
 0x284   :  { %v2472_v4 = vpop.f32.mrf.mxu3 }
 0x285   :  { %v4914_v4 = vmov 0.0  }
 0x293   :  { %v2483_v14 = vpop.f32.mrf.mxu0 }
 0x294   :  { %v2496_v35 = vpop.f32.mrf.mxu1  ;;  %v2484_v46 = vadd.f32 %v2483_v14, %v2471_v39 }
 0x296   :  { %v2497_v50 = vadd.f32 %v2496_v35, %v2484_v46 }
 0x29b   :  { %v2509_v43 = vpop.f32.mrf.mxu2  ;;  %v2485_v8 = vpop.f32.mrf.mxu0 }
 0x29c   :  { %v2510_v5 = vadd.f32 %v2509_v43, %v2497_v50  ;;  %v2522_v25 = vpop.f32.mrf.mxu3  ;;  %v2498_v53 = vpop.f32.mrf.mxu1 }
 0x29e   :  { %v6183_v24 = vadd.f32 %v2522_v25, %v2510_v5 }
 0x2a0   :  { %v2687_v37 = vpack.c.bf16 %v6183_v24, %v6183_v24 }
 0x2a2   :  { %2709 = vmatmul.bf16.vlgmr.msra.gmra.mxu3 %v2687_v37 }
 0x2a3   :  { %2992 = vmatpush.xpose.msra.mxu3 %v6172_v28  ;;  %v2511_v52 = vpop.f32.mrf.mxu2 }
 0x2a4   :  { %v2524_v7 = vpop.f32.mrf.mxu3 }
 0x2b2   :  { %2913 = vmatmul.f32.vlgmr.msrb.gmra.mxu3 %v5841_v33 }
 0x2b3   :  { %v2669_v6 = vpop.f32.mrf.mxu0  ;;  %3082 = vmatpush.xpose.msrb.mxu3 %v6193_v23 }
 0x2b4   :  { %v2670_v30 = vadd.f32 %v4732_v17, %v2669_v6  ;;  %v2682_v21 = vpop.f32.mrf.mxu1 }
 0x2b6   :  { %v2683_v34 = vadd.f32 %v2682_v21, %v2670_v30 }
 0x2b8   :  { %2714 = vst [vmem:[#allocation10] sm:$0xff] %v2683_v34 }
 0x2b9   :  { %v2737_v59 = vpop.permute.xlu2 %2736  ;;  %3318 = dma.vmem_to_hbm [thread:$0]  %s3314_s20, 128, %s3316_s18, [#allocation4]  }
 0x2ba   :  { %2993 = vmatmul.f32.vlgmr.msra.gmra.mxu3 %v5841_v33  ;;  %vm2738_vm3 = vcmp.eq.s32.totalorder %v2737_v59, %v6198_v36 }
 0x2bb   :  { %v2697_v41 = vpop.f32.mrf.mxu2  ;;  %v2671_v45 = vpop.f32.mrf.mxu0  ;;  %v4419_v61 = vsel %vm2738_vm3, 1.0, %v4914_v4 }
 0x2bc   :  { %v2698_v38 = vadd.f32 %v4732_v17, %v2697_v41  ;;  %v2684_v0 = vpop.f32.mrf.mxu1  ;;  %v2741_v31 = vrot.slane %v4419_v61, 4 }
 0x2be   :  { %v2742_v40 = vadd.f32 %v4419_v61, %v2741_v31  ;;  %v2789_v52 = vmax.f32 %v4419_v61, %v2741_v31 }
 0x2c0   :  { %v2743_v14 = vrot.slane %v2742_v40, 2  ;;  %v2790_v30 = vrot.slane %v2789_v52, 2 }
 0x2c2   :  { %v2744_v46 = vadd.f32 %v2743_v14, %v2742_v40  ;;  %v2791_v0 = vmax.f32 %v2789_v52, %v2790_v30 }
 0x2c3   :  { %v2699_v9 = vpop.f32.mrf.mxu2 }
 0x2c4   :  { %v2745_v43 = vrot.slane %v2744_v46, 1 }
 0x2c6   :  { %v2746_v25 = vadd.f32 %v2745_v43, %v2744_v46 }
 0x2c8   :  { %vm2747_vm5 = vcmp.eq.f32.partialorder %v2746_v25, 0.0 }
 0x2c9   :  { %v2748_v53 = vsel %vm2747_vm5, 100.0, %v2746_v25 }
 0x325   :  { %v2710_v10 = vpop.f32.mrf.mxu3 }
 0x326   :  { %v2711_v51 = vadd.f32 %v2710_v10, %v2698_v38 }
 0x328   :  { %v2720_v63 = vsel %vm2717_vm0, %v2711_v51, -3e+38 }
 0x329   :  { %2721 = vmax.xlane.f32.xlu0 %v2720_v63  ;;  %v2792_v63 = vrot.slane %v2791_v0, 1 }
 0x32d   :  { %v2712_v18 = vpop.f32.mrf.mxu3 }
 0x39c   :  { %v2722_v55 = vpop.xlane.xlu0 %2721 }
 0x39d   :  { %v2723_v3 = vsub.f32 %v2711_v51, %v2722_v55 }
 0x39f   :  { %v2724_v12 = vmul.f32 1.442695, %v2723_v3  ;;  %v4915_v3 = vmov 1.0  }
 0x3a0   :  { %3083 = vmatmul.f32.vlgmr.msrb.gmra.mxu3 %v4915_v3 }
 0x3a1   :  { %4733 = vpow2.f32 %v2724_v12 }
 0x3a7   :  { %v4734_v19 = vpop.eup %4733 }
 0x3a8   :  { %v2726_v47 = vsel %vm2717_vm0, %v4734_v19, 0.0  ;;  %v2793_v19 = vmax.f32 %v2791_v0, %v2792_v63 }
 0x3a9   :  { %2727 = vadd.xlane.f32.xlu0 %v2726_v47 }
 0x3aa   :  { %vm2794_vm7 = vcmp.gt.f32.partialorder %v2793_v19, 0.0 }
 0x41c   :  { %v2728_v27 = vpop.xlane.xlu0 %2727 }
 0x41d   :  { %4735 = vrcp.f32 %v2728_v27 }
 0x423   :  { %v4736_v57 = vpop.eup %4735 }
 0x424   :  { %v2730_v58 = vmul.f32 %v4736_v57, %v2728_v27 }
 0x426   :  { %v2731_v16 = vsub.f32 2.0, %v2730_v58 }
 0x428   :  { %v2732_v29 = vmul.f32 %v4736_v57, %v2731_v16 }
 0x42a   :  { %v6201_v32 = vmul.f32 %v2732_v29, %v2726_v47 }
 0x42c   :  { %2767 = vmax.xlane.f32.xlu1 %v6201_v32  ;;  %v2754_v54 = vrot.slane %v6201_v32, 4 }
 0x42e   :  { %v2755_v33 = vadd.f32 %v2754_v54, %v6201_v32 }
 0x430   :  { %v2756_v39 = vrot.slane %v2755_v33, 2 }
 0x432   :  { %v2757_v35 = vadd.f32 %v2756_v39, %v2755_v33 }
 0x434   :  { %v2758_v50 = vrot.slane %v2757_v35, 1 }
 0x436   :  { %v2759_v5 = vadd.f32 %v2758_v50, %v2757_v35 }
 0x438   :  { %vm2760_vm4 = vcmp.eq.f32.partialorder %v2759_v5, 0.0 }
 0x439   :  { %v2761_v8 = vsel %vm2760_vm4, 100.0, %v2759_v5 }
 0x43a   :  { %4737 = vrcp.f32 %v2761_v8 }
 0x43b   :  { %4739 = vrcp.f32 %v2748_v53 }
 0x440   :  { %v4738_v34 = vpop.eup %4737 }
 0x441   :  { %v4740_v41 = vpop.eup %4739  ;;  %v2763_v42 = vmul.f32 %v4738_v34, %v2761_v8 }
 0x442   :  { %v2750_v9 = vmul.f32 %v4740_v41, %v2748_v53 }
 0x443   :  { %v2764_v55 = vsub.f32 2.0, %v2763_v42 }
 0x444   :  { %v2751_v18 = vsub.f32 2.0, %v2750_v9 }
 0x445   :  { %v2765_v57 = vmul.f32 %v4738_v34, %v2764_v55 }
 0x446   :  { %v2752_v27 = vmul.f32 %v4740_v41, %v2751_v18 }
 0x447   :  { %v2766_v29 = vmul.f32 %v2765_v57, %v6201_v32 }
 0x448   :  { %v2753_v16 = vmul.f32 %v4419_v61, %v2752_v27 }
 0x49f   :  { %v2768_v2 = vpop.xlane.xlu1 %2767 }
 0x4a0   :  { %vm2769_vm1 = vcmp.eq.f32.partialorder %v6201_v32, %v2768_v2 }
 0x4a1   :  { %v2770_v60 = vsel %vm2769_vm1, %v6198_v36, 128  ;;  %vm3302_vm1 = vcmp.eq.s32.totalorder %v6198_v36, 1 }
 0x4a2   :  { %v2772_v48 = vshra.s32 %v2770_v60, 16  ;;  %v2771_v22 = vand.u32 65535, %v2770_v60 }
 0x4a4   :  { %v2774_v13 = vcvt.s32.f32 %v2772_v48  ;;  %v2773_v49 = vcvt.s32.f32 %v2771_v22  ;;  %v3023_v48 = vmul.f32 %v6183_v24, %v6183_v24 }
 0x4a6   :  { %2775 = vmin.xlane.f32.xlu1 %v2774_v13  ;;  %v3024_v32 = vadd.f32 %v3023_v48, %v6193_v23 }
 0x4ae   :  { %3020 = vadd.xlane.f32.xlu1 %v3019_v11 }
 0x519   :  { %v2776_v20 = vpop.xlane.xlu1 %2775 }
 0x51a   :  { %vm2777_vm2 = vcmp.eq.f32.partialorder %v2774_v13, %v2776_v20  ;;  %v2782_v37 = vcvt.f32.s32 %v2776_v20 }
 0x51b   :  { %v2778_v1 = vsel %vm2777_vm2, %v2773_v49, inf  ;;  %vm3301_vm2 = vcmp.eq.s32.totalorder %v6198_v36, 0 }
 0x51c   :  { %2779 = vmin.xlane.f32.xlu2 %v2778_v1  ;;  %v2783_v17 = vshll.u32 %v2782_v37, 16 }
 0x521   :  { %v3021_v5 = vpop.xlane.xlu1 %3020 }
 0x58f   :  { %v2780_v7 = vpop.xlane.xlu2 %2779 }
 0x590   :  { %v2781_v6 = vcvt.f32.s32 %v2780_v7 }
 0x592   :  { %v2784_v21 = vadd.s32 %v2783_v17, %v2781_v6 }
 0x594   :  { %vm2785_vm6 = vcmp.eq.s32.totalorder %v2784_v21, %v6198_v36 }
 0x595   :  { %v4420_v38 = vsel %vm2785_vm6, 1.0, %v4914_v4 }
 0x596   :  { %v2795_v45 = vrot.slane %v4420_v38, 4 }
 0x598   :  { %v2796_v10 = vmax.f32 %v4420_v38, %v2795_v45 }
 0x59a   :  { %v2797_v51 = vrot.slane %v2796_v10, 2 }
 0x59c   :  { %v2798_v12 = vmax.f32 %v2796_v10, %v2797_v51 }
 0x59e   :  { %v2799_v47 = vrot.slane %v2798_v12, 1 }
 0x5a0   :  { %v2800_v58 = vmax.f32 %v2798_v12, %v2799_v47 }
 0x5a2   :  { %vm2801_vm8 = vcmp.gt.f32.partialorder %v2800_v58, 0.0 }
 0x5a3   :  { %vm2802_vm10 = vmand %vm2794_vm7, %vm2801_vm8 }
 0x5a4   :  { %v4421_v44 = vsel %vm2802_vm10, 1.0, %v4914_v4 }
 0x5a5   :  { %v2868_v56 = vsel %vm2867_vm9, %v4421_v44, 0.0  ;;  %v2805_v2 = vmul.f32 %v4421_v44, %v2753_v16  ;;  %v2806_v60 = vmul.f32 %v4421_v44, %v2766_v29 }
 0x5a6   :  { %2869 = vadd.xlane.f32.xlu0 %v2868_v56 }
 0x5a7   :  { %2822 = vmatpush.xpose.msrb.mxu0 %v2805_v2  ;;  %2842 = vmatpush.xpose.msrb.mxu1 %v2806_v60 }
 0x5a8   :  { %2862 = vmatpush.xpose.msrb.mxu2 %v2806_v60 }
 0x5aa   :  { %2823 = vmatmul.f32.vlgmr.msrb.gmra.mxu0 %v2805_v2  ;;  %2843 = vmatmul.f32.vlgmr.msrb.gmra.mxu1 %v2806_v60 }
 0x5ab   :  { %2932 = vmatpush.xpose.msra.mxu0 %v6031_v15  ;;  %2952 = vmatpush.xpose.msra.mxu1 %v6172_v28 }
 0x5ac   :  { %2972 = vmatpush.xpose.msra.mxu2 %v6183_v24 }
 0x5ad   :  { %2863 = vmatmul.f32.vlgmr.msrb.gmra.mxu2 %v2805_v2 }
 0x5ae   :  { %3025 = vadd.xlane.f32.xlu0 %v3024_v32 }
 0x5af   :  { %3012 = vmatpush.xpose.msrb.mxu0 %v6183_v24  ;;  %3042 = vmatpush.xpose.msrb.mxu1 %v6215_v26 }
 0x5b0   :  { %3062 = vmatpush.xpose.msrb.mxu2 %v6211_v62 }
 0x5b2   :  { %2933 = vmatmul.f32.vlgmr.msra.gmra.mxu0 %v6031_v15  ;;  %2953 = vmatmul.f32.vlgmr.msra.gmra.mxu1 %v6172_v28  ;;  %v2914_v28 = vpop.f32.mrf.mxu3 }
 0x5b3   :  { %3102 = vmatpush.xpose.msra.mxu0 %v3023_v48 }
 0x5b5   :  { %2973 = vmatmul.f32.vlgmr.msra.gmra.mxu2 %v6183_v24 }
 0x5ba   :  { %3013 = vmatmul.f32.vlgmr.msrb.gmra.mxu0 %v6031_v15  ;;  %3043 = vmatmul.f32.vlgmr.msrb.gmra.mxu1 %v4915_v3  ;;  %v2994_v4 = vpop.f32.mrf.mxu3 }
 0x5bd   :  { %3063 = vmatmul.f32.vlgmr.msrb.gmra.mxu2 %v4915_v3 }
 0x5c2   :  { %3103 = vmatmul.f32.vlgmr.msra.gmra.mxu0 %v4915_v3  ;;  %v3084_v33 = vpop.f32.mrf.mxu3 }
 0x619   :  { %v2870_v13 = vpop.xlane.xlu0 %2869 }
 0x61a   :  { %v2871_v11 = vrot.slane %v2870_v13, 4 }
 0x61c   :  { %v2872_v26 = vadd.f32 %v2871_v11, %v2870_v13 }
 0x61e   :  { %v2873_v22 = vrot.slane %v2872_v26, 2 }
 0x620   :  { %v2874_v62 = vadd.f32 %v2873_v22, %v2872_v26 }
 0x621   :  { %v3026_v8 = vpop.xlane.xlu0 %3025 }
 0x622   :  { %v2875_v20 = vrot.slane %v2874_v62, 1 }
 0x624   :  { %v2876_v23 = vadd.f32 %v2875_v20, %v2874_v62 }
 0x626   :  { %4694 = vpush %v2876_v23 }
 0x627   :  { %v6237_v49 = vpop.f32.mrf.mxu0  ;;  %v6239_v1 = vpop.f32.mrf.mxu1 }
 0x62f   :  { %v2934_v59 = vpop.f32.mrf.mxu0  ;;  %v2954_v15 = vpop.f32.mrf.mxu1 }
 0x630   :  { %v6241_v24 = vpop.f32.mrf.mxu2  ;;  %v2935_v39 = vadd.f32 %v2934_v59, %v2914_v28 }
 0x632   :  { %v3109_v53 = vmul.f32 2.0, %v2935_v39 }
 0x637   :  { %v3014_v54 = vpop.f32.mrf.mxu0  ;;  %v3044_v31 = vpop.f32.mrf.mxu1 }
 0x638   :  { %v2974_v61 = vpop.f32.mrf.mxu2  ;;  %v3015_v37 = vadd.f32 %v3014_v54, %v2994_v4 }
 0x639   :  { %v2975_v46 = vadd.f32 %v2974_v61, %v2954_v15 }
 0x63a   :  { %v3118_v34 = vmul.f32 2.0, %v3015_v37 }
 0x63b   :  { %v3114_v7 = vmul.f32 2.0, %v2975_v46 }
 0x63f   :  { %v3104_v35 = vpop.f32.mrf.mxu0 }
 0x640   :  { %v3064_v40 = vpop.f32.mrf.mxu2  ;;  %v3105_v50 = vadd.f32 %v3104_v35, %v3084_v33 }
 0x641   :  { %v3065_v14 = vadd.f32 %v3064_v40, %v3044_v31 }
 0x642   :  { %v3112_v25 = vperm.slane %v3105_v50, 0 }
 0x643   :  { %v3107_v43 = vperm.slane %v3065_v14, 0 }
 0x644   :  { %v3113_v17 = vadd.f32 %v3112_v25, %v3026_v8  ;;  %v3117_v6 = vadd.f32 %v3112_v25, %v3021_v5 }
 0x645   :  { %v3108_v52 = vadd.f32 %v3107_v43, %v3021_v5 }
 0x646   :  { %v3115_v21 = vsub.f32 %v3113_v17, %v3114_v7  ;;  %v3119_v0 = vsub.f32 %v3117_v6, %v3118_v34 }
 0x647   :  { %v3110_v30 = vsub.f32 %v3108_v52, %v3109_v53 }
 0x648   :  { %v6245_v38 = vmax.f32 %v3115_v21, 0.0  ;;  %v3120_v42 = vmax.f32 %v3119_v0, 0.0 }
 0x649   :  { %v6243_v41 = vmax.f32 %v3110_v30, 0.0 }
 0x64a   :  { %v3132_v9 = vsel %vm3121_vm11, %v6245_v38, 0.0  ;;  %v3143_v10 = vsel %vm3121_vm11, %v3120_v42, 0.0  ;;  %v3171_v14 = vsub.f32 0.0, %v3120_v42  ;;  %v3166_v50 = vsub.f32 0.0, %v6245_v38 }
 0x64b   :  { %v3122_v45 = vsel %vm3121_vm11, %v6243_v41, 0.0  ;;  %3133 = vadd.xlane.f32.xlu0 %v3132_v9  ;;  %v3161_v46 = vsub.f32 0.0, %v6243_v41 }
 0x64c   :  { %3123 = vadd.xlane.f32.xlu1 %v3122_v45 }
 0x654   :  { %3144 = vadd.xlane.f32.xlu1 %v3143_v10 }
 0x657   :  { %s6252_s6 = spop %4694 }
 0x658   :  { %s2879_s30 = smax.f32 %s4916_s29, %s6252_s6  ;;  %p2878_p0 = scmp.gt.f32.partialorder %s6252_s6, 0.0 }
 0x659   :  { %v2880_v51 = vstv %s2879_s30 }
 0x65a   :  { %4741 = vrcp.f32 %v2880_v51  ;;  %v2892_v3 = vand.u32 2147483648, %v2880_v51  ;;  %v2890_v19 = vand.u32 2147483647, %v2880_v51  ;;  %vm2886_vm13 = vweird.f32 %v2880_v51 }
 0x65c   :  { %v2893_v27 = vor.u32 1.1754944e-38, %v2892_v3  ;;  %vm2891_vm15 = vcmp.eq.f32.partialorder %v2890_v19, 8.507059e+37 }
 0x660   :  { %v4742_v63 = vpop.eup %4741 }
 0x661   :  { %v2882_v18 = vmul.f32 %v4742_v63, %v2880_v51  ;;  %vm2887_vm12 = vweird.f32 %v4742_v63 }
 0x662   :  { %vm2888_vm14 = vmor %vm2886_vm13, %vm2887_vm12 }
 0x663   :  { %v2883_v55 = vsub.f32 1.0, %v2882_v18 }
 0x665   :  { %v2884_v12 = vmul.f32 %v4742_v63, %v2883_v55 }
 0x667   :  { %v2885_v47 = vadd.f32 %v4742_v63, %v2884_v12 }
 0x669   :  { %v2889_v57 = vsel %vm2888_vm14, %v4742_v63, %v2885_v47 }
 0x66a   :  { %v2894_v58 = vsel %vm2891_vm15, %v2893_v27, %v2889_v57 }
 0x66b   :  { %4696 = vpush %v2894_v58 }
 0x69c   :  { %s6255_s9 = spop %4696 }
 0x69d   :  { %s6919_s9 = smov (!%p2878_p0, %s6255_s9), 0.0 }
 0x6be   :  { %v3134_v44 = vpop.xlane.xlu0 %3133 }
 0x6bf   :  { %v3124_v16 = vpop.xlane.xlu1 %3123  ;;  %v3135_v56 = vrot.slane %v3134_v44, 4 }
 0x6c0   :  { %v3125_v29 = vrot.slane %v3124_v16, 4 }
 0x6c1   :  { %v3136_v60 = vadd.f32 %v3135_v56, %v3134_v44 }
 0x6c2   :  { %v3126_v2 = vadd.f32 %v3125_v29, %v3124_v16 }
 0x6c3   :  { %v3137_v32 = vrot.slane %v3136_v60, 2 }
 0x6c4   :  { %v3127_v48 = vrot.slane %v3126_v2, 2 }
 0x6c5   :  { %v3138_v26 = vadd.f32 %v3137_v32, %v3136_v60 }
 0x6c6   :  { %v3128_v13 = vadd.f32 %v3127_v48, %v3126_v2 }
 0x6c7   :  { %v3145_v11 = vpop.xlane.xlu1 %3144  ;;  %v3139_v20 = vrot.slane %v3138_v26, 1 }
 0x6c8   :  { %v3146_v22 = vrot.slane %v3145_v11, 4  ;;  %v3129_v62 = vrot.slane %v3128_v13, 1 }
 0x6c9   :  { %v3140_v59 = vadd.f32 %v3139_v20, %v3138_v26 }
 0x6ca   :  { %v3147_v23 = vadd.f32 %v3146_v22, %v3145_v11  ;;  %v3130_v28 = vadd.f32 %v3129_v62, %v3128_v13 }
 0x6cc   :  { %v3148_v15 = vrot.slane %v3147_v23, 2  ;;  %4698 = vpush %v3130_v28 }
 0x6cd   :  { %4700 = vpush %v3140_v59 }
 0x6ce   :  { %v3149_v4 = vadd.f32 %v3148_v15, %v3147_v23  ;;  %v3253_v15 = vmul.f32 2.0, %v6241_v24 }
 0x6d0   :  { %v3150_v61 = vrot.slane %v3149_v4, 1 }
 0x6d2   :  { %v3151_v54 = vadd.f32 %v3150_v61, %v3149_v4 }
 0x6d4   :  { %4702 = vpush %v3151_v54 }
 0x6fd   :  { %s4699_s10 = spop %4698 }
 0x6fe   :  { %s4701_s11 = spop %4700 }
 0x6ff   :  { %s3142_s13 = sadd.f32 %s4701_s11, %s4699_s10 }
 0x705   :  { %s4703_s12 = spop %4702 }
 0x706   :  { %s3153_s14 = smul.f32 2.0, %s4703_s12 }
 0x708   :  { %s3154_s15 = sadd.f32 %s3153_s14, %s3142_s13 }
 0x70a   :  { %s3155_s16 = smul.f32 0.0010416667, %s3154_s15 }
 0x70c   :  { %v3156_v31 = vstv %s3155_s16 }
 0x70d   :  { %4743 = vrcp.f32 %v3156_v31 }
 0x713   :  { %v4744_v33 = vpop.eup %4743 }
 0x714   :  { %v3158_v40 = vmul.f32 %v4744_v33, %v3156_v31 }
 0x716   :  { %v3159_v39 = vsub.f32 2.0, %v3158_v40 }
 0x718   :  { %v3160_v35 = vmul.f32 %v4744_v33, %v3159_v39 }
 0x71a   :  { %v3172_v43 = vmul.f32 %v3171_v14, %v3160_v35  ;;  %v3176_v5 = vmul.f32 0.5, %v3160_v35  ;;  %v3189_v25 = vmul.f32 0.25, %v3160_v35  ;;  %v3202_v8 = vmul.f32 0.125, %v3160_v35 }
 0x71b   :  { %v3215_v53 = vmul.f32 0.0625, %v3160_v35  ;;  %v3162_v37 = vmul.f32 %v3161_v46, %v3160_v35  ;;  %v3167_v52 = vmul.f32 %v3166_v50, %v3160_v35 }
 0x71c   :  { %v3173_v7 = vmul.f32 1.442695, %v3172_v43  ;;  %v3185_v17 = vmul.f32 %v3176_v5, %v3171_v14  ;;  %v3198_v6 = vmul.f32 %v3189_v25, %v3171_v14  ;;  %v3211_v30 = vmul.f32 %v3202_v8, %v3171_v14 }
 0x71d   :  { %v3224_v21 = vmul.f32 %v3215_v53, %v3171_v14  ;;  %v3163_v34 = vmul.f32 1.442695, %v3162_v37  ;;  %v3177_v45 = vmul.f32 %v3176_v5, %v3161_v46  ;;  %v3181_v38 = vmul.f32 %v3176_v5, %v3166_v50 }
 0x71e   :  { %4745 = vpow2.f32 %v3173_v7  ;;  %v3186_v0 = vmul.f32 1.442695, %v3185_v17  ;;  %v3199_v9 = vmul.f32 1.442695, %v3198_v6  ;;  %v3212_v41 = vmul.f32 1.442695, %v3211_v30 }
 0x71f   :  { %v3225_v42 = vmul.f32 1.442695, %v3224_v21  ;;  %4747 = vpow2.f32 %v3163_v34  ;;  %v3168_v10 = vmul.f32 1.442695, %v3167_v52  ;;  %v3190_v51 = vmul.f32 %v3189_v25, %v3161_v46 }
 0x720   :  { %4749 = vpow2.f32 %v3186_v0  ;;  %v3194_v63 = vmul.f32 %v3189_v25, %v3166_v50  ;;  %v3178_v18 = vmul.f32 1.442695, %v3177_v45  ;;  %v3203_v55 = vmul.f32 %v3202_v8, %v3161_v46 }
 0x721   :  { %4751 = vpow2.f32 %v3199_v9  ;;  %v3182_v3 = vmul.f32 1.442695, %v3181_v38  ;;  %v3207_v12 = vmul.f32 %v3202_v8, %v3166_v50  ;;  %v3191_v19 = vmul.f32 1.442695, %v3190_v51 }
 0x722   :  { %4753 = vpow2.f32 %v3212_v41  ;;  %v3216_v47 = vmul.f32 %v3215_v53, %v3161_v46  ;;  %v3195_v57 = vmul.f32 1.442695, %v3194_v63  ;;  %v3220_v58 = vmul.f32 %v3215_v53, %v3166_v50 }
 0x723   :  { %4755 = vpow2.f32 %v3225_v42  ;;  %v3204_v29 = vmul.f32 1.442695, %v3203_v55  ;;  %v3208_v56 = vmul.f32 1.442695, %v3207_v12 }
 0x724   :  { %v4746_v27 = vpop.eup %4745  ;;  %4757 = vpow2.f32 %v3168_v10  ;;  %v3217_v48 = vmul.f32 1.442695, %v3216_v47  ;;  %v3221_v13 = vmul.f32 1.442695, %v3220_v58 }
 0x725   :  { %v4748_v16 = vpop.eup %4747  ;;  %4759 = vpow2.f32 %v3178_v18 }
 0x726   :  { %v4750_v44 = vpop.eup %4749  ;;  %4761 = vpow2.f32 %v3182_v3 }
 0x727   :  { %v4752_v2 = vpop.eup %4751  ;;  %v3188_v60 = vadd.f32 %v4750_v44, %v4746_v27  ;;  %4763 = vpow2.f32 %v3191_v19 }
 0x728   :  { %v4754_v32 = vpop.eup %4753  ;;  %4765 = vpow2.f32 %v3195_v57 }
 0x729   :  { %v4756_v11 = vpop.eup %4755  ;;  %v3201_v26 = vadd.f32 %v4752_v2, %v3188_v60  ;;  %4767 = vpow2.f32 %v3204_v29 }
 0x72a   :  { %v4758_v22 = vpop.eup %4757  ;;  %4769 = vpow2.f32 %v3208_v56 }
 0x72b   :  { %v4760_v62 = vpop.eup %4759  ;;  %v3214_v20 = vadd.f32 %v4754_v32, %v3201_v26  ;;  %4771 = vpow2.f32 %v3217_v48 }
 0x72c   :  { %v4762_v23 = vpop.eup %4761  ;;  %v3180_v28 = vadd.f32 %v4760_v62, %v4748_v16  ;;  %4773 = vpow2.f32 %v3221_v13 }
 0x72d   :  { %v4764_v59 = vpop.eup %4763  ;;  %v3227_v4 = vadd.f32 %v4756_v11, %v3214_v20  ;;  %v3184_v61 = vadd.f32 %v4762_v23, %v4758_v22 }
 0x72e   :  { %v4766_v54 = vpop.eup %4765  ;;  %v3193_v31 = vadd.f32 %v4764_v59, %v3180_v28 }
 0x72f   :  { %v4768_v33 = vpop.eup %4767  ;;  %v3288_v40 = vsel %vm3121_vm11, %v3227_v4, 0.0  ;;  %v3197_v39 = vadd.f32 %v4766_v54, %v3184_v61  ;;  %v3254_v14 = vmul.f32 %v3253_v15, %v3227_v4  ;;  %v3229_v53 = vmul.f32 2.0, %v3227_v4 }
 0x730   :  { %v4770_v35 = vpop.eup %4769  ;;  %3289 = vadd.xlane.f32.xlu2 %v3288_v40  ;;  %v3206_v46 = vadd.f32 %v4768_v33, %v3193_v31 }
 0x731   :  { %v4772_v50 = vpop.eup %4771  ;;  %v3210_v43 = vadd.f32 %v4770_v35, %v3197_v39 }
 0x732   :  { %v4774_v5 = vpop.eup %4773  ;;  %v3219_v25 = vadd.f32 %v4772_v50, %v3206_v46 }
 0x733   :  { %v3223_v8 = vadd.f32 %v4774_v5, %v3210_v43 }
 0x734   :  { %v3250_v24 = vmul.f32 %v3219_v25, %v6237_v49  ;;  %v3267_v34 = vsel %vm3121_vm11, %v3219_v25, 0.0  ;;  %v4918_v49 = vmov 64.0  }
 0x735   :  { %v3228_v37 = vadd.f32 %v3223_v8, %v3219_v25  ;;  %v3251_v52 = vmul.f32 %v3223_v8, %v6239_v1  ;;  %v3277_v45 = vsel %vm3121_vm11, %v3223_v8, 0.0  ;;  %4775 = vrcp.f32 %v4918_v49 }
 0x737   :  { %v3230_v7 = vsub.f32 %v3228_v37, %v3229_v53  ;;  %v3252_v17 = vadd.f32 %v3251_v52, %v3250_v24 }
 0x739   :  { %v3231_v6 = vsel %vm3121_vm11, %v3230_v7, 0.0  ;;  %v3255_v30 = vsub.f32 %v3252_v17, %v3254_v14 }
 0x73a   :  { %3232 = vadd.xlane.f32.xlu0 %v3231_v6 }
 0x73b   :  { %v3256_v21 = vsel %vm3121_vm11, %v3255_v30, 0.0  ;;  %v4776_v1 = vpop.eup %4775 }
 0x73c   :  { %3257 = vadd.xlane.f32.xlu1 %v3256_v21  ;;  %v3242_v0 = vmul.f32 64.0, %v4776_v1  ;;  %vm3246_vm0 = vweird.f32 %v4776_v1 }
 0x73e   :  { %v3243_v9 = vsub.f32 1.0, %v3242_v0 }
 0x740   :  { %v3244_v63 = vmul.f32 %v4776_v1, %v3243_v9 }
 0x742   :  { %3268 = vadd.xlane.f32.xlu0 %v3267_v34  ;;  %v3245_v47 = vadd.f32 %v4776_v1, %v3244_v63 }
 0x744   :  { %3278 = vadd.xlane.f32.xlu1 %v3277_v45  ;;  %v3247_v60 = vsel %vm3246_vm0, %v4776_v1, %v3245_v47 }
 0x7a3   :  { %v3290_v41 = vpop.xlane.xlu2 %3289 }
 0x7a4   :  { %v3291_v10 = vrot.slane %v3290_v41, 4 }
 0x7a6   :  { %v3292_v19 = vadd.f32 %v3291_v10, %v3290_v41 }
 0x7a8   :  { %v3293_v56 = vrot.slane %v3292_v19, 2 }
 0x7aa   :  { %v3294_v20 = vadd.f32 %v3293_v56, %v3292_v19 }
 0x7ac   :  { %v3295_v4 = vrot.slane %v3294_v20, 1 }
 0x7ad   :  { %v3233_v42 = vpop.xlane.xlu0 %3232 }
 0x7ae   :  { %v3234_v38 = vrot.slane %v3233_v42, 4  ;;  %v3296_v33 = vadd.f32 %v3295_v4, %v3294_v20 }
 0x7af   :  { %v3258_v51 = vpop.xlane.xlu1 %3257 }
 0x7b0   :  { %v3235_v18 = vadd.f32 %v3234_v38, %v3233_v42  ;;  %v3259_v55 = vrot.slane %v3258_v51, 4 }
 0x7b2   :  { %v3236_v3 = vrot.slane %v3235_v18, 2  ;;  %v3260_v12 = vadd.f32 %v3259_v55, %v3258_v51 }
 0x7b4   :  { %v3261_v27 = vrot.slane %v3260_v12, 2  ;;  %v3237_v57 = vadd.f32 %v3236_v3, %v3235_v18 }
 0x7b5   :  { %v3269_v58 = vpop.xlane.xlu0 %3268 }
 0x7b6   :  { %v3270_v16 = vrot.slane %v3269_v58, 4  ;;  %v3238_v29 = vrot.slane %v3237_v57, 1  ;;  %v3262_v44 = vadd.f32 %v3261_v27, %v3260_v12 }
 0x7b7   :  { %v3279_v2 = vpop.xlane.xlu1 %3278 }
 0x7b8   :  { %v3271_v48 = vadd.f32 %v3270_v16, %v3269_v58  ;;  %v3280_v32 = vrot.slane %v3279_v2, 4  ;;  %v3239_v13 = vadd.f32 %v3238_v29, %v3237_v57  ;;  %v3263_v11 = vrot.slane %v3262_v44, 1 }
 0x7ba   :  { %v3272_v26 = vrot.slane %v3271_v48, 2  ;;  %v3281_v22 = vadd.f32 %v3280_v32, %v3279_v2  ;;  %4704 = vpush %v3239_v13  ;;  %v3264_v62 = vadd.f32 %v3263_v11, %v3262_v44 }
 0x7bb   :  { %4706 = vpush %v3247_v60 }
 0x7bc   :  { %v3273_v23 = vadd.f32 %v3272_v26, %v3271_v48  ;;  %v3282_v28 = vrot.slane %v3281_v22, 2  ;;  %4708 = vpush %v3264_v62 }
 0x7be   :  { %v3283_v59 = vadd.f32 %v3282_v28, %v3281_v22  ;;  %v3274_v15 = vrot.slane %v3273_v23, 1 }
 0x7c0   :  { %v3275_v61 = vadd.f32 %v3274_v15, %v3273_v23  ;;  %v3284_v54 = vrot.slane %v3283_v59, 1 }
 0x7c2   :  { %4710 = vpush %v3275_v61  ;;  %v3285_v31 = vadd.f32 %v3284_v54, %v3283_v59 }
 0x7c4   :  { %4712 = vpush %v3285_v31 }
 0x7c5   :  { %4714 = vpush %v3296_v33 }
 0x7eb   :  { %s4705_s7 = spop %4704 }
 0x7ec   :  { %s4707_s21 = spop %4706 }
 0x7ed   :  { %s4709_s22 = spop %4708  ;;  %s3249_s25 = smul.f32 %s4707_s21, %s4705_s7 }
 0x7ee   :  { %s3266_s4 = smul.f32 %s4709_s22, %s6919_s9 }
 0x7ef   :  { %v3303_v40 = vstv %s3249_s25 }
 0x7f0   :  { %v3304_v39 = vsel %vm3302_vm1, %v3303_v40, 0.0 }
 0x7f3   :  { %s4711_s0 = spop %4710 }
 0x7f5   :  { %s4713_s23 = spop %4712 }
 0x7f6   :  { %s3287_s24 = sadd.f32 %s4713_s23, %s4711_s0  ;;  %s4715_s26 = spop %4714 }
 0x7f8   :  { %s3298_s2 = sadd.f32 %s4715_s26, %s3287_s24 }
 0x7fa   :  { %p3299_p1 = scmp.ne.f32.partialorder %s3298_s2, %s3298_s2 }
 0x7fc   :  { %s6921_s4 = smov (%p3299_p1, %s3266_s4), 0.0 }
 0x7fd   :  { %v3305_v14 = vstv %s6921_s4 }
 0x7fe   :  { %v3306_v35 = vsel %vm3301_vm2, %v3305_v14, %v3304_v39 }
 0x7ff   :  { %3307 = vst [vmem:[%s6285_s8] sm:$0x1] %v3306_v35 }
 0x800   :  { %4903 = dma.done.wait [#allocation4], 128  }
 0x801   :  { %4904 = vsyncadd [#allocation4], 4294967168 }
 0x802   :  { %3327 = vsyncpa [#allocation3], 1 }
 0x803   :  { %3328 = vsyncpa [#allocation6], 1 }
 0x804   :  { %3329 = vsyncpa [#allocation9], 1 }
 0x805   :  { %3330 = vsyncpa [#allocation4], 1 }

</bundles_post_ra>
